<compile_context>
chip_gen: v7x
topology: tpu7x:2x2x1
jax: 0.10.0
libtpu: 0.0.40
codegen_flags: <defaults>
</compile_context>

<pallas_src>
import functools
import math

import jax
import jax.numpy as jnp
from jax.experimental import pallas as pl
from jax.experimental.pallas import tpu as pltpu


# ----------------------------------------------------------------------------
# Single fused kernel: one grid step == one batch element's full forward pass.
# ----------------------------------------------------------------------------
def _net_kernel(
    x_ref,                                   # (1, T*N, F)   input chunk stack
    t_ref,                                   # (1, 1)        scalar time
    lap_ref,                                 # (N, N)        scaled Laplacian
    c1w0_ref, c1w1_ref, c1b_ref,             # ChebConv(F->64, K=2)
    c2w0_ref, c2w1_ref, c2b_ref,             # ChebConv(64->1, K=2)
    w1r_ref, b1r_ref,                        # time_conv1 taps (3,1,64), (1,64)
    w2r_ref, b2r_ref,                        # time_conv2 taps (2,64,11), (1,11)
    w3r_ref, b3r_ref,                        # time_conv3 taps (T-1,11,64), (1,64)
    w4r_ref, b4r_ref,                        # time_conv4       (64,1), (1,1)
    te1wT_ref, te1bT_ref, te2wT_ref, te2bT_ref,   # time embedding (columns)
    qkw_ref, qkb_ref,                        # fused Q|K projection (1,256)
    headG_ref,                               # (128, 8) per-head sum matrix
    osrc_ref, odst_ref, odstT_ref,           # one-hot edge matrices
    wo1w_ref, wo1b_ref, wo2w_ref, wo2b_ref,  # Wout1 / Wout2
    o_ref,                                   # (1, 4N, F) output
    *, num_nodes, num_timestep,
):
    n = num_nodes
    T = num_timestep
    f32 = jnp.float32
    dot = functools.partial(jnp.dot, preferred_element_type=jnp.float32)

    xall = x_ref[0]                                   # (T*N, F)
    lap = lap_ref[...]

    # ---- GNN aggregation: ChebConv(F->64) -> ChebConv(64->1) for all T timesteps
    c1w0 = c1w0_ref[...]; c1w1 = c1w1_ref[...]; c1b = c1b_ref[...]
    c2w0 = c2w0_ref[...]; c2w1 = c2w1_ref[...]; c2b = c2b_ref[...]
    xw0_all = dot(xall, c1w0)                         # batch the x@W0 term across all T
    h_cols = []
    for tt in range(T):
        x_t = xall[tt * n:(tt + 1) * n, :]            # (N, F) aligned static slice
        tx1 = dot(lap, x_t)                           # (N, F)
        h1 = xw0_all[tt * n:(tt + 1) * n, :] + dot(tx1, c1w1) + c1b   # (N, 64)
        tx2 = dot(lap, h1)                            # (N, 64)
        h_cols.append(dot(h1, c2w0) + dot(tx2, c2w1) + c2b)           # (N, 1)

    # ---- time convolution: tc1..tc4 fused, all intermediates stay on-chip ----
    # Each 1xk conv = k shifted (N, Cin) @ (Cin, Cout) accumulations.
    zero_col = jnp.zeros((n, 1), f32)
    x0 = [zero_col] + h_cols + [zero_col]             # zero-padded length T+2
    w10 = w1r_ref[0]; w11 = w1r_ref[1]; w12 = w1r_ref[2]; b1r = b1r_ref[...]
    h1s = [x0[tt] * w10 + x0[tt + 1] * w11 + x0[tt + 2] * w12 + b1r
           for tt in range(T)]                        # T x (N, 64)
    w2a = w2r_ref[0]; w2b = w2r_ref[1]; b2r = b2r_ref[...]
    h2s = [dot(h1s[tt], w2a) + dot(h1s[tt + 1], w2b) + b2r
           for tt in range(T - 1)]                    # (T-1) x (N, 11)
    # TODO(synk): time_conv3/time_conv4 are used in the reference forward but never
    # defined in __init__; synthesized as (1, T-1) and (1, 1) convs (kept from before).
    acc3 = dot(h2s[0], w3r_ref[0])
    for tt in range(1, T - 1):
        acc3 = acc3 + dot(h2s[tt], w3r_ref[tt])
    h3 = acc3 + b3r_ref[...]                          # (N, 64)
    h4 = dot(h3, w4r_ref[...]) + b4r_ref[...]         # (N, 1)

    # ---- time embedding: Linear(1,128) -> Linear(128, N), produced as a column ----
    tval = t_ref[...]                                 # (1, 1)
    hcol = te1wT_ref[...] * tval + te1bT_ref[...]     # (128, 1)
    te_col = dot(te2wT_ref[...], hcol) + te2bT_ref[...]   # (N, 1)

    h_st = h4 + te_col                                # (N, 1)

    # ---- SpGraphTransAttention: Q/K projection + per-edge dot product + softmax(E)
    # Linear(1, .) == scale + shift, so the projection is a broadcast multiply.
    # (V is also computed in the reference but its value is discarded by forward().)
    qk = h_st * qkw_ref[...] + qkb_ref[...]           # (N, 256)
    q = qk[:, 0:128]
    k = qk[:, 128:256]
    qsrc = dot(osrc_ref[...], q)                      # (E, 128) = q[edge[0]]
    kdst = dot(odst_ref[...], k)                      # (E, 128) = k[edge[1]]
    d_k = 128 // 8
    prods = dot(qsrc * kdst, headG_ref[...]) * (1.0 / math.sqrt(d_k))   # (E, 8)
    pmax = jnp.max(prods, axis=0, keepdims=True)
    pe = jnp.exp(prods - pmax)
    attn = pe * pl.reciprocal(jnp.sum(pe, axis=0, keepdims=True), approx=True)  # (E, 8)

    # ---- diffusion term ----
    # TODO(synk): div_operator()/diffusion_G_cal() are not defined in the reference
    # module; reconstructed as attention-weighted neighbor aggregation + Wout1/Wout2.
    w_edge = jnp.mean(attn, axis=1, keepdims=True)    # (E, 1)
    gathered = dot(osrc_ref[...], h_st)               # (E, 1) = h_st[src_e]
    agg = dot(odstT_ref[...], w_edge * gathered)      # (N, 1) scatter-add to dst
    y1 = agg * wo1w_ref[...] + wo1b_ref[...]          # (N, 64)
    x_new = dot(y1, wo2w_ref[...]) + wo2b_ref[...]    # (N, F)

    # ---- finite differences + concat into the (4N, F) output slab ----
    dt = 1.0 / 287.0
    cm4 = xall[(T - 4) * n:(T - 3) * n, :]
    cm3 = xall[(T - 3) * n:(T - 2) * n, :]
    cm2 = xall[(T - 2) * n:(T - 1) * n, :]
    cm1 = xall[(T - 1) * n:T * n, :]
    o_ref[0, 0:n, :] = (cm3 - cm4) / dt
    o_ref[0, n:2 * n, :] = (cm2 - cm3) / dt
    o_ref[0, 2 * n:3 * n, :] = (cm1 - cm2) / dt
    o_ref[0, 3 * n:4 * n, :] = x_new


def _const_spec(shape):
    nd = len(shape)
    return pl.BlockSpec(shape, lambda b, nd=nd: (0,) * nd)


# ----------------------------------------------------------------------------
# Once-per-graph / once-per-params preprocessing (hoisted out of the hot path)
# ----------------------------------------------------------------------------
def prepare_graph(edge_index, edge_attr, num_nodes):
    """Scaled Laplacian (PyG ChebConv sym norm, lambda_max=2) + one-hot edge mats."""
    row, col = edge_index[0], edge_index[1]
    deg = jnp.zeros((num_nodes,), jnp.float32).at[row].add(edge_attr)
    dis = jnp.where(deg > 0, 1.0 / jnp.sqrt(deg), 0.0)
    norm = dis[row] * edge_attr * dis[col]
    lap = jnp.zeros((num_nodes, num_nodes), jnp.float32).at[col, row].add(-norm)
    nodes = jnp.arange(num_nodes)
    osrc = (edge_index[0][:, None] == nodes[None, :]).astype(jnp.float32)   # (E, N)
    odst = (edge_index[1][:, None] == nodes[None, :]).astype(jnp.float32)   # (E, N)
    return {"lap": lap, "osrc": osrc, "odst": odst, "odstT": odst.T}


def prepare_params(p, num_timestep):
    """Rearrange PyTorch-layout parameters into kernel-ready 2-D/3-D slabs."""
    q = {}
    q["c1w0"], q["c1w1"] = p["conv1_w0"], p["conv1_w1"]
    q["c1b"] = p["conv1_b"].reshape(1, -1)
    q["c2w0"], q["c2w1"] = p["conv2_w0"], p["conv2_w1"]
    q["c2b"] = p["conv2_b"].reshape(1, -1)
    # time convs: per-tap (Cin, Cout) matrices so each conv is shifted matmuls
    q["w1r"] = jnp.transpose(p["tc1_w"][:, 0, 0, :], (1, 0))[:, None, :]     # (3,1,64)
    q["b1r"] = p["tc1_b"].reshape(1, -1)
    q["w2r"] = jnp.transpose(p["tc2_w"][:, :, 0, :], (2, 1, 0))              # (2,64,11)
    q["b2r"] = p["tc2_b"].reshape(1, -1)
    q["w3r"] = jnp.transpose(p["tc3_w"][:, :, 0, :], (2, 1, 0))              # (T-1,11,64)
    q["b3r"] = p["tc3_b"].reshape(1, -1)
    q["w4r"] = jnp.transpose(p["tc4_w"][:, :, 0, 0], (1, 0))                 # (64,1)
    q["b4r"] = p["tc4_b"].reshape(1, -1)
    # time embedding, transposed so the kernel emits a (N,1) column directly
    q["te1wT"] = jnp.transpose(p["te1_w"])                                   # (128,1)
    q["te1bT"] = p["te1_b"].reshape(-1, 1)                                   # (128,1)
    q["te2wT"] = jnp.transpose(p["te2_w"])                                   # (N,128)
    q["te2bT"] = p["te2_b"].reshape(-1, 1)                                   # (N,1)
    # fused Q|K projection (256 lanes = 2x128, lane-dense)
    q["qkw"] = jnp.concatenate([p["attn_Q_w"], p["attn_K_w"]], axis=1)       # (1,256)
    q["qkb"] = jnp.concatenate([p["attn_Q_b"], p["attn_K_b"]], axis=0).reshape(1, -1)
    # per-head sum matrix: prods = (Qsrc*Kdst) @ headG, avoids in-kernel reshapes
    d_k = 128 // 8
    q["headG"] = (jnp.arange(128)[:, None] // d_k
                  == jnp.arange(8)[None, :]).astype(jnp.float32)             # (128,8)
    q["wo1w"] = p["Wout1_w"]; q["wo1b"] = p["Wout1_b"].reshape(1, -1)
    q["wo2w"] = p["Wout2_w"]; q["wo2b"] = p["Wout2_b"].reshape(1, -1)
    return q


# ----------------------------------------------------------------------------
# Forward pass: exactly ONE pallas_call, grid over the batch.
# ----------------------------------------------------------------------------
@functools.partial(jax.jit, static_argnames=("num_timestep",))
def net_forward(kparams, graph, t, x_list, num_timestep):
    bsz, tn, f = x_list.shape
    n = tn // num_timestep
    T = num_timestep

    const_args = (
        t.reshape(1, 1).astype(jnp.float32),
        graph["lap"],
        kparams["c1w0"], kparams["c1w1"], kparams["c1b"],
        kparams["c2w0"], kparams["c2w1"], kparams["c2b"],
        kparams["w1r"], kparams["b1r"],
        kparams["w2r"], kparams["b2r"],
        kparams["w3r"], kparams["b3r"],
        kparams["w4r"], kparams["b4r"],
        kparams["te1wT"], kparams["te1bT"], kparams["te2wT"], kparams["te2bT"],
        kparams["qkw"], kparams["qkb"],
        kparams["headG"],
        graph["osrc"], graph["odst"], graph["odstT"],
        kparams["wo1w"], kparams["wo1b"], kparams["wo2w"], kparams["wo2b"],
    )

    kernel = functools.partial(_net_kernel, num_nodes=n, num_timestep=T)
    return pl.pallas_call(
        kernel,
        out_shape=jax.ShapeDtypeStruct((bsz, 4 * n, f), jnp.float32),
        grid=(bsz,),
        in_specs=[pl.BlockSpec((1, T * n, f), lambda b: (b, 0, 0))]
        + [_const_spec(a.shape) for a in const_args],
        out_specs=pl.BlockSpec((1, 4 * n, f), lambda b: (b, 0, 0)),
        compiler_params=pltpu.CompilerParams(dimension_semantics=("parallel",)),
    )(x_list.astype(jnp.float32), *const_args)


# ----------------------------------------------------------------------------
# Deterministic parameter init (synthetic, PyTorch layouts)
# ----------------------------------------------------------------------------
def init_params(key, num_nodes, num_features, num_timestep):
    ks = jax.random.split(key, 16)

    def w(k, shape, s=0.1):
        return (s * jax.random.normal(k, shape)).astype(jnp.float32)

    p = {}
    # ChebConv(num_features, 64, K=2), ChebConv(64, 1, K=2)
    p["conv1_w0"] = w(ks[0], (num_features, 64)); p["conv1_w1"] = w(ks[1], (num_features, 64))
    p["conv1_b"] = jnp.zeros((64,), jnp.float32)
    p["conv2_w0"] = w(ks[2], (64, 1)); p["conv2_w1"] = w(ks[3], (64, 1))
    p["conv2_b"] = jnp.zeros((1,), jnp.float32)
    # time convs (NCHW weights, kernel (1,k)); tc3/tc4 synthesized (see TODO in kernel)
    p["tc1_w"] = w(ks[4], (64, 1, 1, 3));  p["tc1_b"] = jnp.zeros((64,), jnp.float32)
    p["tc2_w"] = w(ks[5], (11, 64, 1, 2)); p["tc2_b"] = jnp.zeros((11,), jnp.float32)
    p["tc3_w"] = w(ks[6], (64, 11, 1, num_timestep - 1)); p["tc3_b"] = jnp.zeros((64,), jnp.float32)
    p["tc4_w"] = w(ks[7], (1, 64, 1, 1));  p["tc4_b"] = jnp.zeros((1,), jnp.float32)
    # attention layer: weights constant 1e-5 (matches init_weights), biases zero
    for name in ("Q", "K", "V"):
        p[f"attn_{name}_w"] = jnp.full((1, 128), 1e-5, jnp.float32)
        p[f"attn_{name}_b"] = jnp.zeros((128,), jnp.float32)
    # Wout1 / Wout2 / time_embed1 / time_embed2
    p["Wout1_w"] = w(ks[8], (1, 64));            p["Wout1_b"] = jnp.zeros((64,), jnp.float32)
    p["Wout2_w"] = w(ks[9], (64, num_features)); p["Wout2_b"] = jnp.zeros((num_features,), jnp.float32)
    p["te1_w"] = w(ks[10], (1, 128));            p["te1_b"] = jnp.zeros((128,), jnp.float32)
    p["te2_w"] = w(ks[11], (128, num_nodes));    p["te2_b"] = jnp.zeros((num_nodes,), jnp.float32)
    return p


if __name__ == "__main__":
    key = jax.random.PRNGKey(0)
    B, N, F, T = 2, 16, 4, 12   # batch, num_nodes, num_features, num_timestep

    # simple bidirectional ring graph (static -> graph constants hoisted once)
    src = jnp.arange(N, dtype=jnp.int32)
    dst = (src + 1) % N
    edge_index = jnp.concatenate(
        [jnp.stack([src, dst], axis=0), jnp.stack([dst, src], axis=0)], axis=1
    )                                                        # (2, 2N)
    k_e, k_x = jax.random.split(key, 2)
    edge_attr = jnp.abs(jax.random.normal(k_e, (edge_index.shape[1],))) + 0.5

    params = init_params(key, N, F, T)
    kparams = prepare_params(params, T)
    graph = prepare_graph(edge_index, edge_attr, N)

    t = jnp.array([0.5], dtype=jnp.float32)
    x_list = jax.random.normal(k_x, (B, T * N, F), jnp.float32)

    out = net_forward(kparams, graph, t, x_list, num_timestep=T)
    out = jax.block_until_ready(out)
    assert out.shape == (B, 4 * N, F)
    print("KERNEL_OK")
</pallas_src>

<mosaic_0001>
module attributes {stable_mosaic.version = 11 : i64} {
  func.func @_net_kernel(%arg0: i32, %arg1: memref<1x192x4xf32, #tpu.memory_space<vmem>>, %arg2: memref<1x1xf32, #tpu.memory_space<vmem>>, %arg3: memref<16x16xf32, #tpu.memory_space<vmem>>, %arg4: memref<4x64xf32, #tpu.memory_space<vmem>>, %arg5: memref<4x64xf32, #tpu.memory_space<vmem>>, %arg6: memref<1x64xf32, #tpu.memory_space<vmem>>, %arg7: memref<64x1xf32, #tpu.memory_space<vmem>>, %arg8: memref<64x1xf32, #tpu.memory_space<vmem>>, %arg9: memref<1x1xf32, #tpu.memory_space<vmem>>, %arg10: memref<3x1x64xf32, #tpu.memory_space<vmem>>, %arg11: memref<1x64xf32, #tpu.memory_space<vmem>>, %arg12: memref<2x64x11xf32, #tpu.memory_space<vmem>>, %arg13: memref<1x11xf32, #tpu.memory_space<vmem>>, %arg14: memref<11x11x64xf32, #tpu.memory_space<vmem>>, %arg15: memref<1x64xf32, #tpu.memory_space<vmem>>, %arg16: memref<64x1xf32, #tpu.memory_space<vmem>>, %arg17: memref<1x1xf32, #tpu.memory_space<vmem>>, %arg18: memref<128x1xf32, #tpu.memory_space<vmem>>, %arg19: memref<128x1xf32, #tpu.memory_space<vmem>>, %arg20: memref<16x128xf32, #tpu.memory_space<vmem>>, %arg21: memref<16x1xf32, #tpu.memory_space<vmem>>, %arg22: memref<1x256xf32, #tpu.memory_space<vmem>>, %arg23: memref<1x256xf32, #tpu.memory_space<vmem>>, %arg24: memref<128x8xf32, #tpu.memory_space<vmem>>, %arg25: memref<32x16xf32, #tpu.memory_space<vmem>>, %arg26: memref<32x16xf32, #tpu.memory_space<vmem>>, %arg27: memref<16x32xf32, #tpu.memory_space<vmem>>, %arg28: memref<1x64xf32, #tpu.memory_space<vmem>>, %arg29: memref<1x64xf32, #tpu.memory_space<vmem>>, %arg30: memref<64x4xf32, #tpu.memory_space<vmem>>, %arg31: memref<1x4xf32, #tpu.memory_space<vmem>>, %arg32: memref<1x64x4xf32, #tpu.memory_space<vmem>>) attributes {dimension_semantics = [#tpu.dimension_semantics<parallel>], iteration_bounds = array<i64: 2>, scalar_prefetch = 0 : i64, scratch_operands = 0 : i64, tpu.core_type = #tpu.core_type<tc>, window_params = [{transform_indices = @transform_0, window_bounds = array<i64: 1, 192, 4>}, {pipeline_mode = #tpu.pipeline_mode<synchronous>, transform_indices = @transform_1, window_bounds = array<i64: 1, 1>}, {pipeline_mode = #tpu.pipeline_mode<synchronous>, transform_indices = @transform_2, window_bounds = array<i64: 16, 16>}, {pipeline_mode = #tpu.pipeline_mode<synchronous>, transform_indices = @transform_3, window_bounds = array<i64: 4, 64>}, {pipeline_mode = #tpu.pipeline_mode<synchronous>, transform_indices = @transform_4, window_bounds = array<i64: 4, 64>}, {pipeline_mode = #tpu.pipeline_mode<synchronous>, transform_indices = @transform_5, window_bounds = array<i64: 1, 64>}, {pipeline_mode = #tpu.pipeline_mode<synchronous>, transform_indices = @transform_6, window_bounds = array<i64: 64, 1>}, {pipeline_mode = #tpu.pipeline_mode<synchronous>, transform_indices = @transform_7, window_bounds = array<i64: 64, 1>}, {pipeline_mode = #tpu.pipeline_mode<synchronous>, transform_indices = @transform_8, window_bounds = array<i64: 1, 1>}, {pipeline_mode = #tpu.pipeline_mode<synchronous>, transform_indices = @transform_9, window_bounds = array<i64: 3, 1, 64>}, {pipeline_mode = #tpu.pipeline_mode<synchronous>, transform_indices = @transform_10, window_bounds = array<i64: 1, 64>}, {pipeline_mode = #tpu.pipeline_mode<synchronous>, transform_indices = @transform_11, window_bounds = array<i64: 2, 64, 11>}, {pipeline_mode = #tpu.pipeline_mode<synchronous>, transform_indices = @transform_12, window_bounds = array<i64: 1, 11>}, {pipeline_mode = #tpu.pipeline_mode<synchronous>, transform_indices = @transform_13, window_bounds = array<i64: 11, 11, 64>}, {pipeline_mode = #tpu.pipeline_mode<synchronous>, transform_indices = @transform_14, window_bounds = array<i64: 1, 64>}, {pipeline_mode = #tpu.pipeline_mode<synchronous>, transform_indices = @transform_15, window_bounds = array<i64: 64, 1>}, {pipeline_mode = #tpu.pipeline_mode<synchronous>, transform_indices = @transform_16, window_bounds = array<i64: 1, 1>}, {pipeline_mode = #tpu.pipeline_mode<synchronous>, transform_indices = @transform_17, window_bounds = array<i64: 128, 1>}, {pipeline_mode = #tpu.pipeline_mode<synchronous>, transform_indices = @transform_18, window_bounds = array<i64: 128, 1>}, {pipeline_mode = #tpu.pipeline_mode<synchronous>, transform_indices = @transform_19, window_bounds = array<i64: 16, 128>}, {pipeline_mode = #tpu.pipeline_mode<synchronous>, transform_indices = @transform_20, window_bounds = array<i64: 16, 1>}, {pipeline_mode = #tpu.pipeline_mode<synchronous>, transform_indices = @transform_21, window_bounds = array<i64: 1, 256>}, {pipeline_mode = #tpu.pipeline_mode<synchronous>, transform_indices = @transform_22, window_bounds = array<i64: 1, 256>}, {pipeline_mode = #tpu.pipeline_mode<synchronous>, transform_indices = @transform_23, window_bounds = array<i64: 128, 8>}, {pipeline_mode = #tpu.pipeline_mode<synchronous>, transform_indices = @transform_24, window_bounds = array<i64: 32, 16>}, {pipeline_mode = #tpu.pipeline_mode<synchronous>, transform_indices = @transform_25, window_bounds = array<i64: 32, 16>}, {pipeline_mode = #tpu.pipeline_mode<synchronous>, transform_indices = @transform_26, window_bounds = array<i64: 16, 32>}, {pipeline_mode = #tpu.pipeline_mode<synchronous>, transform_indices = @transform_27, window_bounds = array<i64: 1, 64>}, {pipeline_mode = #tpu.pipeline_mode<synchronous>, transform_indices = @transform_28, window_bounds = array<i64: 1, 64>}, {pipeline_mode = #tpu.pipeline_mode<synchronous>, transform_indices = @transform_29, window_bounds = array<i64: 64, 4>}, {pipeline_mode = #tpu.pipeline_mode<synchronous>, transform_indices = @transform_30, window_bounds = array<i64: 1, 4>}, {transform_indices = @transform_31, window_bounds = array<i64: 1, 64, 4>}]} {
    %c0 = arith.constant 0 : index
    %c0_0 = arith.constant 0 : index
    %c0_1 = arith.constant 0 : index
    %0 = vector.load %arg1[%c0, %c0_0, %c0_1] : memref<1x192x4xf32, #tpu.memory_space<vmem>>, vector<1x192x4xf32>
    %1 = vector.shape_cast %0 : vector<1x192x4xf32> to vector<192x4xf32>
    %c0_2 = arith.constant 0 : index
    %c0_3 = arith.constant 0 : index
    %2 = vector.load %arg3[%c0_2, %c0_3] : memref<16x16xf32, #tpu.memory_space<vmem>>, vector<16x16xf32>
    %c0_4 = arith.constant 0 : index
    %c0_5 = arith.constant 0 : index
    %3 = vector.load %arg4[%c0_4, %c0_5] : memref<4x64xf32, #tpu.memory_space<vmem>>, vector<4x64xf32>
    %c0_6 = arith.constant 0 : index
    %c0_7 = arith.constant 0 : index
    %4 = vector.load %arg5[%c0_6, %c0_7] : memref<4x64xf32, #tpu.memory_space<vmem>>, vector<4x64xf32>
    %c0_8 = arith.constant 0 : index
    %c0_9 = arith.constant 0 : index
    %5 = vector.load %arg6[%c0_8, %c0_9] : memref<1x64xf32, #tpu.memory_space<vmem>>, vector<1x64xf32>
    %c0_10 = arith.constant 0 : index
    %c0_11 = arith.constant 0 : index
    %6 = vector.load %arg7[%c0_10, %c0_11] : memref<64x1xf32, #tpu.memory_space<vmem>>, vector<64x1xf32>
    %c0_12 = arith.constant 0 : index
    %c0_13 = arith.constant 0 : index
    %7 = vector.load %arg8[%c0_12, %c0_13] : memref<64x1xf32, #tpu.memory_space<vmem>>, vector<64x1xf32>
    %c0_14 = arith.constant 0 : index
    %c0_15 = arith.constant 0 : index
    %8 = vector.load %arg9[%c0_14, %c0_15] : memref<1x1xf32, #tpu.memory_space<vmem>>, vector<1x1xf32>
    %cst = arith.constant dense<0.000000e+00> : vector<192x64xf32>
    %9 = tpu.matmul %1, %3, %cst {dimension_numbers = #tpu.dot_dimension_numbers<[1], [0], [0], [1], [0, 0, 1, 1], [], []>} : vector<192x4xf32>, vector<4x64xf32>, vector<192x64xf32> -> vector<192x64xf32>
    %10 = vector.extract_strided_slice %1 {offsets = [0, 0], sizes = [16, 4], strides = [1, 1]} : vector<192x4xf32> to vector<16x4xf32>
    %cst_16 = arith.constant dense<0.000000e+00> : vector<16x4xf32>
    %11 = tpu.matmul %2, %10, %cst_16 {dimension_numbers = #tpu.dot_dimension_numbers<[1], [0], [0], [1], [0, 0, 1, 1], [], []>} : vector<16x16xf32>, vector<16x4xf32>, vector<16x4xf32> -> vector<16x4xf32>
    %12 = vector.extract_strided_slice %9 {offsets = [0, 0], sizes = [16, 64], strides = [1, 1]} : vector<192x64xf32> to vector<16x64xf32>
    %cst_17 = arith.constant dense<0.000000e+00> : vector<16x64xf32>
    %13 = tpu.matmul %11, %4, %cst_17 {dimension_numbers = #tpu.dot_dimension_numbers<[1], [0], [0], [1], [0, 0, 1, 1], [], []>} : vector<16x4xf32>, vector<4x64xf32>, vector<16x64xf32> -> vector<16x64xf32>
    %14 = arith.addf %12, %13 : vector<16x64xf32>
    %15 = vector.broadcast %5 : vector<1x64xf32> to vector<16x64xf32>
    %16 = arith.addf %14, %15 : vector<16x64xf32>
    %cst_18 = arith.constant dense<0.000000e+00> : vector<16x64xf32>
    %17 = tpu.matmul %2, %16, %cst_18 {dimension_numbers = #tpu.dot_dimension_numbers<[1], [0], [0], [1], [0, 0, 1, 1], [], []>} : vector<16x16xf32>, vector<16x64xf32>, vector<16x64xf32> -> vector<16x64xf32>
    %cst_19 = arith.constant dense<0.000000e+00> : vector<16x1xf32>
    %18 = tpu.matmul %16, %6, %cst_19 {dimension_numbers = #tpu.dot_dimension_numbers<[1], [0], [0], [1], [0, 0, 1, 1], [], []>} : vector<16x64xf32>, vector<64x1xf32>, vector<16x1xf32> -> vector<16x1xf32>
    %cst_20 = arith.constant dense<0.000000e+00> : vector<16x1xf32>
    %19 = tpu.matmul %17, %7, %cst_20 {dimension_numbers = #tpu.dot_dimension_numbers<[1], [0], [0], [1], [0, 0, 1, 1], [], []>} : vector<16x64xf32>, vector<64x1xf32>, vector<16x1xf32> -> vector<16x1xf32>
    %20 = arith.addf %18, %19 : vector<16x1xf32>
    %21 = vector.broadcast %8 : vector<1x1xf32> to vector<16x1xf32>
    %22 = arith.addf %20, %21 : vector<16x1xf32>
    %23 = vector.extract_strided_slice %1 {offsets = [16, 0], sizes = [16, 4], strides = [1, 1]} : vector<192x4xf32> to vector<16x4xf32>
    %cst_21 = arith.constant dense<0.000000e+00> : vector<16x4xf32>
    %24 = tpu.matmul %2, %23, %cst_21 {dimension_numbers = #tpu.dot_dimension_numbers<[1], [0], [0], [1], [0, 0, 1, 1], [], []>} : vector<16x16xf32>, vector<16x4xf32>, vector<16x4xf32> -> vector<16x4xf32>
    %25 = vector.extract_strided_slice %9 {offsets = [16, 0], sizes = [16, 64], strides = [1, 1]} : vector<192x64xf32> to vector<16x64xf32>
    %cst_22 = arith.constant dense<0.000000e+00> : vector<16x64xf32>
    %26 = tpu.matmul %24, %4, %cst_22 {dimension_numbers = #tpu.dot_dimension_numbers<[1], [0], [0], [1], [0, 0, 1, 1], [], []>} : vector<16x4xf32>, vector<4x64xf32>, vector<16x64xf32> -> vector<16x64xf32>
    %27 = arith.addf %25, %26 : vector<16x64xf32>
    %28 = vector.broadcast %5 : vector<1x64xf32> to vector<16x64xf32>
    %29 = arith.addf %27, %28 : vector<16x64xf32>
    %cst_23 = arith.constant dense<0.000000e+00> : vector<16x64xf32>
    %30 = tpu.matmul %2, %29, %cst_23 {dimension_numbers = #tpu.dot_dimension_numbers<[1], [0], [0], [1], [0, 0, 1, 1], [], []>} : vector<16x16xf32>, vector<16x64xf32>, vector<16x64xf32> -> vector<16x64xf32>
    %cst_24 = arith.constant dense<0.000000e+00> : vector<16x1xf32>
    %31 = tpu.matmul %29, %6, %cst_24 {dimension_numbers = #tpu.dot_dimension_numbers<[1], [0], [0], [1], [0, 0, 1, 1], [], []>} : vector<16x64xf32>, vector<64x1xf32>, vector<16x1xf32> -> vector<16x1xf32>
    %cst_25 = arith.constant dense<0.000000e+00> : vector<16x1xf32>
    %32 = tpu.matmul %30, %7, %cst_25 {dimension_numbers = #tpu.dot_dimension_numbers<[1], [0], [0], [1], [0, 0, 1, 1], [], []>} : vector<16x64xf32>, vector<64x1xf32>, vector<16x1xf32> -> vector<16x1xf32>
    %33 = arith.addf %31, %32 : vector<16x1xf32>
    %34 = vector.broadcast %8 : vector<1x1xf32> to vector<16x1xf32>
    %35 = arith.addf %33, %34 : vector<16x1xf32>
    %36 = vector.extract_strided_slice %1 {offsets = [32, 0], sizes = [16, 4], strides = [1, 1]} : vector<192x4xf32> to vector<16x4xf32>
    %cst_26 = arith.constant dense<0.000000e+00> : vector<16x4xf32>
    %37 = tpu.matmul %2, %36, %cst_26 {dimension_numbers = #tpu.dot_dimension_numbers<[1], [0], [0], [1], [0, 0, 1, 1], [], []>} : vector<16x16xf32>, vector<16x4xf32>, vector<16x4xf32> -> vector<16x4xf32>
    %38 = vector.extract_strided_slice %9 {offsets = [32, 0], sizes = [16, 64], strides = [1, 1]} : vector<192x64xf32> to vector<16x64xf32>
    %cst_27 = arith.constant dense<0.000000e+00> : vector<16x64xf32>
    %39 = tpu.matmul %37, %4, %cst_27 {dimension_numbers = #tpu.dot_dimension_numbers<[1], [0], [0], [1], [0, 0, 1, 1], [], []>} : vector<16x4xf32>, vector<4x64xf32>, vector<16x64xf32> -> vector<16x64xf32>
    %40 = arith.addf %38, %39 : vector<16x64xf32>
    %41 = vector.broadcast %5 : vector<1x64xf32> to vector<16x64xf32>
    %42 = arith.addf %40, %41 : vector<16x64xf32>
    %cst_28 = arith.constant dense<0.000000e+00> : vector<16x64xf32>
    %43 = tpu.matmul %2, %42, %cst_28 {dimension_numbers = #tpu.dot_dimension_numbers<[1], [0], [0], [1], [0, 0, 1, 1], [], []>} : vector<16x16xf32>, vector<16x64xf32>, vector<16x64xf32> -> vector<16x64xf32>
    %cst_29 = arith.constant dense<0.000000e+00> : vector<16x1xf32>
    %44 = tpu.matmul %42, %6, %cst_29 {dimension_numbers = #tpu.dot_dimension_numbers<[1], [0], [0], [1], [0, 0, 1, 1], [], []>} : vector<16x64xf32>, vector<64x1xf32>, vector<16x1xf32> -> vector<16x1xf32>
    %cst_30 = arith.constant dense<0.000000e+00> : vector<16x1xf32>
    %45 = tpu.matmul %43, %7, %cst_30 {dimension_numbers = #tpu.dot_dimension_numbers<[1], [0], [0], [1], [0, 0, 1, 1], [], []>} : vector<16x64xf32>, vector<64x1xf32>, vector<16x1xf32> -> vector<16x1xf32>
    %46 = arith.addf %44, %45 : vector<16x1xf32>
    %47 = vector.broadcast %8 : vector<1x1xf32> to vector<16x1xf32>
    %48 = arith.addf %46, %47 : vector<16x1xf32>
    %49 = vector.extract_strided_slice %1 {offsets = [48, 0], sizes = [16, 4], strides = [1, 1]} : vector<192x4xf32> to vector<16x4xf32>
    %cst_31 = arith.constant dense<0.000000e+00> : vector<16x4xf32>
    %50 = tpu.matmul %2, %49, %cst_31 {dimension_numbers = #tpu.dot_dimension_numbers<[1], [0], [0], [1], [0, 0, 1, 1], [], []>} : vector<16x16xf32>, vector<16x4xf32>, vector<16x4xf32> -> vector<16x4xf32>
    %51 = vector.extract_strided_slice %9 {offsets = [48, 0], sizes = [16, 64], strides = [1, 1]} : vector<192x64xf32> to vector<16x64xf32>
    %cst_32 = arith.constant dense<0.000000e+00> : vector<16x64xf32>
    %52 = tpu.matmul %50, %4, %cst_32 {dimension_numbers = #tpu.dot_dimension_numbers<[1], [0], [0], [1], [0, 0, 1, 1], [], []>} : vector<16x4xf32>, vector<4x64xf32>, vector<16x64xf32> -> vector<16x64xf32>
    %53 = arith.addf %51, %52 : vector<16x64xf32>
    %54 = vector.broadcast %5 : vector<1x64xf32> to vector<16x64xf32>
    %55 = arith.addf %53, %54 : vector<16x64xf32>
    %cst_33 = arith.constant dense<0.000000e+00> : vector<16x64xf32>
    %56 = tpu.matmul %2, %55, %cst_33 {dimension_numbers = #tpu.dot_dimension_numbers<[1], [0], [0], [1], [0, 0, 1, 1], [], []>} : vector<16x16xf32>, vector<16x64xf32>, vector<16x64xf32> -> vector<16x64xf32>
    %cst_34 = arith.constant dense<0.000000e+00> : vector<16x1xf32>
    %57 = tpu.matmul %55, %6, %cst_34 {dimension_numbers = #tpu.dot_dimension_numbers<[1], [0], [0], [1], [0, 0, 1, 1], [], []>} : vector<16x64xf32>, vector<64x1xf32>, vector<16x1xf32> -> vector<16x1xf32>
    %cst_35 = arith.constant dense<0.000000e+00> : vector<16x1xf32>
    %58 = tpu.matmul %56, %7, %cst_35 {dimension_numbers = #tpu.dot_dimension_numbers<[1], [0], [0], [1], [0, 0, 1, 1], [], []>} : vector<16x64xf32>, vector<64x1xf32>, vector<16x1xf32> -> vector<16x1xf32>
    %59 = arith.addf %57, %58 : vector<16x1xf32>
    %60 = vector.broadcast %8 : vector<1x1xf32> to vector<16x1xf32>
    %61 = arith.addf %59, %60 : vector<16x1xf32>
    %62 = vector.extract_strided_slice %1 {offsets = [64, 0], sizes = [16, 4], strides = [1, 1]} : vector<192x4xf32> to vector<16x4xf32>
    %cst_36 = arith.constant dense<0.000000e+00> : vector<16x4xf32>
    %63 = tpu.matmul %2, %62, %cst_36 {dimension_numbers = #tpu.dot_dimension_numbers<[1], [0], [0], [1], [0, 0, 1, 1], [], []>} : vector<16x16xf32>, vector<16x4xf32>, vector<16x4xf32> -> vector<16x4xf32>
    %64 = vector.extract_strided_slice %9 {offsets = [64, 0], sizes = [16, 64], strides = [1, 1]} : vector<192x64xf32> to vector<16x64xf32>
    %cst_37 = arith.constant dense<0.000000e+00> : vector<16x64xf32>
    %65 = tpu.matmul %63, %4, %cst_37 {dimension_numbers = #tpu.dot_dimension_numbers<[1], [0], [0], [1], [0, 0, 1, 1], [], []>} : vector<16x4xf32>, vector<4x64xf32>, vector<16x64xf32> -> vector<16x64xf32>
    %66 = arith.addf %64, %65 : vector<16x64xf32>
    %67 = vector.broadcast %5 : vector<1x64xf32> to vector<16x64xf32>
    %68 = arith.addf %66, %67 : vector<16x64xf32>
    %cst_38 = arith.constant dense<0.000000e+00> : vector<16x64xf32>
    %69 = tpu.matmul %2, %68, %cst_38 {dimension_numbers = #tpu.dot_dimension_numbers<[1], [0], [0], [1], [0, 0, 1, 1], [], []>} : vector<16x16xf32>, vector<16x64xf32>, vector<16x64xf32> -> vector<16x64xf32>
    %cst_39 = arith.constant dense<0.000000e+00> : vector<16x1xf32>
    %70 = tpu.matmul %68, %6, %cst_39 {dimension_numbers = #tpu.dot_dimension_numbers<[1], [0], [0], [1], [0, 0, 1, 1], [], []>} : vector<16x64xf32>, vector<64x1xf32>, vector<16x1xf32> -> vector<16x1xf32>
    %cst_40 = arith.constant dense<0.000000e+00> : vector<16x1xf32>
    %71 = tpu.matmul %69, %7, %cst_40 {dimension_numbers = #tpu.dot_dimension_numbers<[1], [0], [0], [1], [0, 0, 1, 1], [], []>} : vector<16x64xf32>, vector<64x1xf32>, vector<16x1xf32> -> vector<16x1xf32>
    %72 = arith.addf %70, %71 : vector<16x1xf32>
    %73 = vector.broadcast %8 : vector<1x1xf32> to vector<16x1xf32>
    %74 = arith.addf %72, %73 : vector<16x1xf32>
    %75 = vector.extract_strided_slice %1 {offsets = [80, 0], sizes = [16, 4], strides = [1, 1]} : vector<192x4xf32> to vector<16x4xf32>
    %cst_41 = arith.constant dense<0.000000e+00> : vector<16x4xf32>
    %76 = tpu.matmul %2, %75, %cst_41 {dimension_numbers = #tpu.dot_dimension_numbers<[1], [0], [0], [1], [0, 0, 1, 1], [], []>} : vector<16x16xf32>, vector<16x4xf32>, vector<16x4xf32> -> vector<16x4xf32>
    %77 = vector.extract_strided_slice %9 {offsets = [80, 0], sizes = [16, 64], strides = [1, 1]} : vector<192x64xf32> to vector<16x64xf32>
    %cst_42 = arith.constant dense<0.000000e+00> : vector<16x64xf32>
    %78 = tpu.matmul %76, %4, %cst_42 {dimension_numbers = #tpu.dot_dimension_numbers<[1], [0], [0], [1], [0, 0, 1, 1], [], []>} : vector<16x4xf32>, vector<4x64xf32>, vector<16x64xf32> -> vector<16x64xf32>
    %79 = arith.addf %77, %78 : vector<16x64xf32>
    %80 = vector.broadcast %5 : vector<1x64xf32> to vector<16x64xf32>
    %81 = arith.addf %79, %80 : vector<16x64xf32>
    %cst_43 = arith.constant dense<0.000000e+00> : vector<16x64xf32>
    %82 = tpu.matmul %2, %81, %cst_43 {dimension_numbers = #tpu.dot_dimension_numbers<[1], [0], [0], [1], [0, 0, 1, 1], [], []>} : vector<16x16xf32>, vector<16x64xf32>, vector<16x64xf32> -> vector<16x64xf32>
    %cst_44 = arith.constant dense<0.000000e+00> : vector<16x1xf32>
    %83 = tpu.matmul %81, %6, %cst_44 {dimension_numbers = #tpu.dot_dimension_numbers<[1], [0], [0], [1], [0, 0, 1, 1], [], []>} : vector<16x64xf32>, vector<64x1xf32>, vector<16x1xf32> -> vector<16x1xf32>
    %cst_45 = arith.constant dense<0.000000e+00> : vector<16x1xf32>
    %84 = tpu.matmul %82, %7, %cst_45 {dimension_numbers = #tpu.dot_dimension_numbers<[1], [0], [0], [1], [0, 0, 1, 1], [], []>} : vector<16x64xf32>, vector<64x1xf32>, vector<16x1xf32> -> vector<16x1xf32>
    %85 = arith.addf %83, %84 : vector<16x1xf32>
    %86 = vector.broadcast %8 : vector<1x1xf32> to vector<16x1xf32>
    %87 = arith.addf %85, %86 : vector<16x1xf32>
    %88 = vector.extract_strided_slice %1 {offsets = [96, 0], sizes = [16, 4], strides = [1, 1]} : vector<192x4xf32> to vector<16x4xf32>
    %cst_46 = arith.constant dense<0.000000e+00> : vector<16x4xf32>
    %89 = tpu.matmul %2, %88, %cst_46 {dimension_numbers = #tpu.dot_dimension_numbers<[1], [0], [0], [1], [0, 0, 1, 1], [], []>} : vector<16x16xf32>, vector<16x4xf32>, vector<16x4xf32> -> vector<16x4xf32>
    %90 = vector.extract_strided_slice %9 {offsets = [96, 0], sizes = [16, 64], strides = [1, 1]} : vector<192x64xf32> to vector<16x64xf32>
    %cst_47 = arith.constant dense<0.000000e+00> : vector<16x64xf32>
    %91 = tpu.matmul %89, %4, %cst_47 {dimension_numbers = #tpu.dot_dimension_numbers<[1], [0], [0], [1], [0, 0, 1, 1], [], []>} : vector<16x4xf32>, vector<4x64xf32>, vector<16x64xf32> -> vector<16x64xf32>
    %92 = arith.addf %90, %91 : vector<16x64xf32>
    %93 = vector.broadcast %5 : vector<1x64xf32> to vector<16x64xf32>
    %94 = arith.addf %92, %93 : vector<16x64xf32>
    %cst_48 = arith.constant dense<0.000000e+00> : vector<16x64xf32>
    %95 = tpu.matmul %2, %94, %cst_48 {dimension_numbers = #tpu.dot_dimension_numbers<[1], [0], [0], [1], [0, 0, 1, 1], [], []>} : vector<16x16xf32>, vector<16x64xf32>, vector<16x64xf32> -> vector<16x64xf32>
    %cst_49 = arith.constant dense<0.000000e+00> : vector<16x1xf32>
    %96 = tpu.matmul %94, %6, %cst_49 {dimension_numbers = #tpu.dot_dimension_numbers<[1], [0], [0], [1], [0, 0, 1, 1], [], []>} : vector<16x64xf32>, vector<64x1xf32>, vector<16x1xf32> -> vector<16x1xf32>
    %cst_50 = arith.constant dense<0.000000e+00> : vector<16x1xf32>
    %97 = tpu.matmul %95, %7, %cst_50 {dimension_numbers = #tpu.dot_dimension_numbers<[1], [0], [0], [1], [0, 0, 1, 1], [], []>} : vector<16x64xf32>, vector<64x1xf32>, vector<16x1xf32> -> vector<16x1xf32>
    %98 = arith.addf %96, %97 : vector<16x1xf32>
    %99 = vector.broadcast %8 : vector<1x1xf32> to vector<16x1xf32>
    %100 = arith.addf %98, %99 : vector<16x1xf32>
    %101 = vector.extract_strided_slice %1 {offsets = [112, 0], sizes = [16, 4], strides = [1, 1]} : vector<192x4xf32> to vector<16x4xf32>
    %cst_51 = arith.constant dense<0.000000e+00> : vector<16x4xf32>
    %102 = tpu.matmul %2, %101, %cst_51 {dimension_numbers = #tpu.dot_dimension_numbers<[1], [0], [0], [1], [0, 0, 1, 1], [], []>} : vector<16x16xf32>, vector<16x4xf32>, vector<16x4xf32> -> vector<16x4xf32>
    %103 = vector.extract_strided_slice %9 {offsets = [112, 0], sizes = [16, 64], strides = [1, 1]} : vector<192x64xf32> to vector<16x64xf32>
    %cst_52 = arith.constant dense<0.000000e+00> : vector<16x64xf32>
    %104 = tpu.matmul %102, %4, %cst_52 {dimension_numbers = #tpu.dot_dimension_numbers<[1], [0], [0], [1], [0, 0, 1, 1], [], []>} : vector<16x4xf32>, vector<4x64xf32>, vector<16x64xf32> -> vector<16x64xf32>
    %105 = arith.addf %103, %104 : vector<16x64xf32>
    %106 = vector.broadcast %5 : vector<1x64xf32> to vector<16x64xf32>
    %107 = arith.addf %105, %106 : vector<16x64xf32>
    %cst_53 = arith.constant dense<0.000000e+00> : vector<16x64xf32>
    %108 = tpu.matmul %2, %107, %cst_53 {dimension_numbers = #tpu.dot_dimension_numbers<[1], [0], [0], [1], [0, 0, 1, 1], [], []>} : vector<16x16xf32>, vector<16x64xf32>, vector<16x64xf32> -> vector<16x64xf32>
    %cst_54 = arith.constant dense<0.000000e+00> : vector<16x1xf32>
    %109 = tpu.matmul %107, %6, %cst_54 {dimension_numbers = #tpu.dot_dimension_numbers<[1], [0], [0], [1], [0, 0, 1, 1], [], []>} : vector<16x64xf32>, vector<64x1xf32>, vector<16x1xf32> -> vector<16x1xf32>
    %cst_55 = arith.constant dense<0.000000e+00> : vector<16x1xf32>
    %110 = tpu.matmul %108, %7, %cst_55 {dimension_numbers = #tpu.dot_dimension_numbers<[1], [0], [0], [1], [0, 0, 1, 1], [], []>} : vector<16x64xf32>, vector<64x1xf32>, vector<16x1xf32> -> vector<16x1xf32>
    %111 = arith.addf %109, %110 : vector<16x1xf32>
    %112 = vector.broadcast %8 : vector<1x1xf32> to vector<16x1xf32>
    %113 = arith.addf %111, %112 : vector<16x1xf32>
    %114 = vector.extract_strided_slice %1 {offsets = [128, 0], sizes = [16, 4], strides = [1, 1]} : vector<192x4xf32> to vector<16x4xf32>
    %cst_56 = arith.constant dense<0.000000e+00> : vector<16x4xf32>
    %115 = tpu.matmul %2, %114, %cst_56 {dimension_numbers = #tpu.dot_dimension_numbers<[1], [0], [0], [1], [0, 0, 1, 1], [], []>} : vector<16x16xf32>, vector<16x4xf32>, vector<16x4xf32> -> vector<16x4xf32>
    %116 = vector.extract_strided_slice %9 {offsets = [128, 0], sizes = [16, 64], strides = [1, 1]} : vector<192x64xf32> to vector<16x64xf32>
    %cst_57 = arith.constant dense<0.000000e+00> : vector<16x64xf32>
    %117 = tpu.matmul %115, %4, %cst_57 {dimension_numbers = #tpu.dot_dimension_numbers<[1], [0], [0], [1], [0, 0, 1, 1], [], []>} : vector<16x4xf32>, vector<4x64xf32>, vector<16x64xf32> -> vector<16x64xf32>
    %118 = arith.addf %116, %117 : vector<16x64xf32>
    %119 = vector.broadcast %5 : vector<1x64xf32> to vector<16x64xf32>
    %120 = arith.addf %118, %119 : vector<16x64xf32>
    %cst_58 = arith.constant dense<0.000000e+00> : vector<16x64xf32>
    %121 = tpu.matmul %2, %120, %cst_58 {dimension_numbers = #tpu.dot_dimension_numbers<[1], [0], [0], [1], [0, 0, 1, 1], [], []>} : vector<16x16xf32>, vector<16x64xf32>, vector<16x64xf32> -> vector<16x64xf32>
    %cst_59 = arith.constant dense<0.000000e+00> : vector<16x1xf32>
    %122 = tpu.matmul %120, %6, %cst_59 {dimension_numbers = #tpu.dot_dimension_numbers<[1], [0], [0], [1], [0, 0, 1, 1], [], []>} : vector<16x64xf32>, vector<64x1xf32>, vector<16x1xf32> -> vector<16x1xf32>
    %cst_60 = arith.constant dense<0.000000e+00> : vector<16x1xf32>
    %123 = tpu.matmul %121, %7, %cst_60 {dimension_numbers = #tpu.dot_dimension_numbers<[1], [0], [0], [1], [0, 0, 1, 1], [], []>} : vector<16x64xf32>, vector<64x1xf32>, vector<16x1xf32> -> vector<16x1xf32>
    %124 = arith.addf %122, %123 : vector<16x1xf32>
    %125 = vector.broadcast %8 : vector<1x1xf32> to vector<16x1xf32>
    %126 = arith.addf %124, %125 : vector<16x1xf32>
    %127 = vector.extract_strided_slice %1 {offsets = [144, 0], sizes = [16, 4], strides = [1, 1]} : vector<192x4xf32> to vector<16x4xf32>
    %cst_61 = arith.constant dense<0.000000e+00> : vector<16x4xf32>
    %128 = tpu.matmul %2, %127, %cst_61 {dimension_numbers = #tpu.dot_dimension_numbers<[1], [0], [0], [1], [0, 0, 1, 1], [], []>} : vector<16x16xf32>, vector<16x4xf32>, vector<16x4xf32> -> vector<16x4xf32>
    %129 = vector.extract_strided_slice %9 {offsets = [144, 0], sizes = [16, 64], strides = [1, 1]} : vector<192x64xf32> to vector<16x64xf32>
    %cst_62 = arith.constant dense<0.000000e+00> : vector<16x64xf32>
    %130 = tpu.matmul %128, %4, %cst_62 {dimension_numbers = #tpu.dot_dimension_numbers<[1], [0], [0], [1], [0, 0, 1, 1], [], []>} : vector<16x4xf32>, vector<4x64xf32>, vector<16x64xf32> -> vector<16x64xf32>
    %131 = arith.addf %129, %130 : vector<16x64xf32>
    %132 = vector.broadcast %5 : vector<1x64xf32> to vector<16x64xf32>
    %133 = arith.addf %131, %132 : vector<16x64xf32>
    %cst_63 = arith.constant dense<0.000000e+00> : vector<16x64xf32>
    %134 = tpu.matmul %2, %133, %cst_63 {dimension_numbers = #tpu.dot_dimension_numbers<[1], [0], [0], [1], [0, 0, 1, 1], [], []>} : vector<16x16xf32>, vector<16x64xf32>, vector<16x64xf32> -> vector<16x64xf32>
    %cst_64 = arith.constant dense<0.000000e+00> : vector<16x1xf32>
    %135 = tpu.matmul %133, %6, %cst_64 {dimension_numbers = #tpu.dot_dimension_numbers<[1], [0], [0], [1], [0, 0, 1, 1], [], []>} : vector<16x64xf32>, vector<64x1xf32>, vector<16x1xf32> -> vector<16x1xf32>
    %cst_65 = arith.constant dense<0.000000e+00> : vector<16x1xf32>
    %136 = tpu.matmul %134, %7, %cst_65 {dimension_numbers = #tpu.dot_dimension_numbers<[1], [0], [0], [1], [0, 0, 1, 1], [], []>} : vector<16x64xf32>, vector<64x1xf32>, vector<16x1xf32> -> vector<16x1xf32>
    %137 = arith.addf %135, %136 : vector<16x1xf32>
    %138 = vector.broadcast %8 : vector<1x1xf32> to vector<16x1xf32>
    %139 = arith.addf %137, %138 : vector<16x1xf32>
    %140 = vector.extract_strided_slice %1 {offsets = [160, 0], sizes = [16, 4], strides = [1, 1]} : vector<192x4xf32> to vector<16x4xf32>
    %cst_66 = arith.constant dense<0.000000e+00> : vector<16x4xf32>
    %141 = tpu.matmul %2, %140, %cst_66 {dimension_numbers = #tpu.dot_dimension_numbers<[1], [0], [0], [1], [0, 0, 1, 1], [], []>} : vector<16x16xf32>, vector<16x4xf32>, vector<16x4xf32> -> vector<16x4xf32>
    %142 = vector.extract_strided_slice %9 {offsets = [160, 0], sizes = [16, 64], strides = [1, 1]} : vector<192x64xf32> to vector<16x64xf32>
    %cst_67 = arith.constant dense<0.000000e+00> : vector<16x64xf32>
    %143 = tpu.matmul %141, %4, %cst_67 {dimension_numbers = #tpu.dot_dimension_numbers<[1], [0], [0], [1], [0, 0, 1, 1], [], []>} : vector<16x4xf32>, vector<4x64xf32>, vector<16x64xf32> -> vector<16x64xf32>
    %144 = arith.addf %142, %143 : vector<16x64xf32>
    %145 = vector.broadcast %5 : vector<1x64xf32> to vector<16x64xf32>
    %146 = arith.addf %144, %145 : vector<16x64xf32>
    %cst_68 = arith.constant dense<0.000000e+00> : vector<16x64xf32>
    %147 = tpu.matmul %2, %146, %cst_68 {dimension_numbers = #tpu.dot_dimension_numbers<[1], [0], [0], [1], [0, 0, 1, 1], [], []>} : vector<16x16xf32>, vector<16x64xf32>, vector<16x64xf32> -> vector<16x64xf32>
    %cst_69 = arith.constant dense<0.000000e+00> : vector<16x1xf32>
    %148 = tpu.matmul %146, %6, %cst_69 {dimension_numbers = #tpu.dot_dimension_numbers<[1], [0], [0], [1], [0, 0, 1, 1], [], []>} : vector<16x64xf32>, vector<64x1xf32>, vector<16x1xf32> -> vector<16x1xf32>
    %cst_70 = arith.constant dense<0.000000e+00> : vector<16x1xf32>
    %149 = tpu.matmul %147, %7, %cst_70 {dimension_numbers = #tpu.dot_dimension_numbers<[1], [0], [0], [1], [0, 0, 1, 1], [], []>} : vector<16x64xf32>, vector<64x1xf32>, vector<16x1xf32> -> vector<16x1xf32>
    %150 = arith.addf %148, %149 : vector<16x1xf32>
    %151 = vector.broadcast %8 : vector<1x1xf32> to vector<16x1xf32>
    %152 = arith.addf %150, %151 : vector<16x1xf32>
    %153 = vector.extract_strided_slice %1 {offsets = [176, 0], sizes = [16, 4], strides = [1, 1]} : vector<192x4xf32> to vector<16x4xf32>
    %cst_71 = arith.constant dense<0.000000e+00> : vector<16x4xf32>
    %154 = tpu.matmul %2, %153, %cst_71 {dimension_numbers = #tpu.dot_dimension_numbers<[1], [0], [0], [1], [0, 0, 1, 1], [], []>} : vector<16x16xf32>, vector<16x4xf32>, vector<16x4xf32> -> vector<16x4xf32>
    %155 = vector.extract_strided_slice %9 {offsets = [176, 0], sizes = [16, 64], strides = [1, 1]} : vector<192x64xf32> to vector<16x64xf32>
    %cst_72 = arith.constant dense<0.000000e+00> : vector<16x64xf32>
    %156 = tpu.matmul %154, %4, %cst_72 {dimension_numbers = #tpu.dot_dimension_numbers<[1], [0], [0], [1], [0, 0, 1, 1], [], []>} : vector<16x4xf32>, vector<4x64xf32>, vector<16x64xf32> -> vector<16x64xf32>
    %157 = arith.addf %155, %156 : vector<16x64xf32>
    %158 = vector.broadcast %5 : vector<1x64xf32> to vector<16x64xf32>
    %159 = arith.addf %157, %158 : vector<16x64xf32>
    %cst_73 = arith.constant dense<0.000000e+00> : vector<16x64xf32>
    %160 = tpu.matmul %2, %159, %cst_73 {dimension_numbers = #tpu.dot_dimension_numbers<[1], [0], [0], [1], [0, 0, 1, 1], [], []>} : vector<16x16xf32>, vector<16x64xf32>, vector<16x64xf32> -> vector<16x64xf32>
    %cst_74 = arith.constant dense<0.000000e+00> : vector<16x1xf32>
    %161 = tpu.matmul %159, %6, %cst_74 {dimension_numbers = #tpu.dot_dimension_numbers<[1], [0], [0], [1], [0, 0, 1, 1], [], []>} : vector<16x64xf32>, vector<64x1xf32>, vector<16x1xf32> -> vector<16x1xf32>
    %cst_75 = arith.constant dense<0.000000e+00> : vector<16x1xf32>
    %162 = tpu.matmul %160, %7, %cst_75 {dimension_numbers = #tpu.dot_dimension_numbers<[1], [0], [0], [1], [0, 0, 1, 1], [], []>} : vector<16x64xf32>, vector<64x1xf32>, vector<16x1xf32> -> vector<16x1xf32>
    %163 = arith.addf %161, %162 : vector<16x1xf32>
    %164 = vector.broadcast %8 : vector<1x1xf32> to vector<16x1xf32>
    %165 = arith.addf %163, %164 : vector<16x1xf32>
    %cst_76 = arith.constant 0.000000e+00 : f32
    %166 = vector.broadcast %cst_76 : f32 to vector<16x1xf32>
    %c0_77 = arith.constant 0 : index
    %c0_78 = arith.constant 0 : index
    %c0_79 = arith.constant 0 : index
    %167 = vector.load %arg10[%c0_77, %c0_78, %c0_79] : memref<3x1x64xf32, #tpu.memory_space<vmem>>, vector<1x1x64xf32>
    %168 = vector.shape_cast %167 : vector<1x1x64xf32> to vector<1x64xf32>
    %c1 = arith.constant 1 : index
    %c0_80 = arith.constant 0 : index
    %c0_81 = arith.constant 0 : index
    %169 = vector.load %arg10[%c1, %c0_80, %c0_81] : memref<3x1x64xf32, #tpu.memory_space<vmem>>, vector<1x1x64xf32>
    %170 = vector.shape_cast %169 : vector<1x1x64xf32> to vector<1x64xf32>
    %c2 = arith.constant 2 : index
    %c0_82 = arith.constant 0 : index
    %c0_83 = arith.constant 0 : index
    %171 = vector.load %arg10[%c2, %c0_82, %c0_83] : memref<3x1x64xf32, #tpu.memory_space<vmem>>, vector<1x1x64xf32>
    %172 = vector.shape_cast %171 : vector<1x1x64xf32> to vector<1x64xf32>
    %c0_84 = arith.constant 0 : index
    %c0_85 = arith.constant 0 : index
    %173 = vector.load %arg11[%c0_84, %c0_85] : memref<1x64xf32, #tpu.memory_space<vmem>>, vector<1x64xf32>
    %174 = vector.broadcast %166 : vector<16x1xf32> to vector<16x64xf32>
    %175 = vector.broadcast %168 : vector<1x64xf32> to vector<16x64xf32>
    %176 = arith.mulf %174, %175 : vector<16x64xf32>
    %177 = vector.broadcast %22 : vector<16x1xf32> to vector<16x64xf32>
    %178 = vector.broadcast %170 : vector<1x64xf32> to vector<16x64xf32>
    %179 = arith.mulf %177, %178 : vector<16x64xf32>
    %180 = arith.addf %176, %179 : vector<16x64xf32>
    %181 = vector.broadcast %35 : vector<16x1xf32> to vector<16x64xf32>
    %182 = vector.broadcast %172 : vector<1x64xf32> to vector<16x64xf32>
    %183 = arith.mulf %181, %182 : vector<16x64xf32>
    %184 = arith.addf %180, %183 : vector<16x64xf32>
    %185 = vector.broadcast %173 : vector<1x64xf32> to vector<16x64xf32>
    %186 = arith.addf %184, %185 : vector<16x64xf32>
    %187 = vector.broadcast %22 : vector<16x1xf32> to vector<16x64xf32>
    %188 = vector.broadcast %168 : vector<1x64xf32> to vector<16x64xf32>
    %189 = arith.mulf %187, %188 : vector<16x64xf32>
    %190 = vector.broadcast %35 : vector<16x1xf32> to vector<16x64xf32>
    %191 = vector.broadcast %170 : vector<1x64xf32> to vector<16x64xf32>
    %192 = arith.mulf %190, %191 : vector<16x64xf32>
    %193 = arith.addf %189, %192 : vector<16x64xf32>
    %194 = vector.broadcast %48 : vector<16x1xf32> to vector<16x64xf32>
    %195 = vector.broadcast %172 : vector<1x64xf32> to vector<16x64xf32>
    %196 = arith.mulf %194, %195 : vector<16x64xf32>
    %197 = arith.addf %193, %196 : vector<16x64xf32>
    %198 = vector.broadcast %173 : vector<1x64xf32> to vector<16x64xf32>
    %199 = arith.addf %197, %198 : vector<16x64xf32>
    %200 = vector.broadcast %35 : vector<16x1xf32> to vector<16x64xf32>
    %201 = vector.broadcast %168 : vector<1x64xf32> to vector<16x64xf32>
    %202 = arith.mulf %200, %201 : vector<16x64xf32>
    %203 = vector.broadcast %48 : vector<16x1xf32> to vector<16x64xf32>
    %204 = vector.broadcast %170 : vector<1x64xf32> to vector<16x64xf32>
    %205 = arith.mulf %203, %204 : vector<16x64xf32>
    %206 = arith.addf %202, %205 : vector<16x64xf32>
    %207 = vector.broadcast %61 : vector<16x1xf32> to vector<16x64xf32>
    %208 = vector.broadcast %172 : vector<1x64xf32> to vector<16x64xf32>
    %209 = arith.mulf %207, %208 : vector<16x64xf32>
    %210 = arith.addf %206, %209 : vector<16x64xf32>
    %211 = vector.broadcast %173 : vector<1x64xf32> to vector<16x64xf32>
    %212 = arith.addf %210, %211 : vector<16x64xf32>
    %213 = vector.broadcast %48 : vector<16x1xf32> to vector<16x64xf32>
    %214 = vector.broadcast %168 : vector<1x64xf32> to vector<16x64xf32>
    %215 = arith.mulf %213, %214 : vector<16x64xf32>
    %216 = vector.broadcast %61 : vector<16x1xf32> to vector<16x64xf32>
    %217 = vector.broadcast %170 : vector<1x64xf32> to vector<16x64xf32>
    %218 = arith.mulf %216, %217 : vector<16x64xf32>
    %219 = arith.addf %215, %218 : vector<16x64xf32>
    %220 = vector.broadcast %74 : vector<16x1xf32> to vector<16x64xf32>
    %221 = vector.broadcast %172 : vector<1x64xf32> to vector<16x64xf32>
    %222 = arith.mulf %220, %221 : vector<16x64xf32>
    %223 = arith.addf %219, %222 : vector<16x64xf32>
    %224 = vector.broadcast %173 : vector<1x64xf32> to vector<16x64xf32>
    %225 = arith.addf %223, %224 : vector<16x64xf32>
    %226 = vector.broadcast %61 : vector<16x1xf32> to vector<16x64xf32>
    %227 = vector.broadcast %168 : vector<1x64xf32> to vector<16x64xf32>
    %228 = arith.mulf %226, %227 : vector<16x64xf32>
    %229 = vector.broadcast %74 : vector<16x1xf32> to vector<16x64xf32>
    %230 = vector.broadcast %170 : vector<1x64xf32> to vector<16x64xf32>
    %231 = arith.mulf %229, %230 : vector<16x64xf32>
    %232 = arith.addf %228, %231 : vector<16x64xf32>
    %233 = vector.broadcast %87 : vector<16x1xf32> to vector<16x64xf32>
    %234 = vector.broadcast %172 : vector<1x64xf32> to vector<16x64xf32>
    %235 = arith.mulf %233, %234 : vector<16x64xf32>
    %236 = arith.addf %232, %235 : vector<16x64xf32>
    %237 = vector.broadcast %173 : vector<1x64xf32> to vector<16x64xf32>
    %238 = arith.addf %236, %237 : vector<16x64xf32>
    %239 = vector.broadcast %74 : vector<16x1xf32> to vector<16x64xf32>
    %240 = vector.broadcast %168 : vector<1x64xf32> to vector<16x64xf32>
    %241 = arith.mulf %239, %240 : vector<16x64xf32>
    %242 = vector.broadcast %87 : vector<16x1xf32> to vector<16x64xf32>
    %243 = vector.broadcast %170 : vector<1x64xf32> to vector<16x64xf32>
    %244 = arith.mulf %242, %243 : vector<16x64xf32>
    %245 = arith.addf %241, %244 : vector<16x64xf32>
    %246 = vector.broadcast %100 : vector<16x1xf32> to vector<16x64xf32>
    %247 = vector.broadcast %172 : vector<1x64xf32> to vector<16x64xf32>
    %248 = arith.mulf %246, %247 : vector<16x64xf32>
    %249 = arith.addf %245, %248 : vector<16x64xf32>
    %250 = vector.broadcast %173 : vector<1x64xf32> to vector<16x64xf32>
    %251 = arith.addf %249, %250 : vector<16x64xf32>
    %252 = vector.broadcast %87 : vector<16x1xf32> to vector<16x64xf32>
    %253 = vector.broadcast %168 : vector<1x64xf32> to vector<16x64xf32>
    %254 = arith.mulf %252, %253 : vector<16x64xf32>
    %255 = vector.broadcast %100 : vector<16x1xf32> to vector<16x64xf32>
    %256 = vector.broadcast %170 : vector<1x64xf32> to vector<16x64xf32>
    %257 = arith.mulf %255, %256 : vector<16x64xf32>
    %258 = arith.addf %254, %257 : vector<16x64xf32>
    %259 = vector.broadcast %113 : vector<16x1xf32> to vector<16x64xf32>
    %260 = vector.broadcast %172 : vector<1x64xf32> to vector<16x64xf32>
    %261 = arith.mulf %259, %260 : vector<16x64xf32>
    %262 = arith.addf %258, %261 : vector<16x64xf32>
    %263 = vector.broadcast %173 : vector<1x64xf32> to vector<16x64xf32>
    %264 = arith.addf %262, %263 : vector<16x64xf32>
    %265 = vector.broadcast %100 : vector<16x1xf32> to vector<16x64xf32>
    %266 = vector.broadcast %168 : vector<1x64xf32> to vector<16x64xf32>
    %267 = arith.mulf %265, %266 : vector<16x64xf32>
    %268 = vector.broadcast %113 : vector<16x1xf32> to vector<16x64xf32>
    %269 = vector.broadcast %170 : vector<1x64xf32> to vector<16x64xf32>
    %270 = arith.mulf %268, %269 : vector<16x64xf32>
    %271 = arith.addf %267, %270 : vector<16x64xf32>
    %272 = vector.broadcast %126 : vector<16x1xf32> to vector<16x64xf32>
    %273 = vector.broadcast %172 : vector<1x64xf32> to vector<16x64xf32>
    %274 = arith.mulf %272, %273 : vector<16x64xf32>
    %275 = arith.addf %271, %274 : vector<16x64xf32>
    %276 = vector.broadcast %173 : vector<1x64xf32> to vector<16x64xf32>
    %277 = arith.addf %275, %276 : vector<16x64xf32>
    %278 = vector.broadcast %113 : vector<16x1xf32> to vector<16x64xf32>
    %279 = vector.broadcast %168 : vector<1x64xf32> to vector<16x64xf32>
    %280 = arith.mulf %278, %279 : vector<16x64xf32>
    %281 = vector.broadcast %126 : vector<16x1xf32> to vector<16x64xf32>
    %282 = vector.broadcast %170 : vector<1x64xf32> to vector<16x64xf32>
    %283 = arith.mulf %281, %282 : vector<16x64xf32>
    %284 = arith.addf %280, %283 : vector<16x64xf32>
    %285 = vector.broadcast %139 : vector<16x1xf32> to vector<16x64xf32>
    %286 = vector.broadcast %172 : vector<1x64xf32> to vector<16x64xf32>
    %287 = arith.mulf %285, %286 : vector<16x64xf32>
    %288 = arith.addf %284, %287 : vector<16x64xf32>
    %289 = vector.broadcast %173 : vector<1x64xf32> to vector<16x64xf32>
    %290 = arith.addf %288, %289 : vector<16x64xf32>
    %291 = vector.broadcast %126 : vector<16x1xf32> to vector<16x64xf32>
    %292 = vector.broadcast %168 : vector<1x64xf32> to vector<16x64xf32>
    %293 = arith.mulf %291, %292 : vector<16x64xf32>
    %294 = vector.broadcast %139 : vector<16x1xf32> to vector<16x64xf32>
    %295 = vector.broadcast %170 : vector<1x64xf32> to vector<16x64xf32>
    %296 = arith.mulf %294, %295 : vector<16x64xf32>
    %297 = arith.addf %293, %296 : vector<16x64xf32>
    %298 = vector.broadcast %152 : vector<16x1xf32> to vector<16x64xf32>
    %299 = vector.broadcast %172 : vector<1x64xf32> to vector<16x64xf32>
    %300 = arith.mulf %298, %299 : vector<16x64xf32>
    %301 = arith.addf %297, %300 : vector<16x64xf32>
    %302 = vector.broadcast %173 : vector<1x64xf32> to vector<16x64xf32>
    %303 = arith.addf %301, %302 : vector<16x64xf32>
    %304 = vector.broadcast %139 : vector<16x1xf32> to vector<16x64xf32>
    %305 = vector.broadcast %168 : vector<1x64xf32> to vector<16x64xf32>
    %306 = arith.mulf %304, %305 : vector<16x64xf32>
    %307 = vector.broadcast %152 : vector<16x1xf32> to vector<16x64xf32>
    %308 = vector.broadcast %170 : vector<1x64xf32> to vector<16x64xf32>
    %309 = arith.mulf %307, %308 : vector<16x64xf32>
    %310 = arith.addf %306, %309 : vector<16x64xf32>
    %311 = vector.broadcast %165 : vector<16x1xf32> to vector<16x64xf32>
    %312 = vector.broadcast %172 : vector<1x64xf32> to vector<16x64xf32>
    %313 = arith.mulf %311, %312 : vector<16x64xf32>
    %314 = arith.addf %310, %313 : vector<16x64xf32>
    %315 = vector.broadcast %173 : vector<1x64xf32> to vector<16x64xf32>
    %316 = arith.addf %314, %315 : vector<16x64xf32>
    %317 = vector.broadcast %152 : vector<16x1xf32> to vector<16x64xf32>
    %318 = vector.broadcast %168 : vector<1x64xf32> to vector<16x64xf32>
    %319 = arith.mulf %317, %318 : vector<16x64xf32>
    %320 = vector.broadcast %165 : vector<16x1xf32> to vector<16x64xf32>
    %321 = vector.broadcast %170 : vector<1x64xf32> to vector<16x64xf32>
    %322 = arith.mulf %320, %321 : vector<16x64xf32>
    %323 = arith.addf %319, %322 : vector<16x64xf32>
    %324 = vector.broadcast %166 : vector<16x1xf32> to vector<16x64xf32>
    %325 = vector.broadcast %172 : vector<1x64xf32> to vector<16x64xf32>
    %326 = arith.mulf %324, %325 : vector<16x64xf32>
    %327 = arith.addf %323, %326 : vector<16x64xf32>
    %328 = vector.broadcast %173 : vector<1x64xf32> to vector<16x64xf32>
    %329 = arith.addf %327, %328 : vector<16x64xf32>
    %c0_86 = arith.constant 0 : index
    %c0_87 = arith.constant 0 : index
    %c0_88 = arith.constant 0 : index
    %330 = vector.load %arg12[%c0_86, %c0_87, %c0_88] : memref<2x64x11xf32, #tpu.memory_space<vmem>>, vector<1x64x11xf32>
    %331 = vector.shape_cast %330 : vector<1x64x11xf32> to vector<64x11xf32>
    %c1_89 = arith.constant 1 : index
    %c0_90 = arith.constant 0 : index
    %c0_91 = arith.constant 0 : index
    %332 = vector.load %arg12[%c1_89, %c0_90, %c0_91] : memref<2x64x11xf32, #tpu.memory_space<vmem>>, vector<1x64x11xf32>
    %333 = vector.shape_cast %332 : vector<1x64x11xf32> to vector<64x11xf32>
    %c0_92 = arith.constant 0 : index
    %c0_93 = arith.constant 0 : index
    %334 = vector.load %arg13[%c0_92, %c0_93] : memref<1x11xf32, #tpu.memory_space<vmem>>, vector<1x11xf32>
    %cst_94 = arith.constant dense<0.000000e+00> : vector<16x11xf32>
    %335 = tpu.matmul %186, %331, %cst_94 {dimension_numbers = #tpu.dot_dimension_numbers<[1], [0], [0], [1], [0, 0, 1, 1], [], []>} : vector<16x64xf32>, vector<64x11xf32>, vector<16x11xf32> -> vector<16x11xf32>
    %cst_95 = arith.constant dense<0.000000e+00> : vector<16x11xf32>
    %336 = tpu.matmul %199, %333, %cst_95 {dimension_numbers = #tpu.dot_dimension_numbers<[1], [0], [0], [1], [0, 0, 1, 1], [], []>} : vector<16x64xf32>, vector<64x11xf32>, vector<16x11xf32> -> vector<16x11xf32>
    %337 = arith.addf %335, %336 : vector<16x11xf32>
    %338 = vector.broadcast %334 : vector<1x11xf32> to vector<16x11xf32>
    %339 = arith.addf %337, %338 : vector<16x11xf32>
    %cst_96 = arith.constant dense<0.000000e+00> : vector<16x11xf32>
    %340 = tpu.matmul %199, %331, %cst_96 {dimension_numbers = #tpu.dot_dimension_numbers<[1], [0], [0], [1], [0, 0, 1, 1], [], []>} : vector<16x64xf32>, vector<64x11xf32>, vector<16x11xf32> -> vector<16x11xf32>
    %cst_97 = arith.constant dense<0.000000e+00> : vector<16x11xf32>
    %341 = tpu.matmul %212, %333, %cst_97 {dimension_numbers = #tpu.dot_dimension_numbers<[1], [0], [0], [1], [0, 0, 1, 1], [], []>} : vector<16x64xf32>, vector<64x11xf32>, vector<16x11xf32> -> vector<16x11xf32>
    %342 = arith.addf %340, %341 : vector<16x11xf32>
    %343 = vector.broadcast %334 : vector<1x11xf32> to vector<16x11xf32>
    %344 = arith.addf %342, %343 : vector<16x11xf32>
    %cst_98 = arith.constant dense<0.000000e+00> : vector<16x11xf32>
    %345 = tpu.matmul %212, %331, %cst_98 {dimension_numbers = #tpu.dot_dimension_numbers<[1], [0], [0], [1], [0, 0, 1, 1], [], []>} : vector<16x64xf32>, vector<64x11xf32>, vector<16x11xf32> -> vector<16x11xf32>
    %cst_99 = arith.constant dense<0.000000e+00> : vector<16x11xf32>
    %346 = tpu.matmul %225, %333, %cst_99 {dimension_numbers = #tpu.dot_dimension_numbers<[1], [0], [0], [1], [0, 0, 1, 1], [], []>} : vector<16x64xf32>, vector<64x11xf32>, vector<16x11xf32> -> vector<16x11xf32>
    %347 = arith.addf %345, %346 : vector<16x11xf32>
    %348 = vector.broadcast %334 : vector<1x11xf32> to vector<16x11xf32>
    %349 = arith.addf %347, %348 : vector<16x11xf32>
    %cst_100 = arith.constant dense<0.000000e+00> : vector<16x11xf32>
    %350 = tpu.matmul %225, %331, %cst_100 {dimension_numbers = #tpu.dot_dimension_numbers<[1], [0], [0], [1], [0, 0, 1, 1], [], []>} : vector<16x64xf32>, vector<64x11xf32>, vector<16x11xf32> -> vector<16x11xf32>
    %cst_101 = arith.constant dense<0.000000e+00> : vector<16x11xf32>
    %351 = tpu.matmul %238, %333, %cst_101 {dimension_numbers = #tpu.dot_dimension_numbers<[1], [0], [0], [1], [0, 0, 1, 1], [], []>} : vector<16x64xf32>, vector<64x11xf32>, vector<16x11xf32> -> vector<16x11xf32>
    %352 = arith.addf %350, %351 : vector<16x11xf32>
    %353 = vector.broadcast %334 : vector<1x11xf32> to vector<16x11xf32>
    %354 = arith.addf %352, %353 : vector<16x11xf32>
    %cst_102 = arith.constant dense<0.000000e+00> : vector<16x11xf32>
    %355 = tpu.matmul %238, %331, %cst_102 {dimension_numbers = #tpu.dot_dimension_numbers<[1], [0], [0], [1], [0, 0, 1, 1], [], []>} : vector<16x64xf32>, vector<64x11xf32>, vector<16x11xf32> -> vector<16x11xf32>
    %cst_103 = arith.constant dense<0.000000e+00> : vector<16x11xf32>
    %356 = tpu.matmul %251, %333, %cst_103 {dimension_numbers = #tpu.dot_dimension_numbers<[1], [0], [0], [1], [0, 0, 1, 1], [], []>} : vector<16x64xf32>, vector<64x11xf32>, vector<16x11xf32> -> vector<16x11xf32>
    %357 = arith.addf %355, %356 : vector<16x11xf32>
    %358 = vector.broadcast %334 : vector<1x11xf32> to vector<16x11xf32>
    %359 = arith.addf %357, %358 : vector<16x11xf32>
    %cst_104 = arith.constant dense<0.000000e+00> : vector<16x11xf32>
    %360 = tpu.matmul %251, %331, %cst_104 {dimension_numbers = #tpu.dot_dimension_numbers<[1], [0], [0], [1], [0, 0, 1, 1], [], []>} : vector<16x64xf32>, vector<64x11xf32>, vector<16x11xf32> -> vector<16x11xf32>
    %cst_105 = arith.constant dense<0.000000e+00> : vector<16x11xf32>
    %361 = tpu.matmul %264, %333, %cst_105 {dimension_numbers = #tpu.dot_dimension_numbers<[1], [0], [0], [1], [0, 0, 1, 1], [], []>} : vector<16x64xf32>, vector<64x11xf32>, vector<16x11xf32> -> vector<16x11xf32>
    %362 = arith.addf %360, %361 : vector<16x11xf32>
    %363 = vector.broadcast %334 : vector<1x11xf32> to vector<16x11xf32>
    %364 = arith.addf %362, %363 : vector<16x11xf32>
    %cst_106 = arith.constant dense<0.000000e+00> : vector<16x11xf32>
    %365 = tpu.matmul %264, %331, %cst_106 {dimension_numbers = #tpu.dot_dimension_numbers<[1], [0], [0], [1], [0, 0, 1, 1], [], []>} : vector<16x64xf32>, vector<64x11xf32>, vector<16x11xf32> -> vector<16x11xf32>
    %cst_107 = arith.constant dense<0.000000e+00> : vector<16x11xf32>
    %366 = tpu.matmul %277, %333, %cst_107 {dimension_numbers = #tpu.dot_dimension_numbers<[1], [0], [0], [1], [0, 0, 1, 1], [], []>} : vector<16x64xf32>, vector<64x11xf32>, vector<16x11xf32> -> vector<16x11xf32>
    %367 = arith.addf %365, %366 : vector<16x11xf32>
    %368 = vector.broadcast %334 : vector<1x11xf32> to vector<16x11xf32>
    %369 = arith.addf %367, %368 : vector<16x11xf32>
    %cst_108 = arith.constant dense<0.000000e+00> : vector<16x11xf32>
    %370 = tpu.matmul %277, %331, %cst_108 {dimension_numbers = #tpu.dot_dimension_numbers<[1], [0], [0], [1], [0, 0, 1, 1], [], []>} : vector<16x64xf32>, vector<64x11xf32>, vector<16x11xf32> -> vector<16x11xf32>
    %cst_109 = arith.constant dense<0.000000e+00> : vector<16x11xf32>
    %371 = tpu.matmul %290, %333, %cst_109 {dimension_numbers = #tpu.dot_dimension_numbers<[1], [0], [0], [1], [0, 0, 1, 1], [], []>} : vector<16x64xf32>, vector<64x11xf32>, vector<16x11xf32> -> vector<16x11xf32>
    %372 = arith.addf %370, %371 : vector<16x11xf32>
    %373 = vector.broadcast %334 : vector<1x11xf32> to vector<16x11xf32>
    %374 = arith.addf %372, %373 : vector<16x11xf32>
    %cst_110 = arith.constant dense<0.000000e+00> : vector<16x11xf32>
    %375 = tpu.matmul %290, %331, %cst_110 {dimension_numbers = #tpu.dot_dimension_numbers<[1], [0], [0], [1], [0, 0, 1, 1], [], []>} : vector<16x64xf32>, vector<64x11xf32>, vector<16x11xf32> -> vector<16x11xf32>
    %cst_111 = arith.constant dense<0.000000e+00> : vector<16x11xf32>
    %376 = tpu.matmul %303, %333, %cst_111 {dimension_numbers = #tpu.dot_dimension_numbers<[1], [0], [0], [1], [0, 0, 1, 1], [], []>} : vector<16x64xf32>, vector<64x11xf32>, vector<16x11xf32> -> vector<16x11xf32>
    %377 = arith.addf %375, %376 : vector<16x11xf32>
    %378 = vector.broadcast %334 : vector<1x11xf32> to vector<16x11xf32>
    %379 = arith.addf %377, %378 : vector<16x11xf32>
    %cst_112 = arith.constant dense<0.000000e+00> : vector<16x11xf32>
    %380 = tpu.matmul %303, %331, %cst_112 {dimension_numbers = #tpu.dot_dimension_numbers<[1], [0], [0], [1], [0, 0, 1, 1], [], []>} : vector<16x64xf32>, vector<64x11xf32>, vector<16x11xf32> -> vector<16x11xf32>
    %cst_113 = arith.constant dense<0.000000e+00> : vector<16x11xf32>
    %381 = tpu.matmul %316, %333, %cst_113 {dimension_numbers = #tpu.dot_dimension_numbers<[1], [0], [0], [1], [0, 0, 1, 1], [], []>} : vector<16x64xf32>, vector<64x11xf32>, vector<16x11xf32> -> vector<16x11xf32>
    %382 = arith.addf %380, %381 : vector<16x11xf32>
    %383 = vector.broadcast %334 : vector<1x11xf32> to vector<16x11xf32>
    %384 = arith.addf %382, %383 : vector<16x11xf32>
    %cst_114 = arith.constant dense<0.000000e+00> : vector<16x11xf32>
    %385 = tpu.matmul %316, %331, %cst_114 {dimension_numbers = #tpu.dot_dimension_numbers<[1], [0], [0], [1], [0, 0, 1, 1], [], []>} : vector<16x64xf32>, vector<64x11xf32>, vector<16x11xf32> -> vector<16x11xf32>
    %cst_115 = arith.constant dense<0.000000e+00> : vector<16x11xf32>
    %386 = tpu.matmul %329, %333, %cst_115 {dimension_numbers = #tpu.dot_dimension_numbers<[1], [0], [0], [1], [0, 0, 1, 1], [], []>} : vector<16x64xf32>, vector<64x11xf32>, vector<16x11xf32> -> vector<16x11xf32>
    %387 = arith.addf %385, %386 : vector<16x11xf32>
    %388 = vector.broadcast %334 : vector<1x11xf32> to vector<16x11xf32>
    %389 = arith.addf %387, %388 : vector<16x11xf32>
    %c0_116 = arith.constant 0 : index
    %c0_117 = arith.constant 0 : index
    %c0_118 = arith.constant 0 : index
    %390 = vector.load %arg14[%c0_116, %c0_117, %c0_118] : memref<11x11x64xf32, #tpu.memory_space<vmem>>, vector<1x11x64xf32>
    %391 = vector.shape_cast %390 : vector<1x11x64xf32> to vector<11x64xf32>
    %cst_119 = arith.constant dense<0.000000e+00> : vector<16x64xf32>
    %392 = tpu.matmul %339, %391, %cst_119 {dimension_numbers = #tpu.dot_dimension_numbers<[1], [0], [0], [1], [0, 0, 1, 1], [], []>} : vector<16x11xf32>, vector<11x64xf32>, vector<16x64xf32> -> vector<16x64xf32>
    %c1_120 = arith.constant 1 : index
    %c0_121 = arith.constant 0 : index
    %c0_122 = arith.constant 0 : index
    %393 = vector.load %arg14[%c1_120, %c0_121, %c0_122] : memref<11x11x64xf32, #tpu.memory_space<vmem>>, vector<1x11x64xf32>
    %394 = vector.shape_cast %393 : vector<1x11x64xf32> to vector<11x64xf32>
    %cst_123 = arith.constant dense<0.000000e+00> : vector<16x64xf32>
    %395 = tpu.matmul %344, %394, %cst_123 {dimension_numbers = #tpu.dot_dimension_numbers<[1], [0], [0], [1], [0, 0, 1, 1], [], []>} : vector<16x11xf32>, vector<11x64xf32>, vector<16x64xf32> -> vector<16x64xf32>
    %396 = arith.addf %392, %395 : vector<16x64xf32>
    %c2_124 = arith.constant 2 : index
    %c0_125 = arith.constant 0 : index
    %c0_126 = arith.constant 0 : index
    %397 = vector.load %arg14[%c2_124, %c0_125, %c0_126] : memref<11x11x64xf32, #tpu.memory_space<vmem>>, vector<1x11x64xf32>
    %398 = vector.shape_cast %397 : vector<1x11x64xf32> to vector<11x64xf32>
    %cst_127 = arith.constant dense<0.000000e+00> : vector<16x64xf32>
    %399 = tpu.matmul %349, %398, %cst_127 {dimension_numbers = #tpu.dot_dimension_numbers<[1], [0], [0], [1], [0, 0, 1, 1], [], []>} : vector<16x11xf32>, vector<11x64xf32>, vector<16x64xf32> -> vector<16x64xf32>
    %400 = arith.addf %396, %399 : vector<16x64xf32>
    %c3 = arith.constant 3 : index
    %c0_128 = arith.constant 0 : index
    %c0_129 = arith.constant 0 : index
    %401 = vector.load %arg14[%c3, %c0_128, %c0_129] : memref<11x11x64xf32, #tpu.memory_space<vmem>>, vector<1x11x64xf32>
    %402 = vector.shape_cast %401 : vector<1x11x64xf32> to vector<11x64xf32>
    %cst_130 = arith.constant dense<0.000000e+00> : vector<16x64xf32>
    %403 = tpu.matmul %354, %402, %cst_130 {dimension_numbers = #tpu.dot_dimension_numbers<[1], [0], [0], [1], [0, 0, 1, 1], [], []>} : vector<16x11xf32>, vector<11x64xf32>, vector<16x64xf32> -> vector<16x64xf32>
    %404 = arith.addf %400, %403 : vector<16x64xf32>
    %c4 = arith.constant 4 : index
    %c0_131 = arith.constant 0 : index
    %c0_132 = arith.constant 0 : index
    %405 = vector.load %arg14[%c4, %c0_131, %c0_132] : memref<11x11x64xf32, #tpu.memory_space<vmem>>, vector<1x11x64xf32>
    %406 = vector.shape_cast %405 : vector<1x11x64xf32> to vector<11x64xf32>
    %cst_133 = arith.constant dense<0.000000e+00> : vector<16x64xf32>
    %407 = tpu.matmul %359, %406, %cst_133 {dimension_numbers = #tpu.dot_dimension_numbers<[1], [0], [0], [1], [0, 0, 1, 1], [], []>} : vector<16x11xf32>, vector<11x64xf32>, vector<16x64xf32> -> vector<16x64xf32>
    %408 = arith.addf %404, %407 : vector<16x64xf32>
    %c5 = arith.constant 5 : index
    %c0_134 = arith.constant 0 : index
    %c0_135 = arith.constant 0 : index
    %409 = vector.load %arg14[%c5, %c0_134, %c0_135] : memref<11x11x64xf32, #tpu.memory_space<vmem>>, vector<1x11x64xf32>
    %410 = vector.shape_cast %409 : vector<1x11x64xf32> to vector<11x64xf32>
    %cst_136 = arith.constant dense<0.000000e+00> : vector<16x64xf32>
    %411 = tpu.matmul %364, %410, %cst_136 {dimension_numbers = #tpu.dot_dimension_numbers<[1], [0], [0], [1], [0, 0, 1, 1], [], []>} : vector<16x11xf32>, vector<11x64xf32>, vector<16x64xf32> -> vector<16x64xf32>
    %412 = arith.addf %408, %411 : vector<16x64xf32>
    %c6 = arith.constant 6 : index
    %c0_137 = arith.constant 0 : index
    %c0_138 = arith.constant 0 : index
    %413 = vector.load %arg14[%c6, %c0_137, %c0_138] : memref<11x11x64xf32, #tpu.memory_space<vmem>>, vector<1x11x64xf32>
    %414 = vector.shape_cast %413 : vector<1x11x64xf32> to vector<11x64xf32>
    %cst_139 = arith.constant dense<0.000000e+00> : vector<16x64xf32>
    %415 = tpu.matmul %369, %414, %cst_139 {dimension_numbers = #tpu.dot_dimension_numbers<[1], [0], [0], [1], [0, 0, 1, 1], [], []>} : vector<16x11xf32>, vector<11x64xf32>, vector<16x64xf32> -> vector<16x64xf32>
    %416 = arith.addf %412, %415 : vector<16x64xf32>
    %c7 = arith.constant 7 : index
    %c0_140 = arith.constant 0 : index
    %c0_141 = arith.constant 0 : index
    %417 = vector.load %arg14[%c7, %c0_140, %c0_141] : memref<11x11x64xf32, #tpu.memory_space<vmem>>, vector<1x11x64xf32>
    %418 = vector.shape_cast %417 : vector<1x11x64xf32> to vector<11x64xf32>
    %cst_142 = arith.constant dense<0.000000e+00> : vector<16x64xf32>
    %419 = tpu.matmul %374, %418, %cst_142 {dimension_numbers = #tpu.dot_dimension_numbers<[1], [0], [0], [1], [0, 0, 1, 1], [], []>} : vector<16x11xf32>, vector<11x64xf32>, vector<16x64xf32> -> vector<16x64xf32>
    %420 = arith.addf %416, %419 : vector<16x64xf32>
    %c8 = arith.constant 8 : index
    %c0_143 = arith.constant 0 : index
    %c0_144 = arith.constant 0 : index
    %421 = vector.load %arg14[%c8, %c0_143, %c0_144] : memref<11x11x64xf32, #tpu.memory_space<vmem>>, vector<1x11x64xf32>
    %422 = vector.shape_cast %421 : vector<1x11x64xf32> to vector<11x64xf32>
    %cst_145 = arith.constant dense<0.000000e+00> : vector<16x64xf32>
    %423 = tpu.matmul %379, %422, %cst_145 {dimension_numbers = #tpu.dot_dimension_numbers<[1], [0], [0], [1], [0, 0, 1, 1], [], []>} : vector<16x11xf32>, vector<11x64xf32>, vector<16x64xf32> -> vector<16x64xf32>
    %424 = arith.addf %420, %423 : vector<16x64xf32>
    %c9 = arith.constant 9 : index
    %c0_146 = arith.constant 0 : index
    %c0_147 = arith.constant 0 : index
    %425 = vector.load %arg14[%c9, %c0_146, %c0_147] : memref<11x11x64xf32, #tpu.memory_space<vmem>>, vector<1x11x64xf32>
    %426 = vector.shape_cast %425 : vector<1x11x64xf32> to vector<11x64xf32>
    %cst_148 = arith.constant dense<0.000000e+00> : vector<16x64xf32>
    %427 = tpu.matmul %384, %426, %cst_148 {dimension_numbers = #tpu.dot_dimension_numbers<[1], [0], [0], [1], [0, 0, 1, 1], [], []>} : vector<16x11xf32>, vector<11x64xf32>, vector<16x64xf32> -> vector<16x64xf32>
    %428 = arith.addf %424, %427 : vector<16x64xf32>
    %c10 = arith.constant 10 : index
    %c0_149 = arith.constant 0 : index
    %c0_150 = arith.constant 0 : index
    %429 = vector.load %arg14[%c10, %c0_149, %c0_150] : memref<11x11x64xf32, #tpu.memory_space<vmem>>, vector<1x11x64xf32>
    %430 = vector.shape_cast %429 : vector<1x11x64xf32> to vector<11x64xf32>
    %cst_151 = arith.constant dense<0.000000e+00> : vector<16x64xf32>
    %431 = tpu.matmul %389, %430, %cst_151 {dimension_numbers = #tpu.dot_dimension_numbers<[1], [0], [0], [1], [0, 0, 1, 1], [], []>} : vector<16x11xf32>, vector<11x64xf32>, vector<16x64xf32> -> vector<16x64xf32>
    %432 = arith.addf %428, %431 : vector<16x64xf32>
    %c0_152 = arith.constant 0 : index
    %c0_153 = arith.constant 0 : index
    %433 = vector.load %arg15[%c0_152, %c0_153] : memref<1x64xf32, #tpu.memory_space<vmem>>, vector<1x64xf32>
    %434 = vector.broadcast %433 : vector<1x64xf32> to vector<16x64xf32>
    %435 = arith.addf %432, %434 : vector<16x64xf32>
    %c0_154 = arith.constant 0 : index
    %c0_155 = arith.constant 0 : index
    %436 = vector.load %arg16[%c0_154, %c0_155] : memref<64x1xf32, #tpu.memory_space<vmem>>, vector<64x1xf32>
    %cst_156 = arith.constant dense<0.000000e+00> : vector<16x1xf32>
    %437 = tpu.matmul %435, %436, %cst_156 {dimension_numbers = #tpu.dot_dimension_numbers<[1], [0], [0], [1], [0, 0, 1, 1], [], []>} : vector<16x64xf32>, vector<64x1xf32>, vector<16x1xf32> -> vector<16x1xf32>
    %c0_157 = arith.constant 0 : index
    %c0_158 = arith.constant 0 : index
    %438 = vector.load %arg17[%c0_157, %c0_158] : memref<1x1xf32, #tpu.memory_space<vmem>>, vector<1x1xf32>
    %439 = vector.broadcast %438 : vector<1x1xf32> to vector<16x1xf32>
    %440 = arith.addf %437, %439 : vector<16x1xf32>
    %c0_159 = arith.constant 0 : index
    %c0_160 = arith.constant 0 : index
    %441 = vector.load %arg2[%c0_159, %c0_160] : memref<1x1xf32, #tpu.memory_space<vmem>>, vector<1x1xf32>
    %c0_161 = arith.constant 0 : index
    %c0_162 = arith.constant 0 : index
    %442 = vector.load %arg18[%c0_161, %c0_162] : memref<128x1xf32, #tpu.memory_space<vmem>>, vector<128x1xf32>
    %443 = vector.broadcast %441 : vector<1x1xf32> to vector<128x1xf32>
    %444 = arith.mulf %442, %443 : vector<128x1xf32>
    %c0_163 = arith.constant 0 : index
    %c0_164 = arith.constant 0 : index
    %445 = vector.load %arg19[%c0_163, %c0_164] : memref<128x1xf32, #tpu.memory_space<vmem>>, vector<128x1xf32>
    %446 = arith.addf %444, %445 : vector<128x1xf32>
    %c0_165 = arith.constant 0 : index
    %c0_166 = arith.constant 0 : index
    %447 = vector.load %arg20[%c0_165, %c0_166] : memref<16x128xf32, #tpu.memory_space<vmem>>, vector<16x128xf32>
    %cst_167 = arith.constant dense<0.000000e+00> : vector<16x1xf32>
    %448 = tpu.matmul %447, %446, %cst_167 {dimension_numbers = #tpu.dot_dimension_numbers<[1], [0], [0], [1], [0, 0, 1, 1], [], []>} : vector<16x128xf32>, vector<128x1xf32>, vector<16x1xf32> -> vector<16x1xf32>
    %c0_168 = arith.constant 0 : index
    %c0_169 = arith.constant 0 : index
    %449 = vector.load %arg21[%c0_168, %c0_169] : memref<16x1xf32, #tpu.memory_space<vmem>>, vector<16x1xf32>
    %450 = arith.addf %448, %449 : vector<16x1xf32>
    %451 = arith.addf %440, %450 : vector<16x1xf32>
    %c0_170 = arith.constant 0 : index
    %c0_171 = arith.constant 0 : index
    %452 = vector.load %arg22[%c0_170, %c0_171] : memref<1x256xf32, #tpu.memory_space<vmem>>, vector<1x256xf32>
    %453 = vector.broadcast %451 : vector<16x1xf32> to vector<16x256xf32>
    %454 = vector.broadcast %452 : vector<1x256xf32> to vector<16x256xf32>
    %455 = arith.mulf %453, %454 : vector<16x256xf32>
    %c0_172 = arith.constant 0 : index
    %c0_173 = arith.constant 0 : index
    %456 = vector.load %arg23[%c0_172, %c0_173] : memref<1x256xf32, #tpu.memory_space<vmem>>, vector<1x256xf32>
    %457 = vector.broadcast %456 : vector<1x256xf32> to vector<16x256xf32>
    %458 = arith.addf %455, %457 : vector<16x256xf32>
    %459 = vector.extract_strided_slice %458 {offsets = [0, 0], sizes = [16, 128], strides = [1, 1]} : vector<16x256xf32> to vector<16x128xf32>
    %460 = vector.extract_strided_slice %458 {offsets = [0, 128], sizes = [16, 128], strides = [1, 1]} : vector<16x256xf32> to vector<16x128xf32>
    %c0_174 = arith.constant 0 : index
    %c0_175 = arith.constant 0 : index
    %461 = vector.load %arg25[%c0_174, %c0_175] : memref<32x16xf32, #tpu.memory_space<vmem>>, vector<32x16xf32>
    %cst_176 = arith.constant dense<0.000000e+00> : vector<32x128xf32>
    %462 = tpu.matmul %461, %459, %cst_176 {dimension_numbers = #tpu.dot_dimension_numbers<[1], [0], [0], [1], [0, 0, 1, 1], [], []>} : vector<32x16xf32>, vector<16x128xf32>, vector<32x128xf32> -> vector<32x128xf32>
    %c0_177 = arith.constant 0 : index
    %c0_178 = arith.constant 0 : index
    %463 = vector.load %arg26[%c0_177, %c0_178] : memref<32x16xf32, #tpu.memory_space<vmem>>, vector<32x16xf32>
    %cst_179 = arith.constant dense<0.000000e+00> : vector<32x128xf32>
    %464 = tpu.matmul %463, %460, %cst_179 {dimension_numbers = #tpu.dot_dimension_numbers<[1], [0], [0], [1], [0, 0, 1, 1], [], []>} : vector<32x16xf32>, vector<16x128xf32>, vector<32x128xf32> -> vector<32x128xf32>
    %465 = arith.mulf %462, %464 : vector<32x128xf32>
    %c0_180 = arith.constant 0 : index
    %c0_181 = arith.constant 0 : index
    %466 = vector.load %arg24[%c0_180, %c0_181] : memref<128x8xf32, #tpu.memory_space<vmem>>, vector<128x8xf32>
    %cst_182 = arith.constant dense<0.000000e+00> : vector<32x8xf32>
    %467 = tpu.matmul %465, %466, %cst_182 {dimension_numbers = #tpu.dot_dimension_numbers<[1], [0], [0], [1], [0, 0, 1, 1], [], []>} : vector<32x128xf32>, vector<128x8xf32>, vector<32x8xf32> -> vector<32x8xf32>
    %cst_183 = arith.constant 2.500000e-01 : f32
    %468 = vector.broadcast %cst_183 : f32 to vector<32x8xf32>
    %469 = arith.mulf %467, %468 : vector<32x8xf32>
    %cst_184 = arith.constant dense<0xFF800000> : vector<8xf32>
    %470 = vector.multi_reduction <maximumf>, %469, %cst_184 [0] : vector<32x8xf32> to vector<8xf32>
    %471 = vector.shape_cast %470 : vector<8xf32> to vector<1x8xf32>
    %472 = vector.broadcast %471 : vector<1x8xf32> to vector<32x8xf32>
    %473 = arith.subf %469, %472 : vector<32x8xf32>
    %474 = math.exp %473 : vector<32x8xf32>
    %cst_185 = arith.constant dense<0.000000e+00> : vector<8xf32>
    %475 = vector.multi_reduction <add>, %474, %cst_185 [0] : vector<32x8xf32> to vector<8xf32>
    %476 = vector.shape_cast %475 : vector<8xf32> to vector<1x8xf32>
    %477 = tpu.reciprocal %476 {approx = true} : vector<1x8xf32> -> vector<1x8xf32>
    %478 = vector.broadcast %477 : vector<1x8xf32> to vector<32x8xf32>
    %479 = arith.mulf %474, %478 : vector<32x8xf32>
    %cst_186 = arith.constant dense<0.000000e+00> : vector<32xf32>
    %480 = vector.multi_reduction <add>, %479, %cst_186 [1] : vector<32x8xf32> to vector<32xf32>
    %481 = vector.shape_cast %480 : vector<32xf32> to vector<32x1xf32>
    %cst_187 = arith.constant 8.000000e+00 : f32
    %482 = vector.broadcast %cst_187 : f32 to vector<32x1xf32>
    %483 = arith.divf %481, %482 : vector<32x1xf32>
    %c0_188 = arith.constant 0 : index
    %c0_189 = arith.constant 0 : index
    %484 = vector.load %arg25[%c0_188, %c0_189] : memref<32x16xf32, #tpu.memory_space<vmem>>, vector<32x16xf32>
    %cst_190 = arith.constant dense<0.000000e+00> : vector<32x1xf32>
    %485 = tpu.matmul %484, %451, %cst_190 {dimension_numbers = #tpu.dot_dimension_numbers<[1], [0], [0], [1], [0, 0, 1, 1], [], []>} : vector<32x16xf32>, vector<16x1xf32>, vector<32x1xf32> -> vector<32x1xf32>
    %c0_191 = arith.constant 0 : index
    %c0_192 = arith.constant 0 : index
    %486 = vector.load %arg27[%c0_191, %c0_192] : memref<16x32xf32, #tpu.memory_space<vmem>>, vector<16x32xf32>
    %487 = arith.mulf %483, %485 : vector<32x1xf32>
    %cst_193 = arith.constant dense<0.000000e+00> : vector<16x1xf32>
    %488 = tpu.matmul %486, %487, %cst_193 {dimension_numbers = #tpu.dot_dimension_numbers<[1], [0], [0], [1], [0, 0, 1, 1], [], []>} : vector<16x32xf32>, vector<32x1xf32>, vector<16x1xf32> -> vector<16x1xf32>
    %c0_194 = arith.constant 0 : index
    %c0_195 = arith.constant 0 : index
    %489 = vector.load %arg28[%c0_194, %c0_195] : memref<1x64xf32, #tpu.memory_space<vmem>>, vector<1x64xf32>
    %490 = vector.broadcast %488 : vector<16x1xf32> to vector<16x64xf32>
    %491 = vector.broadcast %489 : vector<1x64xf32> to vector<16x64xf32>
    %492 = arith.mulf %490, %491 : vector<16x64xf32>
    %c0_196 = arith.constant 0 : index
    %c0_197 = arith.constant 0 : index
    %493 = vector.load %arg29[%c0_196, %c0_197] : memref<1x64xf32, #tpu.memory_space<vmem>>, vector<1x64xf32>
    %494 = vector.broadcast %493 : vector<1x64xf32> to vector<16x64xf32>
    %495 = arith.addf %492, %494 : vector<16x64xf32>
    %c0_198 = arith.constant 0 : index
    %c0_199 = arith.constant 0 : index
    %496 = vector.load %arg30[%c0_198, %c0_199] : memref<64x4xf32, #tpu.memory_space<vmem>>, vector<64x4xf32>
    %cst_200 = arith.constant dense<0.000000e+00> : vector<16x4xf32>
    %497 = tpu.matmul %495, %496, %cst_200 {dimension_numbers = #tpu.dot_dimension_numbers<[1], [0], [0], [1], [0, 0, 1, 1], [], []>} : vector<16x64xf32>, vector<64x4xf32>, vector<16x4xf32> -> vector<16x4xf32>
    %c0_201 = arith.constant 0 : index
    %c0_202 = arith.constant 0 : index
    %498 = vector.load %arg31[%c0_201, %c0_202] : memref<1x4xf32, #tpu.memory_space<vmem>>, vector<1x4xf32>
    %499 = vector.broadcast %498 : vector<1x4xf32> to vector<16x4xf32>
    %500 = arith.addf %497, %499 : vector<16x4xf32>
    %501 = vector.extract_strided_slice %1 {offsets = [128, 0], sizes = [16, 4], strides = [1, 1]} : vector<192x4xf32> to vector<16x4xf32>
    %502 = vector.extract_strided_slice %1 {offsets = [144, 0], sizes = [16, 4], strides = [1, 1]} : vector<192x4xf32> to vector<16x4xf32>
    %503 = vector.extract_strided_slice %1 {offsets = [160, 0], sizes = [16, 4], strides = [1, 1]} : vector<192x4xf32> to vector<16x4xf32>
    %504 = vector.extract_strided_slice %1 {offsets = [176, 0], sizes = [16, 4], strides = [1, 1]} : vector<192x4xf32> to vector<16x4xf32>
    %505 = arith.subf %502, %501 : vector<16x4xf32>
    %cst_203 = arith.constant 0.00348432059 : f32
    %506 = vector.broadcast %cst_203 : f32 to vector<16x4xf32>
    %507 = arith.divf %505, %506 : vector<16x4xf32>
    %c0_204 = arith.constant 0 : index
    %c0_205 = arith.constant 0 : index
    %c0_206 = arith.constant 0 : index
    %508 = vector.load %arg32[%c0_204, %c0_205, %c0_206] : memref<1x64x4xf32, #tpu.memory_space<vmem>>, vector<1x16x4xf32>
    %509 = vector.shape_cast %508 : vector<1x16x4xf32> to vector<16x4xf32>
    %510 = vector.shape_cast %507 : vector<16x4xf32> to vector<1x16x4xf32>
    tpu.vector_store %arg32[%c0_204, %c0_205, %c0_206], %510 {strides = array<i32>} : memref<1x64x4xf32, #tpu.memory_space<vmem>>, vector<1x16x4xf32>,
    %511 = arith.subf %503, %502 : vector<16x4xf32>
    %cst_207 = arith.constant 0.00348432059 : f32
    %512 = vector.broadcast %cst_207 : f32 to vector<16x4xf32>
    %513 = arith.divf %511, %512 : vector<16x4xf32>
    %c0_208 = arith.constant 0 : index
    %c16 = arith.constant 16 : index
    %c0_209 = arith.constant 0 : index
    %514 = vector.load %arg32[%c0_208, %c16, %c0_209] : memref<1x64x4xf32, #tpu.memory_space<vmem>>, vector<1x16x4xf32>
    %515 = vector.shape_cast %514 : vector<1x16x4xf32> to vector<16x4xf32>
    %516 = vector.shape_cast %513 : vector<16x4xf32> to vector<1x16x4xf32>
    tpu.vector_store %arg32[%c0_208, %c16, %c0_209], %516 {strides = array<i32>} : memref<1x64x4xf32, #tpu.memory_space<vmem>>, vector<1x16x4xf32>,
    %517 = arith.subf %504, %503 : vector<16x4xf32>
    %cst_210 = arith.constant 0.00348432059 : f32
    %518 = vector.broadcast %cst_210 : f32 to vector<16x4xf32>
    %519 = arith.divf %517, %518 : vector<16x4xf32>
    %c0_211 = arith.constant 0 : index
    %c32 = arith.constant 32 : index
    %c0_212 = arith.constant 0 : index
    %520 = vector.load %arg32[%c0_211, %c32, %c0_212] : memref<1x64x4xf32, #tpu.memory_space<vmem>>, vector<1x16x4xf32>
    %521 = vector.shape_cast %520 : vector<1x16x4xf32> to vector<16x4xf32>
    %522 = vector.shape_cast %519 : vector<16x4xf32> to vector<1x16x4xf32>
    tpu.vector_store %arg32[%c0_211, %c32, %c0_212], %522 {strides = array<i32>} : memref<1x64x4xf32, #tpu.memory_space<vmem>>, vector<1x16x4xf32>,
    %c0_213 = arith.constant 0 : index
    %c48 = arith.constant 48 : index
    %c0_214 = arith.constant 0 : index
    %523 = vector.load %arg32[%c0_213, %c48, %c0_214] : memref<1x64x4xf32, #tpu.memory_space<vmem>>, vector<1x16x4xf32>
    %524 = vector.shape_cast %523 : vector<1x16x4xf32> to vector<16x4xf32>
    %525 = vector.shape_cast %500 : vector<16x4xf32> to vector<1x16x4xf32>
    tpu.vector_store %arg32[%c0_213, %c48, %c0_214], %525 {strides = array<i32>} : memref<1x64x4xf32, #tpu.memory_space<vmem>>, vector<1x16x4xf32>,
    return
  }
  func.func @transform_0(%arg0: i32) -> (i32, i32, i32) {
    %c0_i32 = arith.constant 0 : i32
    %c0_i32_0 = arith.constant 0 : i32
    %c0_i32_1 = arith.constant 0 : i32
    return %arg0, %c0_i32, %c0_i32_0 : i32, i32, i32
  }
  func.func @transform_1(%arg0: i32) -> (i32, i32) {
    %c0_i32 = arith.constant 0 : i32
    %c0_i32_0 = arith.constant 0 : i32
    %c0_i32_1 = arith.constant 0 : i32
    return %c0_i32, %c0_i32_0 : i32, i32
  }
  func.func @transform_2(%arg0: i32) -> (i32, i32) {
    %c0_i32 = arith.constant 0 : i32
    %c0_i32_0 = arith.constant 0 : i32
    %c0_i32_1 = arith.constant 0 : i32
    return %c0_i32, %c0_i32_0 : i32, i32
  }
  func.func @transform_3(%arg0: i32) -> (i32, i32) {
    %c0_i32 = arith.constant 0 : i32
    %c0_i32_0 = arith.constant 0 : i32
    %c0_i32_1 = arith.constant 0 : i32
    return %c0_i32, %c0_i32_0 : i32, i32
  }
  func.func @transform_4(%arg0: i32) -> (i32, i32) {
    %c0_i32 = arith.constant 0 : i32
    %c0_i32_0 = arith.constant 0 : i32
    %c0_i32_1 = arith.constant 0 : i32
    return %c0_i32, %c0_i32_0 : i32, i32
  }
  func.func @transform_5(%arg0: i32) -> (i32, i32) {
    %c0_i32 = arith.constant 0 : i32
    %c0_i32_0 = arith.constant 0 : i32
    %c0_i32_1 = arith.constant 0 : i32
    return %c0_i32, %c0_i32_0 : i32, i32
  }
  func.func @transform_6(%arg0: i32) -> (i32, i32) {
    %c0_i32 = arith.constant 0 : i32
    %c0_i32_0 = arith.constant 0 : i32
    %c0_i32_1 = arith.constant 0 : i32
    return %c0_i32, %c0_i32_0 : i32, i32
  }
  func.func @transform_7(%arg0: i32) -> (i32, i32) {
    %c0_i32 = arith.constant 0 : i32
    %c0_i32_0 = arith.constant 0 : i32
    %c0_i32_1 = arith.constant 0 : i32
    return %c0_i32, %c0_i32_0 : i32, i32
  }
  func.func @transform_8(%arg0: i32) -> (i32, i32) {
    %c0_i32 = arith.constant 0 : i32
    %c0_i32_0 = arith.constant 0 : i32
    %c0_i32_1 = arith.constant 0 : i32
    return %c0_i32, %c0_i32_0 : i32, i32
  }
  func.func @transform_9(%arg0: i32) -> (i32, i32, i32) {
    %c0_i32 = arith.constant 0 : i32
    %c0_i32_0 = arith.constant 0 : i32
    %c0_i32_1 = arith.constant 0 : i32
    %c0_i32_2 = arith.constant 0 : i32
    return %c0_i32, %c0_i32_0, %c0_i32_1 : i32, i32, i32
  }
  func.func @transform_10(%arg0: i32) -> (i32, i32) {
    %c0_i32 = arith.constant 0 : i32
    %c0_i32_0 = arith.constant 0 : i32
    %c0_i32_1 = arith.constant 0 : i32
    return %c0_i32, %c0_i32_0 : i32, i32
  }
  func.func @transform_11(%arg0: i32) -> (i32, i32, i32) {
    %c0_i32 = arith.constant 0 : i32
    %c0_i32_0 = arith.constant 0 : i32
    %c0_i32_1 = arith.constant 0 : i32
    %c0_i32_2 = arith.constant 0 : i32
    return %c0_i32, %c0_i32_0, %c0_i32_1 : i32, i32, i32
  }
  func.func @transform_12(%arg0: i32) -> (i32, i32) {
    %c0_i32 = arith.constant 0 : i32
    %c0_i32_0 = arith.constant 0 : i32
    %c0_i32_1 = arith.constant 0 : i32
    return %c0_i32, %c0_i32_0 : i32, i32
  }
  func.func @transform_13(%arg0: i32) -> (i32, i32, i32) {
    %c0_i32 = arith.constant 0 : i32
    %c0_i32_0 = arith.constant 0 : i32
    %c0_i32_1 = arith.constant 0 : i32
    %c0_i32_2 = arith.constant 0 : i32
    return %c0_i32, %c0_i32_0, %c0_i32_1 : i32, i32, i32
  }
  func.func @transform_14(%arg0: i32) -> (i32, i32) {
    %c0_i32 = arith.constant 0 : i32
    %c0_i32_0 = arith.constant 0 : i32
    %c0_i32_1 = arith.constant 0 : i32
    return %c0_i32, %c0_i32_0 : i32, i32
  }
  func.func @transform_15(%arg0: i32) -> (i32, i32) {
    %c0_i32 = arith.constant 0 : i32
    %c0_i32_0 = arith.constant 0 : i32
    %c0_i32_1 = arith.constant 0 : i32
    return %c0_i32, %c0_i32_0 : i32, i32
  }
  func.func @transform_16(%arg0: i32) -> (i32, i32) {
    %c0_i32 = arith.constant 0 : i32
    %c0_i32_0 = arith.constant 0 : i32
    %c0_i32_1 = arith.constant 0 : i32
    return %c0_i32, %c0_i32_0 : i32, i32
  }
  func.func @transform_17(%arg0: i32) -> (i32, i32) {
    %c0_i32 = arith.constant 0 : i32
    %c0_i32_0 = arith.constant 0 : i32
    %c0_i32_1 = arith.constant 0 : i32
    return %c0_i32, %c0_i32_0 : i32, i32
  }
  func.func @transform_18(%arg0: i32) -> (i32, i32) {
    %c0_i32 = arith.constant 0 : i32
    %c0_i32_0 = arith.constant 0 : i32
    %c0_i32_1 = arith.constant 0 : i32
    return %c0_i32, %c0_i32_0 : i32, i32
  }
  func.func @transform_19(%arg0: i32) -> (i32, i32) {
    %c0_i32 = arith.constant 0 : i32
    %c0_i32_0 = arith.constant 0 : i32
    %c0_i32_1 = arith.constant 0 : i32
    return %c0_i32, %c0_i32_0 : i32, i32
  }
  func.func @transform_20(%arg0: i32) -> (i32, i32) {
    %c0_i32 = arith.constant 0 : i32
    %c0_i32_0 = arith.constant 0 : i32
    %c0_i32_1 = arith.constant 0 : i32
    return %c0_i32, %c0_i32_0 : i32, i32
  }
  func.func @transform_21(%arg0: i32) -> (i32, i32) {
    %c0_i32 = arith.constant 0 : i32
    %c0_i32_0 = arith.constant 0 : i32
    %c0_i32_1 = arith.constant 0 : i32
    return %c0_i32, %c0_i32_0 : i32, i32
  }
  func.func @transform_22(%arg0: i32) -> (i32, i32) {
    %c0_i32 = arith.constant 0 : i32
    %c0_i32_0 = arith.constant 0 : i32
    %c0_i32_1 = arith.constant 0 : i32
    return %c0_i32, %c0_i32_0 : i32, i32
  }
  func.func @transform_23(%arg0: i32) -> (i32, i32) {
    %c0_i32 = arith.constant 0 : i32
    %c0_i32_0 = arith.constant 0 : i32
    %c0_i32_1 = arith.constant 0 : i32
    return %c0_i32, %c0_i32_0 : i32, i32
  }
  func.func @transform_24(%arg0: i32) -> (i32, i32) {
    %c0_i32 = arith.constant 0 : i32
    %c0_i32_0 = arith.constant 0 : i32
    %c0_i32_1 = arith.constant 0 : i32
    return %c0_i32, %c0_i32_0 : i32, i32
  }
  func.func @transform_25(%arg0: i32) -> (i32, i32) {
    %c0_i32 = arith.constant 0 : i32
    %c0_i32_0 = arith.constant 0 : i32
    %c0_i32_1 = arith.constant 0 : i32
    return %c0_i32, %c0_i32_0 : i32, i32
  }
  func.func @transform_26(%arg0: i32) -> (i32, i32) {
    %c0_i32 = arith.constant 0 : i32
    %c0_i32_0 = arith.constant 0 : i32
    %c0_i32_1 = arith.constant 0 : i32
    return %c0_i32, %c0_i32_0 : i32, i32
  }
  func.func @transform_27(%arg0: i32) -> (i32, i32) {
    %c0_i32 = arith.constant 0 : i32
    %c0_i32_0 = arith.constant 0 : i32
    %c0_i32_1 = arith.constant 0 : i32
    return %c0_i32, %c0_i32_0 : i32, i32
  }
  func.func @transform_28(%arg0: i32) -> (i32, i32) {
    %c0_i32 = arith.constant 0 : i32
    %c0_i32_0 = arith.constant 0 : i32
    %c0_i32_1 = arith.constant 0 : i32
    return %c0_i32, %c0_i32_0 : i32, i32
  }
  func.func @transform_29(%arg0: i32) -> (i32, i32) {
    %c0_i32 = arith.constant 0 : i32
    %c0_i32_0 = arith.constant 0 : i32
    %c0_i32_1 = arith.constant 0 : i32
    return %c0_i32, %c0_i32_0 : i32, i32
  }
  func.func @transform_30(%arg0: i32) -> (i32, i32) {
    %c0_i32 = arith.constant 0 : i32
    %c0_i32_0 = arith.constant 0 : i32
    %c0_i32_1 = arith.constant 0 : i32
    return %c0_i32, %c0_i32_0 : i32, i32
  }
  func.func @transform_31(%arg0: i32) -> (i32, i32, i32) {
    %c0_i32 = arith.constant 0 : i32
    %c0_i32_0 = arith.constant 0 : i32
    %c0_i32_1 = arith.constant 0 : i32
    return %arg0, %c0_i32, %c0_i32_0 : i32, i32, i32
  }
}

</mosaic_0001>

<bundles_post_ra>
// kernel: net_forward.1
= control target key start
LH: loop header
LB: loop body
LE: loop exit
PB: predicated region body
PF: predicated region fallthrough
CT: control target
= control target key end

     0   :  { %s13794_s6 = smov 1   ;;  %s13795_s10 = smov 2   ;;  %s15491_s0 = inlined_call_operand.smem [shape: u32[32], index: -1, kind: input, shape index: {}] }
   0x1   :  { %s13835_s5 = sld [smem:[%s15491_s0]]   ;;  %s13796_s14 = smov 3  }
   0x2   :  { %s10164_s9 = sld [smem:[%s15491_s0 + %s13794_s6]]   ;;  %s13797_s18 = smov 4  }
   0x3   :  { %s13843_s13 = sld [smem:[%s15491_s0 + %s13795_s10]]   ;;  %s13798_s22 = smov 5  }
   0x4   :  { %s13848_s17 = sld [smem:[%s15491_s0 + %s13796_s14]]   ;;  %s13799_s26 = smov 6  }
   0x5   :  { %s13853_s21 = sld [smem:[%s15491_s0 + %s13797_s18]]   ;;  %s13800_s30 = smov 7  }
   0x6   :  { %s13858_s25 = sld [smem:[%s15491_s0 + %s13798_s22]]   ;;  %s13801_s4 = smov 9  }
   0x7   :  { %s13863_s29 = sld [smem:[%s15491_s0 + %s13799_s26]]   ;;  %s13802_s10 = smov 10  }
   0x8   :  { %s13868_s3 = sld [smem:[%s15491_s0 + %s13800_s30]]   ;;  %v68_v0 = vstv %s10164_s9  ;;  %s13803_s15 = smov 11  }
   0x9   :  { %s13873_s8 = sld [smem:[%s15491_s0 + %s13801_s4]]   ;;  %69 = vst [vmem:[#allocation2] sm:$0x1] %v68_v0  ;;  %s13804_s9 = smov 12  }
   0xa   :  { %s13878_s14 = sld [smem:[%s15491_s0 + %s13802_s10]]   ;;  %s13805_s24 = smov 13  }
   0xb   :  { %s13883_s19 = sld [smem:[%s15491_s0 + %s13803_s15]]   ;;  %s13806_s30 = smov 14  }
   0xc   :  { %s13888_s23 = sld [smem:[%s15491_s0 + %s13804_s9]]   ;;  %s13807_s6 = smov 15  }
   0xd   :  { %s13893_s28 = sld [smem:[%s15491_s0 + %s13805_s24]]   ;;  %s13808_s12 = smov 17  }
   0xe   :  { %s13898_s4 = sld [smem:[%s15491_s0 + %s13806_s30]]   ;;  %s13809_s9 = smov 18  }
   0xf   :  { %s13903_s11 = sld [smem:[%s15491_s0 + %s13807_s6]]   ;;  %s13810_s26 = smov 19  }
  0x10   :  { %s13908_s18 = sld [smem:[%s15491_s0 + %s13808_s12]]   ;;  %s13811_s2 = smov 20  }
  0x11   :  { %s13913_s24 = sld [smem:[%s15491_s0 + %s13809_s9]]   ;;  %s13812_s12 = smov 21  }
  0x12   :  { %s13918_s1 = sld [smem:[%s15491_s0 + %s13810_s26]]   ;;  %s13813_s9 = smov 22  }
  0x13   :  { %s13923_s10 = sld [smem:[%s15491_s0 + %s13811_s2]]   ;;  %s13814_s26 = smov 23  }
  0x14   :  { %15500 = sst [smem:[#allocation5_spill]] %s13898_s4  ;;  %s13815_s2 = smov 24  }
  0x15   :  { %s13928_s4 = sld [smem:[%s15491_s0 + %s13812_s12]]   ;;  %s13816_s12 = smov 25  }
  0x16   :  { %s13824_s15 = smov 16  }
  0x17   :  { %15501 = sst [smem:[#allocation6_spill]] %s13913_s24 }
  0x18   :  { %15502 = sst [smem:[#allocation7_spill]] %s13918_s1 }
  0x19   :  { %15503 = sst [smem:[#allocation8_spill]] %s13923_s10 }
  0x1a   :  { %s13933_s24 = sld [smem:[%s15491_s0 + %s13813_s9]]   ;;  %s13817_s9 = smov 26  }
  0x1b   :  { %15504 = sst [smem:[#allocation9_spill]] %s13928_s4 }
  0x1c   :  { %s13938_s1 = sld [smem:[%s15491_s0 + %s13814_s26]]   ;;  %s13818_s26 = smov 27  }
  0x1d   :  { %s13943_s10 = sld [smem:[%s15491_s0 + %s13815_s2]]   ;;  %s13819_s2 = smov 28  }
  0x1e   :  { %s13948_s4 = sld [smem:[%s15491_s0 + %s13816_s12]]   ;;  %s13820_s12 = smov 29  }
  0x20   :  { %15505 = sst [smem:[#allocation10_spill]] %s13933_s24 }
  0x21   :  { %s13953_s24 = sld [smem:[%s15491_s0 + %s13817_s9]]   ;;  %s13821_s9 = smov 30  }
  0x22   :  { %15506 = sst [smem:[#allocation11_spill]] %s13938_s1 }
  0x23   :  { %15507 = sst [smem:[#allocation12_spill]] %s13943_s10 }
  0x24   :  { %15508 = sst [smem:[#allocation13_spill]] %s13948_s4 }
  0x25   :  { %s13958_s1 = sld [smem:[%s15491_s0 + %s13818_s26]]   ;;  %s13822_s26 = smov 31  }
  0x26   :  { %s13963_s10 = sld [smem:[%s15491_s0 + %s13819_s2]]   ;;  %s13823_s2 = smov 8  }
  0x27   :  { %15509 = sst [smem:[#allocation14_spill]] %s13953_s24 }
  0x28   :  { %s13968_s4 = sld [smem:[%s15491_s0 + %s13820_s12]]  }
  0x29   :  { %s13973_s24 = sld [smem:[%s15491_s0 + %s13821_s9]]   ;;  %s13986_s9 = smov 0  }
  0x2b   :  { %15510 = sst [smem:[#allocation15_spill]] %s13958_s1 }
  0x2c   :  { %15511 = sst [smem:[#allocation16_spill]] %s13963_s10 }
  0x2d   :  { %s13978_s1 = sld [smem:[%s15491_s0 + %s13822_s26]]  }
  0x2e   :  { %15512 = sst [smem:[#allocation17_spill]] %s13968_s4 }
  0x2f   :  { %s10171_s10 = sld [smem:[%s15491_s0 + %s13823_s2]]  }
  0x30   :  { %s10179_s4 = sld [smem:[%s15491_s0 + %s13824_s15]]  }
  0x35   :  { %v70_v1 = vstv %s10171_s10 }
  0x36   :  { %71 = vst [vmem:[#allocation3] sm:$0x1] %v70_v1  ;;  %v72_v2 = vstv %s10179_s4 }
  0x37   :  { %73 = vst [vmem:[#allocation4] sm:$0x1] %v72_v2 }
  0x38 LB: > { %s10195_s20 = sadd.s32 4294967295, %s13792_s9   ;;  %p10199_p0 = scmp.ge.s32.totalorder %s13792_s9, 1  ;;  %s13792_s9 = sphi %s13986_s9, %s79_s9  }
  0x39   : > { %p875_p1 = scmp.lt.s32.totalorder %s13792_s9, 3 }
  0x3b   : > { %p876_p2 = pnand %p10199_p0, %p875_p1 }
  0x3c   : > { %p955_p3 = scmp.lt.s32.totalorder (!%p876_p2), %s10195_s20, 1  ;;  %v13995_v3 = vld [vmem:[%s13843_s13] sm:$0xff] (!%p876_p2)  ;;  %vm1273_vm0 = vcmask (!%p876_p2), 130048   ;;  %vm1084_vm1 = vcmask (!%p876_p2), 1043456   ;;  %vm1011_vm2 = vcmask (!%p876_p2), 31744   ;;  %v14026_v11 = vld [vmem:[%s13843_s13 + $0x8] sm:$0xff] (!%p876_p2) }
  0x3d   : > { %879 = sbr.rel (%p876_p2) target bundleno = 7184 (0x1c10), region = 144  ;;  %v991_v4 = vld [vmem:[%s13848_s17] sm:$0xf] (!%p876_p2)  ;;  %11286 = vmatprep.mubr.msk.f32.mxu1 (!%p876_p2), %vm1273_vm0, %v13995_v3  ;;  %v1003_v51 = vld [vmem:[%s13868_s3 + $0x8] sm:$0xff] (!%p876_p2)  ;;  %v1004_v55 = vld [vmem:[%s13868_s3 + $0x10] sm:$0xff] (!%p876_p2)  ;;  %vm1524_vm3 = vcmask (!%p876_p2), 523264  }
  0x3e   : > { %v14001_v5 = vld [vmem:[%s13853_s21] sm:$0xf] (!%p876_p2)  ;;  %11244 = vmatprep.subr.msk.mxu0 (!%p876_p2), %vm1084_vm1, %v991_v4  ;;  %v1005_v56 = vld [vmem:[%s13868_s3 + $0x18] sm:$0xff] (!%p876_p2)  ;;  %v1007_v59 = vld [vmem:[%s13868_s3 + $0x28] sm:$0xff] (!%p876_p2)  ;;  %vm8156_vm4 = vcmask (!%p876_p2), 1042432   ;;  %vm13826_vm5 = vmmov (!%p876_p2), 1  }
  0x3f   : > { %11245 = vmatpush3.msk.msra.mxu0 (!%p876_p2), %vm1084_vm1, %v991_v4  ;;  %v14153_v46 = vld [vmem:[%s13858_s25] ss:$0 sm:$0xff] (!%p876_p2)  ;;  %v14164_v57 = vpack.c.bf16 (!%p876_p2), %v1005_v56, %v1004_v55  ;;  %v1008_v61 = vld [vmem:[%s13868_s3 + $0x30] sm:$0xff] (!%p876_p2)  ;;  %v1009_v62 = vld [vmem:[%s13868_s3 + $0x38] sm:$0xff] (!%p876_p2)  ;;  %vm8149_vm7 = vcmask (!%p876_p2), 89088   ;;  %s15515_s26 = sld [smem:[#allocation6_spill]] (!%p876_p2) }
  0x40   : > { %11289 = vmatprep.subr.msk.mxu0 (!%p876_p2), %vm1084_vm1, %v14001_v5  ;;  %v1002_v50 = vld [vmem:[%s13868_s3] sm:$0xff] (!%p876_p2)  ;;  %v14178_v63 = vpack.c.bf16 (!%p876_p2), %v1009_v62, %v1008_v61  ;;  %v995_v1 = vld [vmem:[%s13863_s29 + $0x8] sm:$0xff] (!%p876_p2)  ;;  %v996_v4 = vld [vmem:[%s13863_s29 + $0x10] sm:$0xff] (!%p876_p2)  ;;  %s15516_s27 = sld [smem:[#allocation5_spill]] (!%p876_p2)  ;;  %s15517_s30 = sld [smem:[#allocation7_spill]] (!%p876_p2)  ;;  %vm9730_vm8 = vcmask (!%p876_p2), 64512  }
  0x41   : > { %v14159_v54 = vpack.c.bf16 (!%p876_p2), %v1003_v51, %v1002_v50  ;;  %v1006_v58 = vld [vmem:[%s13868_s3 + $0x20] sm:$0xff] (!%p876_p2)  ;;  %vm15212_vm6 = vmpackc.low (!%p876_p2), %vm8156_vm4, %vm13826_vm5  ;;  %s15518_s2 = sld [smem:[#allocation8_spill]] (!%p876_p2)  ;;  %s15519_s6 = sld [smem:[#allocation12_spill]] (!%p876_p2)  ;;  %vm9882_vm9 = vcmask (!%p876_p2), 261120  }
  0x42   : > { %v14172_v60 = vpack.c.bf16 (!%p876_p2), %v1007_v59, %v1006_v58  ;;  %v994_v0 = vld [vmem:[%s13863_s29] sm:$0xff] (!%p876_p2)  ;;  %s15520_s7 = sld [smem:[#allocation13_spill]] (!%p876_p2)  ;;  %s15521_s15 = sld [smem:[#allocation9_spill]] (!%p876_p2) }
  0x43   : > { %v14185_v2 = vpack.c.bf16 (!%p876_p2), %v995_v1, %v994_v0  ;;  %s15522_s12 = sld [smem:[#allocation10_spill]] (!%p876_p2)  ;;  %s15523_s16 = sld [smem:[#allocation11_spill]] (!%p876_p2) }
  0x44   : > { %s15529_s20 = smov (!%p955_p3, %s10195_s20), 1 }
  0x45   : > { %s13723_s0 = smul.u32 192, %s15529_s20  ;;  %s10500_s10 = sshll.u32 %s15529_s20, 6 }
  0x46   : > { %s14070_s22 = scalar_lea.vmem %s13978_s1, %s10500_s10  ;;  %s15524_s20 = sld [smem:[#allocation14_spill]] }
  0x47   : > { %s14011_s4 = scalar_lea.vmem %s13835_s5, %s13723_s0  ;;  %s15525_s0 = sld [smem:[#allocation17_spill]] }
  0x48   : > { %v965_v6 = vld [vmem:[%s14011_s4] sm:$0xff]  ;;  %v966_v7 = vld [vmem:[%s14011_s4 + $0x8] sm:$0xff]  ;;  %v14017_v9 = vld [vmem:[%s14011_s4 + $0x10] sm:$0xff]  ;;  %s15527_s10 = sld [smem:[#allocation16_spill]] }
  0x49   : > { %v12613_v8 = vpack.c.bf16 %v966_v7, %v965_v6  ;;  %11246 = vmatprep.mubr.msk.f32.mxu0 %vm1011_vm2, %v965_v6  ;;  %v14023_v10 = vld [vmem:[%s14011_s4 + $0x18] sm:$0xff]  ;;  %v14031_v12 = vld [vmem:[%s14011_s4 + $0x20] sm:$0xff]  ;;  %v14034_v13 = vld [vmem:[%s14011_s4 + $0x28] sm:$0xff] }
  0x4a   : > { %11247 = vmatmul.mubr.msk.f32.vlgmr.msra.gmra.mrb[0].mxu0 %vm1011_vm2, %v966_v7  ;;  %v14037_v14 = vld [vmem:[%s14011_s4 + $0x80] sm:$0xff]  ;;  %v14040_v15 = vld [vmem:[%s14011_s4 + $0x88] sm:$0xff]  ;;  %v14048_v16 = vld [vmem:[%s14011_s4 + $0x90] sm:$0xff] }
  0x4b   : > { %12614 = vmatprep.subr.bf16.mxu1 %v12613_v8  ;;  %11290 = vmatpush3.msk.msra.mxu0 %vm1084_vm1, %v14001_v5  ;;  %v14051_v17 = vld [vmem:[%s14011_s4 + $0x98] sm:$0xff]  ;;  %v985_v18 = vld [vmem:[%s14011_s4 + $0xa0] sm:$0xff]  ;;  %v10088_v19 = vsub.f32 %v14048_v16, %v14037_v14  ;;  %v986_v22 = vld [vmem:[%s14011_s4 + $0xa8] sm:$0xff] }
  0x4c   : > { %12616 = vmatpush3.bf16.msra.mxu1 %v12613_v8  ;;  %11249 = vmatprep.mubr.msk.f32.mxu0 %vm1011_vm2, %v14017_v9  ;;  %v10089_v20 = vsub.f32 %v14051_v17, %v14040_v15  ;;  %v10095_v21 = vsub.f32 %v985_v18, %v14048_v16  ;;  %v987_v23 = vld [vmem:[%s14011_s4 + $0xb0] sm:$0xff]  ;;  %v988_v24 = vld [vmem:[%s14011_s4 + $0xb8] sm:$0xff]  ;;  %v10096_v26 = vsub.f32 %v986_v22, %v14051_v17  ;;  %v14089_v36 = vld [vmem:[%s14011_s4 + $0x40] sm:$0xff] }
  0x4d   : > { %11346 = vmatprep.subr.msk.mxu0 %vm1084_vm1, %v14001_v5  ;;  %v14067_v25 = vld [vmem:[%s14011_s4 + $0x30] sm:$0xff]  ;;  %v10101_v27 = vsub.f32 %v987_v23, %v985_v18  ;;  %v10102_v28 = vsub.f32 %v988_v24, %v986_v22  ;;  %v10091_v29 = vmul.f32 287.0, %v10088_v19  ;;  %v14080_v35 = vld [vmem:[%s14011_s4 + $0x38] sm:$0xff]  ;;  %v14102_v37 = vld [vmem:[%s14011_s4 + $0x48] sm:$0xff] }
  0x4e   : > { %11250 = vmatmul.mubr.msk.f32.gmra.mrb[2].mxu0 %vm1011_vm2, %v14023_v10  ;;  %v10092_v30 = vmul.f32 287.0, %v10089_v20  ;;  %v10097_v31 = vmul.f32 287.0, %v10095_v21  ;;  %v10098_v32 = vmul.f32 287.0, %v10096_v26  ;;  %v14105_v38 = vld [vmem:[%s14011_s4 + $0x50] sm:$0xff]  ;;  %v14112_v39 = vld [vmem:[%s14011_s4 + $0x58] sm:$0xff]  ;;  %v14115_v40 = vld [vmem:[%s14011_s4 + $0x60] sm:$0xff]  ;;  %v12653_v26 = vpack.c.bf16 %v14023_v10, %v14017_v9 }
  0x4f   : > { %11287 = vmatmul.mubr.msk.f32.vlgmr.msra.gmra.mrb[0].mxu1 %vm1273_vm0, %v14026_v11  ;;  %11252 = vmatprep.mubr.msk.f32.mxu0 %vm1011_vm2, %v14031_v12  ;;  %v10103_v33 = vmul.f32 287.0, %v10101_v27  ;;  %v10104_v34 = vmul.f32 287.0, %v10102_v28  ;;  %10093 = vst.msk [vmem:[%s14070_s22] sm:$0xff] %vm1011_vm2, %v10091_v29  ;;  %v14122_v41 = vld [vmem:[%s14011_s4 + $0x68] sm:$0xff]  ;;  %v14125_v42 = vld [vmem:[%s14011_s4 + $0x70] sm:$0xff]  ;;  %v14132_v43 = vld [vmem:[%s14011_s4 + $0x78] sm:$0xff]  ;;  %v12693_v9 = vpack.c.bf16 %v14034_v13, %v14031_v12  ;;  %v12733_v58 = vpack.c.bf16 %v14080_v35, %v14067_v25 }
  0x50   : > { %11298 = vmatprep.mubr.msk.f32.mxu1 %vm1273_vm0, %v13995_v3  ;;  %10094 = vst.msk [vmem:[%s14070_s22 + $0x8] sm:$0xff] %vm1011_vm2, %v10092_v30  ;;  %10099 = vst.msk [vmem:[%s14070_s22 + $0x10] sm:$0xff] %vm1011_vm2, %v10097_v31  ;;  %v997_v6 = vld [vmem:[%s13863_s29 + $0x18] sm:$0xff]  ;;  %v998_v19 = vld [vmem:[%s13863_s29 + $0x20] sm:$0xff]  ;;  %v13825_v27 = vmov 0  }
  0x51   : > { %10100 = vst.msk [vmem:[%s14070_s22 + $0x18] sm:$0xff] %vm1011_vm2, %v10098_v32  ;;  %10105 = vst.msk [vmem:[%s14070_s22 + $0x20] sm:$0xff] %vm1011_vm2, %v10103_v33  ;;  %v999_v20 = vld [vmem:[%s13863_s29 + $0x28] sm:$0xff]  ;;  %13765 = vset.pattern.permute.xlu1 %v13825_v27  ;;  %13766 = vset.pattern.permute.xlu0 %v13825_v27  ;;  %v14221_v10 = vld [vmem:[#allocation3] ss:$0 sm:$0xff] }
  0x52   : > { %11253 = vmatmul.mubr.msk.f32.gmra.mrb[4].mxu0 %vm1011_vm2, %v14034_v13  ;;  %10106 = vst.msk [vmem:[%s14070_s22 + $0x28] sm:$0xff] %vm1011_vm2, %v10104_v34  ;;  %v14199_v21 = vpack.c.bf16 %v999_v20, %v998_v19 }
  0x53   : > { %11255 = vmatprep.mubr.msk.f32.mxu0 %vm1011_vm2, %v14067_v25 }
  0x56   : > { %11256 = vmatmul.mubr.msk.f32.gmra.mrb[6].mxu0 %vm1011_vm2, %v14080_v35 }
  0x57   : > { %11258 = vmatprep.mubr.msk.f32.mxu0 %vm1011_vm2, %v14089_v36 }
  0x5a   : > { %11259 = vmatmul.mubr.msk.f32.gmra.mrb[8].mxu0 %vm1011_vm2, %v14102_v37 }
  0x5b   : > { %11261 = vmatprep.mubr.msk.f32.mxu0 %vm1011_vm2, %v14105_v38 }
  0x5e   : > { %11262 = vmatmul.mubr.msk.f32.gmra.mrb[10].mxu0 %vm1011_vm2, %v14112_v39 }
  0x5f   : > { %11264 = vmatprep.mubr.msk.f32.mxu0 %vm1011_vm2, %v14115_v40 }
  0x62   : > { %11265 = vmatmul.mubr.msk.f32.gmra.mrb[12].mxu0 %vm1011_vm2, %v14122_v41 }
  0x63   : > { %11267 = vmatprep.mubr.msk.f32.mxu0 %vm1011_vm2, %v14125_v42 }
  0x66   : > { %11268 = vmatmul.mubr.msk.f32.gmra.mrb[14].mxu0 %vm1011_vm2, %v14132_v43 }
  0x67   : > { %11270 = vmatprep.mubr.msk.f32.mxu0 %vm1011_vm2, %v14037_v14 }
  0x6a   : > { %11271 = vmatmul.mubr.msk.f32.gmra.mrb[16].mxu0 %vm1011_vm2, %v14040_v15 }
  0x6b   : > { %11273 = vmatprep.mubr.msk.f32.mxu0 %vm1011_vm2, %v14048_v16 }
  0x6e   : > { %11274 = vmatmul.mubr.msk.f32.gmra.mrb[18].mxu0 %vm1011_vm2, %v14051_v17 }
  0x6f   : > { %11276 = vmatprep.mubr.msk.f32.mxu0 %vm1011_vm2, %v985_v18  ;;  %v14190_v18 = vpack.c.bf16 %v997_v6, %v996_v4  ;;  %v12773_v6 = vpack.c.bf16 %v14102_v37, %v14089_v36 }
  0x72   : > { %11277 = vmatmul.mubr.msk.f32.gmra.mrb[20].mxu0 %vm1011_vm2, %v986_v22  ;;  %v1000_v22 = vld [vmem:[%s13863_s29 + $0x30] sm:$0xff] }
  0x73   : > { %11279 = vmatprep.mubr.msk.f32.mxu0 %vm1011_vm2, %v987_v23  ;;  %v1001_v23 = vld [vmem:[%s13863_s29 + $0x38] sm:$0xff] }
  0x76   : > { %11280 = vmatmul.mubr.msk.f32.gmra.mrb[22].mxu0 %vm1011_vm2, %v988_v24  ;;  %v14205_v24 = vpack.c.bf16 %v1001_v23, %v1000_v22 }
 0x122   : > { %v11288_v44 = vpop.f32.mrb[0].mxu1 }
 0x123   : > { %v1346_v45 = vpop.f32.mrb[1].mxu1 }
 0x124   : > { %11291 = vmatprep.mubr.msk.f32.mxu0 %vm1011_vm2, %v1346_v45 }
 0x125   : > { %11292 = vmatmul.mubr.msk.f32.vlgmr.msra.gmra.mrb[0].mxu0 %vm1011_vm2, %v11288_v44 }
 0x126   : > { %11347 = vmatpush3.msk.msra.mxu0 %vm1084_vm1, %v14001_v5 }
 0x127   : > { %12694 = vmatprep.subr.bf16.mxu0 %v12693_v9 }
 0x1f8   : > { %v11293_v47 = vpop.f32.mrb[0].mxu0 }
 0x1f9   : > { %v1448_v48 = vadd.f32 %v11293_v47, %v14153_v46  ;;  %v1430_v49 = vpop.f32.mrb[1].mxu0 }
 0x1fa   : > { %v1447_v52 = vadd.f32 %v14153_v46, %v1430_v49 }
 0x1fc   : > { %v12617_v53 = vpack.c.bf16 %v1448_v48, %v1447_v52 }
 0x1fe   : > { %12618 = vmatprep.subr.bf16.mxu1 %v12617_v53 }
 0x1ff   : > { %12620 = vmatpush3.bf16.msra.mxu1 %v12617_v53 }
 0x200   : > { %12622 = vmatprep.subr.bf16.mxu1 %v14159_v54 }
 0x202   : > { %11299 = vmatmul.mubr.msk.f32.vlgmr.msra.gmra.mrb[2].mxu1 %vm1273_vm0, %v14026_v11 }
 0x203   : > { %12624 = vmatpush3.bf16.msra.mxu1 %v14159_v54 }
 0x204   : > { %12626 = vmatprep.subr.bf16.mxu1 %v14164_v57 }
 0x207   : > { %12628 = vmatpush3.bf16.msra.mxu1 %v14164_v57 }
 0x208   : > { %12630 = vmatprep.subr.bf16.mxu1 %v14172_v60 }
 0x20b   : > { %12632 = vmatpush3.bf16.msra.mxu1 %v14172_v60 }
 0x20c   : > { %12634 = vmatprep.subr.bf16.mxu1 %v14178_v63 }
 0x20f   : > { %12636 = vmatpush3.bf16.msra.mxu1 %v14178_v63 }
 0x210   : > { %12638 = vmatprep.subr.bf16.mxu1 %v14185_v2 }
 0x2d5   : > { %v11300_v7 = vpop.f32.mrb[2].mxu1 }
 0x2d6   : > { %v1515_v8 = vpop.f32.mrb[3].mxu1 }
 0x2d7   : > { %11317 = vmatprep.mubr.msk.f32.mxu1 %vm1524_vm3, %v1515_v8 }
 0x2d8   : > { %11318 = vmatmul.mubr.msk.f32.vlgmr.msra.gmra.mrb[4].mxu1 %vm1524_vm3, %v11300_v7 }
 0x2d9   : > { %12640 = vmatpush3.bf16.msra.mxu1 %v14185_v2  ;;  %11336 = vmatprep.mubr.msk.f32.mxu1 %vm1524_vm3, %v1447_v52 }
 0x2da   : > { %12642 = vmatprep.subr.bf16.mxu1 %v14190_v18 }
 0x2dd   : > { %12644 = vmatpush3.bf16.msra.mxu1 %v14190_v18 }
 0x2de   : > { %12646 = vmatprep.subr.bf16.mxu1 %v14199_v21 }
 0x2e1   : > { %12648 = vmatpush3.bf16.msra.mxu1 %v14199_v21 }
 0x2e2   : > { %12650 = vmatprep.subr.bf16.mxu1 %v14205_v24 }
 0x2e5   : > { %12652 = vmatpush3.bf16.msra.mxu1 %v14205_v24 }
 0x2e6   : > { %12654 = vmatprep.subr.bf16.mxu1 %v12653_v26 }
 0x2e8   : > { %11337 = vmatmul.mubr.msk.f32.vlgmr.msra.gmra.mrb[4].mxu1 %vm1524_vm3, %v1448_v48 }
 0x2e9   : > { %12656 = vmatpush3.bf16.msra.mxu1 %v12653_v26  ;;  %11343 = vmatprep.mubr.msk.f32.mxu1 %vm1273_vm0, %v13995_v3 }
 0x2ec   : > { %11344 = vmatmul.mubr.msk.f32.vlgmr.msra.gmra.mrb[6].mxu1 %vm1273_vm0, %v14026_v11 }
 0x2ed   : > { %11355 = vmatprep.mubr.msk.f32.mxu1 %vm1273_vm0, %v13995_v3 }
 0x3bb   : > { %v11338_v28 = vpop.f32.mrb[4].mxu1 }
 0x3bc   : > { %v1694_v29 = vadd.f32 %v11338_v28, %v14221_v10  ;;  %v1678_v30 = vpop.f32.mrb[5].mxu1 }
 0x3bd   : > { %v1693_v31 = vadd.f32 %v14221_v10, %v1678_v30 }
 0x3be   : > { %6104 = vperm.xlu1 %13765, %v1694_v29  }
 0x3bf   : > { %v11345_v32 = vpop.f32.mrb[6].mxu1  ;;  %6099 = vperm.xlu0 %13766, %v1693_v31  }
 0x3c0   : > { %v1761_v33 = vpop.f32.mrb[7].mxu1 }
 0x3c1   : > { %11348 = vmatprep.mubr.msk.f32.mxu0 %vm1011_vm2, %v1761_v33 }
 0x3c2   : > { %11349 = vmatmul.mubr.msk.f32.vlgmr.msra.gmra.mrb[2].mxu0 %vm1011_vm2, %v11345_v32 }
 0x3c3   : > { %12696 = vmatpush3.bf16.msra.mxu0 %v12693_v9  ;;  %11400 = vmatprep.mubr.msk.f32.mxu0 %vm1273_vm0, %v13995_v3 }
 0x3c4   : > { %11403 = vmatprep.subr.msk.mxu0 %vm1084_vm1, %v14001_v5 }
 0x3c6   : > { %11401 = vmatmul.mubr.msk.f32.vlgmr.msra.gmra.mrb[24].mxu0 %vm1273_vm0, %v14026_v11 }
 0x3c7   : > { %11404 = vmatpush3.msk.msra.mxu0 %vm1084_vm1, %v14001_v5 }
 0x495   : > { %v11350_v12 = vpop.f32.mrb[2].mxu0 }
 0x496   : > { %v1854_v13 = vadd.f32 %v11350_v12, %v14153_v46  ;;  %v1842_v34 = vpop.f32.mrb[3].mxu0 }
 0x497   : > { %v1853_v44 = vadd.f32 %v14153_v46, %v1842_v34 }
 0x499   : > { %v12657_v45 = vpack.c.bf16 %v1854_v13, %v1853_v44  ;;  %v11402_v47 = vpop.f32.mrb[24].mxu0 }
 0x49a   : > { %v2160_v48 = vpop.f32.mrb[25].mxu0 }
 0x49b   : > { %12658 = vmatprep.subr.bf16.mxu1 %v12657_v45  ;;  %11405 = vmatprep.mubr.msk.f32.mxu0 %vm1011_vm2, %v2160_v48 }
 0x49c   : > { %12660 = vmatpush3.bf16.msra.mxu1 %v12657_v45  ;;  %11406 = vmatmul.mubr.msk.f32.vlgmr.msra.gmra.mrb[4].mxu0 %vm1011_vm2, %v11402_v47 }
 0x49d   : > { %12662 = vmatprep.subr.bf16.mxu1 %v14159_v54  ;;  %11412 = vmatprep.mubr.msk.f32.mxu0 %vm1273_vm0, %v13995_v3 }
 0x49f   : > { %11356 = vmatmul.mubr.msk.f32.vlgmr.msra.gmra.mrb[8].mxu1 %vm1273_vm0, %v14026_v11 }
 0x4a0   : > { %12664 = vmatpush3.bf16.msra.mxu1 %v14159_v54 }
 0x4a1   : > { %12666 = vmatprep.subr.bf16.mxu1 %v14164_v57 }
 0x4a4   : > { %12668 = vmatpush3.bf16.msra.mxu1 %v14164_v57 }
 0x4a5   : > { %12670 = vmatprep.subr.bf16.mxu1 %v14172_v60 }
 0x4a8   : > { %12672 = vmatpush3.bf16.msra.mxu1 %v14172_v60 }
 0x4a9   : > { %12674 = vmatprep.subr.bf16.mxu1 %v14178_v63 }
 0x4ac   : > { %12676 = vmatpush3.bf16.msra.mxu1 %v14178_v63 }
 0x4ad   : > { %12678 = vmatprep.subr.bf16.mxu1 %v14185_v2 }
 0x56f   : > { %v11407_v49 = vpop.f32.mrb[4].mxu0 }
 0x570   : > { %v2253_v50 = vadd.f32 %v11407_v49, %v14153_v46  ;;  %v2241_v51 = vpop.f32.mrb[5].mxu0 }
 0x571   : > { %v2252_v52 = vadd.f32 %v14153_v46, %v2241_v51 }
 0x572   : > { %v11357_v53 = vpop.f32.mrb[8].mxu1 }
 0x573   : > { %v12697_v55 = vpack.c.bf16 %v2253_v50, %v2252_v52  ;;  %v1921_v56 = vpop.f32.mrb[9].mxu1 }
 0x574   : > { %11374 = vmatprep.mubr.msk.f32.mxu1 %vm1524_vm3, %v1921_v56 }
 0x575   : > { %11375 = vmatmul.mubr.msk.f32.vlgmr.msra.gmra.mrb[10].mxu1 %vm1524_vm3, %v11357_v53  ;;  %12698 = vmatprep.subr.bf16.mxu0 %v12697_v55 }
 0x576   : > { %12680 = vmatpush3.bf16.msra.mxu1 %v14185_v2  ;;  %11393 = vmatprep.mubr.msk.f32.mxu1 %vm1524_vm3, %v1853_v44 }
 0x577   : > { %12700 = vmatpush3.bf16.msra.mxu0 %v12697_v55  ;;  %12682 = vmatprep.subr.bf16.mxu1 %v14190_v18 }
 0x578   : > { %12702 = vmatprep.subr.bf16.mxu0 %v14159_v54 }
 0x57a   : > { %12684 = vmatpush3.bf16.msra.mxu1 %v14190_v18  ;;  %11413 = vmatmul.mubr.msk.f32.vlgmr.msra.gmra.mrb[26].mxu0 %vm1273_vm0, %v14026_v11 }
 0x57b   : > { %12686 = vmatprep.subr.bf16.mxu1 %v14199_v21  ;;  %12704 = vmatpush3.bf16.msra.mxu0 %v14159_v54 }
 0x57c   : > { %12706 = vmatprep.subr.bf16.mxu0 %v14164_v57 }
 0x57e   : > { %12688 = vmatpush3.bf16.msra.mxu1 %v14199_v21 }
 0x57f   : > { %12690 = vmatprep.subr.bf16.mxu1 %v14205_v24  ;;  %12708 = vmatpush3.bf16.msra.mxu0 %v14164_v57 }
 0x580   : > { %12710 = vmatprep.subr.bf16.mxu0 %v14172_v60 }
 0x582   : > { %12692 = vmatpush3.bf16.msra.mxu1 %v14205_v24 }
 0x583   : > { %12734 = vmatprep.subr.bf16.mxu1 %v12733_v58  ;;  %12712 = vmatpush3.bf16.msra.mxu0 %v14172_v60 }
 0x584   : > { %12714 = vmatprep.subr.bf16.mxu0 %v14178_v63 }
 0x585   : > { %11394 = vmatmul.mubr.msk.f32.vlgmr.msra.gmra.mrb[10].mxu1 %vm1524_vm3, %v1854_v13  ;;  %v12813_v13 = vpack.c.bf16 %v14112_v39, %v14105_v38 }
 0x586   : > { %12736 = vmatpush3.bf16.msra.mxu1 %v12733_v58  ;;  %11457 = vmatprep.mubr.msk.f32.mxu1 %vm1273_vm0, %v13995_v3 }
 0x587   : > { %12716 = vmatpush3.bf16.msra.mxu0 %v14178_v63 }
 0x588   : > { %12718 = vmatprep.subr.bf16.mxu0 %v14185_v2 }
 0x589   : > { %11458 = vmatmul.mubr.msk.f32.vlgmr.msra.gmra.mrb[12].mxu1 %vm1273_vm0, %v14026_v11 }
 0x58a   : > { %11469 = vmatprep.mubr.msk.f32.mxu1 %vm1273_vm0, %v13995_v3 }
 0x64d   : > { %v11414_v25 = vpop.f32.mrb[26].mxu0 }
 0x64e   : > { %v2320_v35 = vpop.f32.mrb[27].mxu0 }
 0x64f   : > { %11431 = vmatprep.mubr.msk.f32.mxu0 %vm1524_vm3, %v2320_v35 }
 0x650   : > { %11432 = vmatmul.mubr.msk.f32.vlgmr.msra.gmra.mrb[28].mxu0 %vm1524_vm3, %v11414_v25 }
 0x651   : > { %12720 = vmatpush3.bf16.msra.mxu0 %v14185_v2  ;;  %11450 = vmatprep.mubr.msk.f32.mxu0 %vm1524_vm3, %v2252_v52 }
 0x652   : > { %12722 = vmatprep.subr.bf16.mxu0 %v14190_v18 }
 0x655   : > { %12724 = vmatpush3.bf16.msra.mxu0 %v14190_v18 }
 0x656   : > { %12726 = vmatprep.subr.bf16.mxu0 %v14199_v21 }
 0x658   : > { %v11395_v59 = vpop.f32.mrb[10].mxu1 }
 0x659   : > { %v2093_v61 = vadd.f32 %v11395_v59, %v14221_v10  ;;  %12728 = vmatpush3.bf16.msra.mxu0 %v14199_v21  ;;  %v2083_v62 = vpop.f32.mrb[11].mxu1 }
 0x65a   : > { %v2092_v0 = vadd.f32 %v14221_v10, %v2083_v62  ;;  %12730 = vmatprep.subr.bf16.mxu0 %v14205_v24 }
 0x65b   : > { %6124 = vperm.xlu1 %13765, %v2093_v61  }
 0x65c   : > { %6119 = vperm.xlu0 %13766, %v2092_v0   ;;  %v11459_v1 = vpop.f32.mrb[12].mxu1 }
 0x65d   : > { %12732 = vmatpush3.bf16.msra.mxu0 %v14205_v24  ;;  %v2559_v4 = vpop.f32.mrb[13].mxu1 }
 0x65e   : > { %11460 = vmatprep.subr.msk.mxu0 %vm1084_vm1, %v14001_v5 }
 0x660   : > { %11451 = vmatmul.mubr.msk.f32.vlgmr.msra.gmra.mrb[28].mxu0 %vm1524_vm3, %v2253_v50  ;;  %v12853_v50 = vpack.c.bf16 %v14122_v41, %v14115_v40 }
 0x661   : > { %11461 = vmatpush3.msk.msra.mxu0 %vm1084_vm1, %v14001_v5  ;;  %11462 = vmatprep.mubr.msk.f32.mxu0 %vm1011_vm2, %v2559_v4 }
 0x662   : > { %12774 = vmatprep.subr.bf16.mxu0 %v12773_v6 }
 0x664   : > { %11463 = vmatmul.mubr.msk.f32.vlgmr.msra.gmra.mrb[6].mxu0 %vm1011_vm2, %v11459_v1 }
 0x665   : > { %12776 = vmatpush3.bf16.msra.mxu0 %v12773_v6  ;;  %11514 = vmatprep.mubr.msk.f32.mxu0 %vm1273_vm0, %v13995_v3 }
 0x666   : > { %11517 = vmatprep.subr.msk.mxu0 %vm1084_vm1, %v14001_v5 }
 0x668   : > { %11515 = vmatmul.mubr.msk.f32.vlgmr.msra.gmra.mrb[30].mxu0 %vm1273_vm0, %v14026_v11 }
 0x669   : > { %11518 = vmatpush3.msk.msra.mxu0 %vm1084_vm1, %v14001_v5 }
 0x733   : > { %v11452_v36 = vpop.f32.mrb[28].mxu0 }
 0x734   : > { %v2492_v37 = vadd.f32 %v11452_v36, %v14221_v10  ;;  %v2482_v7 = vpop.f32.mrb[29].mxu0 }
 0x735   : > { %v2491_v8 = vadd.f32 %v14221_v10, %v2482_v7 }
 0x736   : > { %6158 = vperm.xlu1 %13765, %v2492_v37   ;;  %v12893_v37 = vpack.c.bf16 %v14132_v43, %v14125_v42 }
 0x737   : > { %v11464_v19 = vpop.f32.mrb[6].mxu0  ;;  %6153 = vperm.xlu0 %13766, %v2491_v8  }
 0x738   : > { %v2652_v20 = vadd.f32 %v11464_v19, %v14153_v46  ;;  %v2640_v22 = vpop.f32.mrb[7].mxu0 }
 0x739   : > { %v2651_v23 = vadd.f32 %v14153_v46, %v2640_v22 }
 0x73b   : > { %v12737_v26 = vpack.c.bf16 %v2652_v20, %v2651_v23  ;;  %v11516_v27 = vpop.f32.mrb[30].mxu0 }
 0x73c   : > { %v2958_v9 = vpop.f32.mrb[31].mxu0 }
 0x73d   : > { %12738 = vmatprep.subr.bf16.mxu1 %v12737_v26  ;;  %11519 = vmatprep.mubr.msk.f32.mxu0 %vm1011_vm2, %v2958_v9 }
 0x73e   : > { %12740 = vmatpush3.bf16.msra.mxu1 %v12737_v26  ;;  %11520 = vmatmul.mubr.msk.f32.vlgmr.msra.gmra.mrb[8].mxu0 %vm1011_vm2, %v11516_v27  ;;  %v12933_v26 = vpack.c.bf16 %v14040_v15, %v14037_v14 }
 0x73f   : > { %12742 = vmatprep.subr.bf16.mxu1 %v14159_v54  ;;  %11526 = vmatprep.mubr.msk.f32.mxu0 %vm1273_vm0, %v13995_v3 }
 0x741   : > { %11470 = vmatmul.mubr.msk.f32.vlgmr.msra.gmra.mrb[14].mxu1 %vm1273_vm0, %v14026_v11 }
 0x742   : > { %12744 = vmatpush3.bf16.msra.mxu1 %v14159_v54 }
 0x743   : > { %12746 = vmatprep.subr.bf16.mxu1 %v14164_v57 }
 0x746   : > { %12748 = vmatpush3.bf16.msra.mxu1 %v14164_v57 }
 0x747   : > { %12750 = vmatprep.subr.bf16.mxu1 %v14172_v60 }
 0x74a   : > { %12752 = vmatpush3.bf16.msra.mxu1 %v14172_v60 }
 0x74b   : > { %12754 = vmatprep.subr.bf16.mxu1 %v14178_v63 }
 0x74e   : > { %12756 = vmatpush3.bf16.msra.mxu1 %v14178_v63 }
 0x74f   : > { %12758 = vmatprep.subr.bf16.mxu1 %v14185_v2 }
 0x811   : > { %v11521_v28 = vpop.f32.mrb[8].mxu0 }
 0x812   : > { %v3051_v29 = vadd.f32 %v11521_v28, %v14153_v46  ;;  %v3039_v30 = vpop.f32.mrb[9].mxu0 }
 0x813   : > { %v3050_v31 = vadd.f32 %v14153_v46, %v3039_v30 }
 0x814   : > { %v11471_v32 = vpop.f32.mrb[14].mxu1 }
 0x815   : > { %v12777_v33 = vpack.c.bf16 %v3051_v29, %v3050_v31  ;;  %v2719_v12 = vpop.f32.mrb[15].mxu1 }
 0x816   : > { %11488 = vmatprep.mubr.msk.f32.mxu1 %vm1524_vm3, %v2719_v12 }
 0x817   : > { %11489 = vmatmul.mubr.msk.f32.vlgmr.msra.gmra.mrb[16].mxu1 %vm1524_vm3, %v11471_v32  ;;  %12778 = vmatprep.subr.bf16.mxu0 %v12777_v33 }
 0x818   : > { %12760 = vmatpush3.bf16.msra.mxu1 %v14185_v2  ;;  %11507 = vmatprep.mubr.msk.f32.mxu1 %vm1524_vm3, %v2651_v23 }
 0x819   : > { %12780 = vmatpush3.bf16.msra.mxu0 %v12777_v33  ;;  %12762 = vmatprep.subr.bf16.mxu1 %v14190_v18 }
 0x81a   : > { %12782 = vmatprep.subr.bf16.mxu0 %v14159_v54 }
 0x81c   : > { %12764 = vmatpush3.bf16.msra.mxu1 %v14190_v18  ;;  %11527 = vmatmul.mubr.msk.f32.vlgmr.msra.gmra.mrb[32].mxu0 %vm1273_vm0, %v14026_v11 }
 0x81d   : > { %12766 = vmatprep.subr.bf16.mxu1 %v14199_v21  ;;  %12784 = vmatpush3.bf16.msra.mxu0 %v14159_v54 }
 0x81e   : > { %12786 = vmatprep.subr.bf16.mxu0 %v14164_v57 }
 0x820   : > { %12768 = vmatpush3.bf16.msra.mxu1 %v14199_v21 }
 0x821   : > { %12770 = vmatprep.subr.bf16.mxu1 %v14205_v24  ;;  %12788 = vmatpush3.bf16.msra.mxu0 %v14164_v57 }
 0x822   : > { %12790 = vmatprep.subr.bf16.mxu0 %v14172_v60 }
 0x824   : > { %12772 = vmatpush3.bf16.msra.mxu1 %v14205_v24 }
 0x825   : > { %12814 = vmatprep.subr.bf16.mxu1 %v12813_v13  ;;  %12792 = vmatpush3.bf16.msra.mxu0 %v14172_v60 }
 0x826   : > { %12794 = vmatprep.subr.bf16.mxu0 %v14178_v63 }
 0x827   : > { %11508 = vmatmul.mubr.msk.f32.vlgmr.msra.gmra.mrb[16].mxu1 %vm1524_vm3, %v2652_v20 }
 0x828   : > { %12816 = vmatpush3.bf16.msra.mxu1 %v12813_v13  ;;  %11571 = vmatprep.mubr.msk.f32.mxu1 %vm1273_vm0, %v13995_v3 }
 0x829   : > { %12796 = vmatpush3.bf16.msra.mxu0 %v14178_v63 }
 0x82a   : > { %12798 = vmatprep.subr.bf16.mxu0 %v14185_v2 }
 0x82b   : > { %11572 = vmatmul.mubr.msk.f32.vlgmr.msra.gmra.mrb[18].mxu1 %vm1273_vm0, %v14026_v11 }
 0x82c   : > { %11583 = vmatprep.mubr.msk.f32.mxu1 %vm1273_vm0, %v13995_v3 }
 0x8ef   : > { %v11528_v38 = vpop.f32.mrb[32].mxu0 }
 0x8f0   : > { %v3118_v39 = vpop.f32.mrb[33].mxu0 }
 0x8f1   : > { %11545 = vmatprep.mubr.msk.f32.mxu0 %vm1524_vm3, %v3118_v39  ;;  %v12973_v39 = vpack.c.bf16 %v14051_v17, %v14048_v16 }
 0x8f2   : > { %11546 = vmatmul.mubr.msk.f32.vlgmr.msra.gmra.mrb[34].mxu0 %vm1524_vm3, %v11528_v38 }
 0x8f3   : > { %12800 = vmatpush3.bf16.msra.mxu0 %v14185_v2  ;;  %11564 = vmatprep.mubr.msk.f32.mxu0 %vm1524_vm3, %v3050_v31 }
 0x8f4   : > { %12802 = vmatprep.subr.bf16.mxu0 %v14190_v18 }
 0x8f7   : > { %12804 = vmatpush3.bf16.msra.mxu0 %v14190_v18 }
 0x8f8   : > { %12806 = vmatprep.subr.bf16.mxu0 %v14199_v21 }
 0x8fa   : > { %v11509_v34 = vpop.f32.mrb[16].mxu1 }
 0x8fb   : > { %v2891_v44 = vadd.f32 %v11509_v34, %v14221_v10  ;;  %12808 = vmatpush3.bf16.msra.mxu0 %v14199_v21  ;;  %v2881_v45 = vpop.f32.mrb[17].mxu1 }
 0x8fc   : > { %v2890_v47 = vadd.f32 %v14221_v10, %v2881_v45  ;;  %12810 = vmatprep.subr.bf16.mxu0 %v14205_v24 }
 0x8fd   : > { %6180 = vperm.xlu1 %13765, %v2891_v44  }
 0x8fe   : > { %6175 = vperm.xlu0 %13766, %v2890_v47   ;;  %v11573_v48 = vpop.f32.mrb[18].mxu1 }
 0x8ff   : > { %12812 = vmatpush3.bf16.msra.mxu0 %v14205_v24  ;;  %v3357_v49 = vpop.f32.mrb[19].mxu1 }
 0x900   : > { %11574 = vmatprep.subr.msk.mxu0 %vm1084_vm1, %v14001_v5 }
 0x902   : > { %11565 = vmatmul.mubr.msk.f32.vlgmr.msra.gmra.mrb[34].mxu0 %vm1524_vm3, %v3051_v29 }
 0x903   : > { %11575 = vmatpush3.msk.msra.mxu0 %vm1084_vm1, %v14001_v5  ;;  %11576 = vmatprep.mubr.msk.f32.mxu0 %vm1011_vm2, %v3357_v49 }
 0x904   : > { %12854 = vmatprep.subr.bf16.mxu0 %v12853_v50 }
 0x906   : > { %11577 = vmatmul.mubr.msk.f32.vlgmr.msra.gmra.mrb[10].mxu0 %vm1011_vm2, %v11573_v48 }
 0x907   : > { %12856 = vmatpush3.bf16.msra.mxu0 %v12853_v50  ;;  %11628 = vmatprep.mubr.msk.f32.mxu0 %vm1273_vm0, %v13995_v3 }
 0x908   : > { %11631 = vmatprep.subr.msk.mxu0 %vm1084_vm1, %v14001_v5 }
 0x90a   : > { %11629 = vmatmul.mubr.msk.f32.vlgmr.msra.gmra.mrb[36].mxu0 %vm1273_vm0, %v14026_v11 }
 0x90b   : > { %11632 = vmatpush3.msk.msra.mxu0 %vm1084_vm1, %v14001_v5 }
 0x9d5   : > { %v11566_v40 = vpop.f32.mrb[34].mxu0 }
 0x9d6   : > { %v3290_v41 = vadd.f32 %v11566_v40, %v14221_v10  ;;  %v3280_v51 = vpop.f32.mrb[35].mxu0 }
 0x9d7   : > { %v3289_v52 = vadd.f32 %v14221_v10, %v3280_v51 }
 0x9d8   : > { %6202 = vperm.xlu1 %13765, %v3290_v41  }
 0x9d9   : > { %v11578_v53 = vpop.f32.mrb[10].mxu0  ;;  %6197 = vperm.xlu0 %13766, %v3289_v52  }
 0x9da   : > { %v3450_v55 = vadd.f32 %v11578_v53, %v14153_v46  ;;  %v3438_v56 = vpop.f32.mrb[11].mxu0 }
 0x9db   : > { %v3449_v58 = vadd.f32 %v14153_v46, %v3438_v56 }
 0x9dd   : > { %v12817_v25 = vpack.c.bf16 %v3450_v55, %v3449_v58  ;;  %v11630_v35 = vpop.f32.mrb[36].mxu0 }
 0x9de   : > { %v3756_v59 = vpop.f32.mrb[37].mxu0 }
 0x9df   : > { %12818 = vmatprep.subr.bf16.mxu1 %v12817_v25  ;;  %11633 = vmatprep.mubr.msk.f32.mxu0 %vm1011_vm2, %v3756_v59 }
 0x9e0   : > { %12820 = vmatpush3.bf16.msra.mxu1 %v12817_v25  ;;  %11634 = vmatmul.mubr.msk.f32.vlgmr.msra.gmra.mrb[12].mxu0 %vm1011_vm2, %v11630_v35  ;;  %v13780_v25 = vld [vmem:[%s14011_s4 + $0xa8] sm:$0xff] }
 0x9e1   : > { %12822 = vmatprep.subr.bf16.mxu1 %v14159_v54  ;;  %11640 = vmatprep.mubr.msk.f32.mxu0 %vm1273_vm0, %v13995_v3 }
 0x9e3   : > { %11584 = vmatmul.mubr.msk.f32.vlgmr.msra.gmra.mrb[20].mxu1 %vm1273_vm0, %v14026_v11 }
 0x9e4   : > { %12824 = vmatpush3.bf16.msra.mxu1 %v14159_v54 }
 0x9e5   : > { %12826 = vmatprep.subr.bf16.mxu1 %v14164_v57 }
 0x9e8   : > { %12828 = vmatpush3.bf16.msra.mxu1 %v14164_v57 }
 0x9e9   : > { %12830 = vmatprep.subr.bf16.mxu1 %v14172_v60 }
 0x9ec   : > { %12832 = vmatpush3.bf16.msra.mxu1 %v14172_v60 }
 0x9ed   : > { %12834 = vmatprep.subr.bf16.mxu1 %v14178_v63 }
 0x9f0   : > { %12836 = vmatpush3.bf16.msra.mxu1 %v14178_v63 }
 0x9f1   : > { %12838 = vmatprep.subr.bf16.mxu1 %v14185_v2 }
 0xab3   : > { %v11635_v61 = vpop.f32.mrb[12].mxu0 }
 0xab4   : > { %v3849_v62 = vadd.f32 %v11635_v61, %v14153_v46  ;;  %v3837_v0 = vpop.f32.mrb[13].mxu0 }
 0xab5   : > { %v3848_v1 = vadd.f32 %v14153_v46, %v3837_v0 }
 0xab6   : > { %v11585_v4 = vpop.f32.mrb[20].mxu1 }
 0xab7   : > { %v12857_v6 = vpack.c.bf16 %v3849_v62, %v3848_v1  ;;  %v3517_v36 = vpop.f32.mrb[21].mxu1 }
 0xab8   : > { %11602 = vmatprep.mubr.msk.f32.mxu1 %vm1524_vm3, %v3517_v36 }
 0xab9   : > { %11603 = vmatmul.mubr.msk.f32.vlgmr.msra.gmra.mrb[22].mxu1 %vm1524_vm3, %v11585_v4  ;;  %12858 = vmatprep.subr.bf16.mxu0 %v12857_v6 }
 0xaba   : > { %12840 = vmatpush3.bf16.msra.mxu1 %v14185_v2  ;;  %11621 = vmatprep.mubr.msk.f32.mxu1 %vm1524_vm3, %v3449_v58  ;;  %v13779_v58 = vld [vmem:[%s14011_s4 + $0xa0] sm:$0xff] }
 0xabb   : > { %12860 = vmatpush3.bf16.msra.mxu0 %v12857_v6  ;;  %12842 = vmatprep.subr.bf16.mxu1 %v14190_v18  ;;  %v13013_v35 = vpack.c.bf16 %v13780_v25, %v13779_v58  ;;  %v10374_v58 = vld [vmem:[%s13883_s19 + $0x70] sm:$0xff]  ;;  %v10375_v25 = vld [vmem:[%s13883_s19 + $0x78] sm:$0xff] }
 0xabc   : > { %12894 = vmatprep.subr.bf16.mxu0 %v12893_v37 }
 0xabe   : > { %12844 = vmatpush3.bf16.msra.mxu1 %v14190_v18  ;;  %11641 = vmatmul.mubr.msk.f32.vlgmr.msra.gmra.mrb[38].mxu0 %vm1273_vm0, %v14026_v11 }
 0xabf   : > { %12896 = vmatpush3.bf16.msra.mxu0 %v12893_v37  ;;  %12846 = vmatprep.subr.bf16.mxu1 %v14199_v21  ;;  %v13781_v37 = vld [vmem:[%s13853_s21] sm:$0xf] }
 0xac0   : > { %11685 = vmatprep.mubr.msk.f32.mxu0 %vm1273_vm0, %v13995_v3  ;;  %11688 = vmatprep.subr.msk.mxu0 %vm1084_vm1, %v14001_v5 }
 0xac2   : > { %12848 = vmatpush3.bf16.msra.mxu1 %v14199_v21  ;;  %11686 = vmatmul.mubr.msk.f32.vlgmr.msra.gmra.mrb[40].mxu0 %vm1273_vm0, %v14026_v11 }
 0xac3   : > { %12850 = vmatprep.subr.bf16.mxu1 %v14205_v24  ;;  %11689 = vmatpush3.msk.msra.mxu0 %vm1084_vm1, %v14001_v5 }
 0xac6   : > { %12852 = vmatpush3.bf16.msra.mxu1 %v14205_v24 }
 0xac7   : > { %12862 = vmatprep.subr.bf16.mxu1 %v14159_v54 }
 0xac9   : > { %11622 = vmatmul.mubr.msk.f32.vlgmr.msra.gmra.mrb[22].mxu1 %vm1524_vm3, %v3450_v55 }
 0xaca   : > { %12864 = vmatpush3.bf16.msra.mxu1 %v14159_v54 }
 0xacb   : > { %12866 = vmatprep.subr.bf16.mxu1 %v14164_v57 }
 0xace   : > { %12868 = vmatpush3.bf16.msra.mxu1 %v14164_v57 }
 0xacf   : > { %12870 = vmatprep.subr.bf16.mxu1 %v14172_v60 }
 0xad2   : > { %12872 = vmatpush3.bf16.msra.mxu1 %v14172_v60 }
 0xad3   : > { %12874 = vmatprep.subr.bf16.mxu1 %v14178_v63 }
 0xad6   : > { %12876 = vmatpush3.bf16.msra.mxu1 %v14178_v63 }
 0xad7   : > { %12878 = vmatprep.subr.bf16.mxu1 %v14185_v2 }
 0xb91   : > { %v11642_v42 = vpop.f32.mrb[38].mxu0 }
 0xb92   : > { %v3916_v43 = vpop.f32.mrb[39].mxu0 }
 0xb93   : > { %11659 = vmatprep.mubr.msk.f32.mxu1 %vm1524_vm3, %v3916_v43  ;;  %v13783_v43 = vld [vmem:[%s14011_s4 + $0xb8] sm:$0xff] }
 0xb94   : > { %11660 = vmatmul.mubr.msk.f32.vlgmr.msra.gmra.mrb[24].mxu1 %vm1524_vm3, %v11642_v42  ;;  %v13782_v42 = vld [vmem:[%s14011_s4 + $0xb0] sm:$0xff]  ;;  %s15526_s4 = sld [smem:[#allocation15_spill]] }
 0xb95   : > { %12880 = vmatpush3.bf16.msra.mxu1 %v14185_v2  ;;  %11678 = vmatprep.mubr.msk.f32.mxu1 %vm1524_vm3, %v3848_v1  ;;  %v11687_v7 = vpop.f32.mrb[40].mxu0 }
 0xb96   : > { %v4155_v8 = vpop.f32.mrb[41].mxu0  ;;  %12882 = vmatprep.subr.bf16.mxu1 %v14190_v18 }
 0xb97   : > { %11690 = vmatprep.mubr.msk.f32.mxu0 %vm1011_vm2, %v4155_v8 }
 0xb98   : > { %11691 = vmatmul.mubr.msk.f32.vlgmr.msra.gmra.mrb[14].mxu0 %vm1011_vm2, %v11687_v7  ;;  %v13053_v7 = vpack.c.bf16 %v13783_v43, %v13782_v42 }
 0xb99   : > { %12884 = vmatpush3.bf16.msra.mxu1 %v14190_v18  ;;  %11697 = vmatprep.mubr.msk.f32.mxu0 %vm1273_vm0, %v13995_v3 }
 0xb9a   : > { %12886 = vmatprep.subr.bf16.mxu1 %v14199_v21 }
 0xb9c   : > { %v11623_v19 = vpop.f32.mrb[22].mxu1 }
 0xb9d   : > { %v3689_v20 = vadd.f32 %v11623_v19, %v14221_v10  ;;  %12888 = vmatpush3.bf16.msra.mxu1 %v14199_v21  ;;  %v3679_v22 = vpop.f32.mrb[23].mxu1 }
 0xb9e   : > { %v3688_v23 = vadd.f32 %v14221_v10, %v3679_v22  ;;  %12890 = vmatprep.subr.bf16.mxu1 %v14205_v24 }
 0xb9f   : > { %6224 = vperm.xlu1 %13765, %v3689_v20  }
 0xba0   : > { %6219 = vperm.xlu0 %13766, %v3688_v23  }
 0xba1   : > { %12892 = vmatpush3.bf16.msra.mxu1 %v14205_v24 }
 0xba2   : > { %12934 = vmatprep.subr.bf16.mxu1 %v12933_v26 }
 0xba4   : > { %11679 = vmatmul.mubr.msk.f32.vlgmr.msra.gmra.mrb[24].mxu1 %vm1524_vm3, %v3849_v62 }
 0xba5   : > { %11742 = vmatprep.mubr.msk.f32.mxu1 %vm1273_vm0, %v13995_v3  ;;  %12936 = vmatpush3.bf16.msra.mxu1 %v12933_v26  ;;  %v13784_v26 = vld [vmem:[%s13858_s25] ss:$0 sm:$0xff] }
 0xba8   : > { %11743 = vmatmul.mubr.msk.f32.vlgmr.msra.gmra.mrb[26].mxu1 %vm1273_vm0, %v14026_v11 }
 0xba9   : > { %11754 = vmatprep.mubr.msk.f32.mxu1 %vm1273_vm0, %v13995_v3 }
 0xc6b   : > { %v11692_v27 = vpop.f32.mrb[14].mxu0 }
 0xc6c   : > { %v4248_v9 = vadd.f32 %v11692_v27, %v14153_v46  ;;  %v4236_v28 = vpop.f32.mrb[15].mxu0 }
 0xc6d   : > { %v4247_v29 = vadd.f32 %v14153_v46, %v4236_v28 }
 0xc6f   : > { %v12897_v30 = vpack.c.bf16 %v4248_v9, %v4247_v29 }
 0xc71   : > { %12898 = vmatprep.subr.bf16.mxu0 %v12897_v30 }
 0xc72   : > { %12900 = vmatpush3.bf16.msra.mxu0 %v12897_v30 }
 0xc73   : > { %12902 = vmatprep.subr.bf16.mxu0 %v14159_v54 }
 0xc75   : > { %11698 = vmatmul.mubr.msk.f32.vlgmr.msra.gmra.mrb[42].mxu0 %vm1273_vm0, %v14026_v11 }
 0xc76   : > { %12904 = vmatpush3.bf16.msra.mxu0 %v14159_v54 }
 0xc77   : > { %v11680_v14 = vpop.f32.mrb[24].mxu1  ;;  %12906 = vmatprep.subr.bf16.mxu0 %v14164_v57 }
 0xc78   : > { %v4088_v15 = vadd.f32 %v11680_v14, %v14221_v10  ;;  %v4078_v31 = vpop.f32.mrb[25].mxu1 }
 0xc79   : > { %v4087_v32 = vadd.f32 %v14221_v10, %v4078_v31 }
 0xc7a   : > { %6246 = vperm.xlu1 %13765, %v4088_v15   ;;  %12908 = vmatpush3.bf16.msra.mxu0 %v14164_v57 }
 0xc7b   : > { %6241 = vperm.xlu0 %13766, %v4087_v32   ;;  %12910 = vmatprep.subr.bf16.mxu0 %v14172_v60  ;;  %v11744_v33 = vpop.f32.mrb[26].mxu1  ;;  %v6100_v32 = vpop.permute.xlu0 %6099 }
 0xc7c   : > { %v4554_v12 = vpop.f32.mrb[27].mxu1 }
 0xc7e   : > { %12912 = vmatpush3.bf16.msra.mxu0 %v14172_v60 }
 0xc7f   : > { %12914 = vmatprep.subr.bf16.mxu0 %v14178_v63 }
 0xc82   : > { %12916 = vmatpush3.bf16.msra.mxu0 %v14178_v63 }
 0xc83   : > { %12918 = vmatprep.subr.bf16.mxu0 %v14185_v2 }
 0xd48   : > { %v11699_v13 = vpop.f32.mrb[42].mxu0 }
 0xd49   : > { %v4315_v38 = vpop.f32.mrb[43].mxu0 }
 0xd4a   : > { %11716 = vmatprep.mubr.msk.f32.mxu0 %vm1524_vm3, %v4315_v38 }
 0xd4b   : > { %11717 = vmatmul.mubr.msk.f32.vlgmr.msra.gmra.mrb[44].mxu0 %vm1524_vm3, %v11699_v13 }
 0xd4c   : > { %12920 = vmatpush3.bf16.msra.mxu0 %v14185_v2  ;;  %11735 = vmatprep.mubr.msk.f32.mxu0 %vm1524_vm3, %v4247_v29 }
 0xd4d   : > { %12922 = vmatprep.subr.bf16.mxu0 %v14190_v18 }
 0xd50   : > { %12924 = vmatpush3.bf16.msra.mxu0 %v14190_v18 }
 0xd51   : > { %12926 = vmatprep.subr.bf16.mxu0 %v14199_v21 }
 0xd54   : > { %12928 = vmatpush3.bf16.msra.mxu0 %v14199_v21 }
 0xd55   : > { %12930 = vmatprep.subr.bf16.mxu0 %v14205_v24 }
 0xd58   : > { %12932 = vmatpush3.bf16.msra.mxu0 %v14205_v24 }
 0xd59   : > { %11745 = vmatprep.subr.msk.mxu0 %vm1084_vm1, %v14001_v5 }
 0xd5b   : > { %11736 = vmatmul.mubr.msk.f32.vlgmr.msra.gmra.mrb[44].mxu0 %vm1524_vm3, %v4248_v9 }
 0xd5c   : > { %11746 = vmatpush3.msk.msra.mxu0 %vm1084_vm1, %v14001_v5  ;;  %11747 = vmatprep.mubr.msk.f32.mxu0 %vm1011_vm2, %v4554_v12 }
 0xd5d   : > { %12974 = vmatprep.subr.bf16.mxu0 %v12973_v39 }
 0xd5f   : > { %11748 = vmatmul.mubr.msk.f32.vlgmr.msra.gmra.mrb[16].mxu0 %vm1011_vm2, %v11744_v33 }
 0xd60   : > { %12976 = vmatpush3.bf16.msra.mxu0 %v12973_v39  ;;  %11799 = vmatprep.mubr.msk.f32.mxu0 %vm1273_vm0, %v13995_v3  ;;  %v14628_v39 = vpop.permute.xlu0 %6119 }
 0xd61   : > { %11802 = vmatprep.subr.msk.mxu0 %vm1084_vm1, %v14001_v5 }
 0xd63   : > { %11800 = vmatmul.mubr.msk.f32.vlgmr.msra.gmra.mrb[46].mxu0 %vm1273_vm0, %v14026_v11 }
 0xd64   : > { %11803 = vmatpush3.msk.msra.mxu0 %vm1084_vm1, %v14001_v5  ;;  %v14521_v5 = vld [vmem:[%s13843_s13] sm:$0xff] }
 0xe2e   : > { %v11737_v16 = vpop.f32.mrb[44].mxu0 }
 0xe2f   : > { %v4487_v17 = vadd.f32 %v11737_v16, %v14221_v10  ;;  %v4477_v34 = vpop.f32.mrb[45].mxu0  ;;  %v14636_v16 = vld [vmem:[%s13873_s8] ss:$0 sm:$0xff] }
 0xe30   : > { %v4486_v44 = vadd.f32 %v14221_v10, %v4477_v34  ;;  %v14641_v34 = vpop.permute.xlu0 %6153 }
 0xe31   : > { %6268 = vperm.xlu1 %13765, %v4487_v17   ;;  %v14639_v17 = vld [vmem:[%s13873_s8 + $0x1] ss:$0 sm:$0xff] }
 0xe32   : > { %v11749_v45 = vpop.f32.mrb[16].mxu0  ;;  %6263 = vperm.xlu0 %13766, %v4486_v44   ;;  %v6147_v44 = vmul.f32 %v14639_v17, %v14628_v39 }
 0xe33   : > { %v4647_v3 = vadd.f32 %v11749_v45, %v14153_v46  ;;  %v4635_v47 = vpop.f32.mrb[17].mxu0  ;;  %v14649_v45 = vld [vmem:[%s13873_s8 + $0x2] ss:$0 sm:$0xff] }
 0xe34   : > { %v4646_v48 = vadd.f32 %v14153_v46, %v4635_v47  ;;  %v6161_v47 = vmul.f32 %v14649_v45, %v14641_v34 }
 0xe36   : > { %v12937_v49 = vpack.c.bf16 %v4647_v3, %v4646_v48  ;;  %v11801_v50 = vpop.f32.mrb[46].mxu0 }
 0xe37   : > { %v4953_v40 = vpop.f32.mrb[47].mxu0 }
 0xe38   : > { %12938 = vmatprep.subr.bf16.mxu1 %v12937_v49  ;;  %11804 = vmatprep.mubr.msk.f32.mxu0 %vm1011_vm2, %v4953_v40 }
 0xe39   : > { %12940 = vmatpush3.bf16.msra.mxu1 %v12937_v49  ;;  %11805 = vmatmul.mubr.msk.f32.vlgmr.msra.gmra.mrb[18].mxu0 %vm1011_vm2, %v11801_v50  ;;  %v10369_v49 = vld [vmem:[%s13883_s19 + $0x48] sm:$0xff] }
 0xe3a   : > { %12942 = vmatprep.subr.bf16.mxu1 %v14159_v54  ;;  %11811 = vmatprep.mubr.msk.f32.mxu0 %vm1273_vm0, %v14521_v5 }
 0xe3c   : > { %11755 = vmatmul.mubr.msk.f32.vlgmr.msra.gmra.mrb[28].mxu1 %vm1273_vm0, %v14026_v11 }
 0xe3d   : > { %12944 = vmatpush3.bf16.msra.mxu1 %v14159_v54 }
 0xe3e   : > { %12946 = vmatprep.subr.bf16.mxu1 %v14164_v57 }
 0xe41   : > { %12948 = vmatpush3.bf16.msra.mxu1 %v14164_v57 }
 0xe42   : > { %12950 = vmatprep.subr.bf16.mxu1 %v14172_v60 }
 0xe45   : > { %12952 = vmatpush3.bf16.msra.mxu1 %v14172_v60 }
 0xe46   : > { %12954 = vmatprep.subr.bf16.mxu1 %v14178_v63 }
 0xe49   : > { %12956 = vmatpush3.bf16.msra.mxu1 %v14178_v63 }
 0xe4a   : > { %12958 = vmatprep.subr.bf16.mxu1 %v14185_v2 }
 0xf0c   : > { %v11806_v41 = vpop.f32.mrb[18].mxu0 }
 0xf0d   : > { %v14536_v11 = vadd.f32 %v11806_v41, %v14153_v46  ;;  %v5034_v51 = vpop.f32.mrb[19].mxu0  ;;  %v10370_v41 = vld [vmem:[%s13883_s19 + $0x50] sm:$0xff] }
 0xf0e   : > { %v5045_v52 = vadd.f32 %v14153_v46, %v5034_v51  ;;  %v14548_v46 = vld [vmem:[%s13843_s13 + $0x8] sm:$0xff]  ;;  %v14669_v51 = vld [vmem:[%s13878_s14] ss:$0 sm:$0xff] }
 0xf0f   : > { %v11756_v53 = vpop.f32.mrb[28].mxu1 }
 0xf10   : > { %v12977_v55 = vpack.c.bf16 %v14536_v11, %v5045_v52  ;;  %v4714_v56 = vpop.f32.mrb[29].mxu1 }
 0xf11   : > { %11773 = vmatprep.mubr.msk.f32.mxu1 %vm1524_vm3, %v4714_v56  ;;  %v10373_v56 = vld [vmem:[%s13883_s19 + $0x68] sm:$0xff] }
 0xf12   : > { %11774 = vmatmul.mubr.msk.f32.vlgmr.msra.gmra.mrb[30].mxu1 %vm1524_vm3, %v11756_v53  ;;  %12978 = vmatprep.subr.bf16.mxu0 %v12977_v55 }
 0xf13   : > { %12960 = vmatpush3.bf16.msra.mxu1 %v14185_v2  ;;  %11792 = vmatprep.mubr.msk.f32.mxu1 %vm1524_vm3, %v4646_v48  ;;  %v10368_v48 = vld [vmem:[%s13883_s19 + $0x40] sm:$0xff] }
 0xf14   : > { %12980 = vmatpush3.bf16.msra.mxu0 %v12977_v55  ;;  %12962 = vmatprep.subr.bf16.mxu1 %v14190_v18  ;;  %v14661_v40 = vpack.c.bf16 %v10369_v49, %v10368_v48  ;;  %v10372_v55 = vld [vmem:[%s13883_s19 + $0x60] sm:$0xff] }
 0xf15   : > { %12982 = vmatprep.subr.bf16.mxu0 %v14159_v54 }
 0xf17   : > { %12964 = vmatpush3.bf16.msra.mxu1 %v14190_v18  ;;  %11812 = vmatmul.mubr.msk.f32.vlgmr.msra.gmra.mrb[48].mxu0 %vm1273_vm0, %v14548_v46 }
 0xf18   : > { %12966 = vmatprep.subr.bf16.mxu1 %v14199_v21  ;;  %12984 = vmatpush3.bf16.msra.mxu0 %v14159_v54 }
 0xf19   : > { %12986 = vmatprep.subr.bf16.mxu0 %v14164_v57 }
 0xf1b   : > { %12968 = vmatpush3.bf16.msra.mxu1 %v14199_v21 }
 0xf1c   : > { %12970 = vmatprep.subr.bf16.mxu1 %v14205_v24  ;;  %12988 = vmatpush3.bf16.msra.mxu0 %v14164_v57 }
 0xf1d   : > { %12990 = vmatprep.subr.bf16.mxu0 %v14172_v60 }
 0xf1f   : > { %12972 = vmatpush3.bf16.msra.mxu1 %v14205_v24 }
 0xf20   : > { %13014 = vmatprep.subr.bf16.mxu1 %v13013_v35  ;;  %12992 = vmatpush3.bf16.msra.mxu0 %v14172_v60 }
 0xf21   : > { %12994 = vmatprep.subr.bf16.mxu0 %v14178_v63 }
 0xf22   : > { %11793 = vmatmul.mubr.msk.f32.vlgmr.msra.gmra.mrb[30].mxu1 %vm1524_vm3, %v4647_v3  ;;  %v6145_v3 = vmul.f32 %v14636_v16, %v6100_v32 }
 0xf23   : > { %13016 = vmatpush3.bf16.msra.mxu1 %v13013_v35  ;;  %11856 = vmatprep.mubr.msk.f32.mxu1 %vm1273_vm0, %v14521_v5 }
 0xf24   : > { %12996 = vmatpush3.bf16.msra.mxu0 %v14178_v63  ;;  %v6149_v50 = vadd.f32 %v6147_v44, %v6145_v3 }
 0xf25   : > { %12998 = vmatprep.subr.bf16.mxu0 %v14185_v2 }
 0xf26   : > { %11857 = vmatmul.mubr.msk.f32.vlgmr.msra.gmra.mrb[32].mxu1 %vm1273_vm0, %v14548_v46 }
 0xf27   : > { %11868 = vmatprep.mubr.msk.f32.mxu1 %vm1273_vm0, %v14521_v5 }
 0xfea   : > { %v11813_v59 = vpop.f32.mrb[48].mxu0 }
 0xfeb   : > { %v5113_v61 = vpop.f32.mrb[49].mxu0 }
 0xfec   : > { %11830 = vmatprep.mubr.msk.f32.mxu0 %vm1524_vm3, %v5113_v61  ;;  %v6113_v61 = vmul.f32 %v14639_v17, %v6100_v32 }
 0xfed   : > { %11831 = vmatmul.mubr.msk.f32.vlgmr.msra.gmra.mrb[50].mxu0 %vm1524_vm3, %v11813_v59  ;;  %v6096_v59 = vmul.f32 0.0, %v14636_v16 }
 0xfee   : > { %13000 = vmatpush3.bf16.msra.mxu0 %v14185_v2  ;;  %11849 = vmatprep.mubr.msk.f32.mxu0 %vm1524_vm3, %v5045_v52 }
 0xfef   : > { %13002 = vmatprep.subr.bf16.mxu0 %v14190_v18 }
 0xff2   : > { %13004 = vmatpush3.bf16.msra.mxu0 %v14190_v18 }
 0xff3   : > { %13006 = vmatprep.subr.bf16.mxu0 %v14199_v21 }
 0xff5   : > { %v11794_v62 = vpop.f32.mrb[30].mxu1 }
 0xff6   : > { %v4886_v0 = vadd.f32 %v11794_v62, %v14221_v10  ;;  %13008 = vmatpush3.bf16.msra.mxu0 %v14199_v21  ;;  %v4876_v1 = vpop.f32.mrb[31].mxu1 }
 0xff7   : > { %v4885_v4 = vadd.f32 %v14221_v10, %v4876_v1  ;;  %13010 = vmatprep.subr.bf16.mxu0 %v14205_v24  ;;  %v6133_v1 = vmul.f32 %v14649_v45, %v14628_v39 }
 0xff8   : > { %6290 = vperm.xlu1 %13765, %v4886_v0   ;;  %v14706_v0 = vpack.c.bf16 %v10375_v25, %v10374_v58  ;;  %v6167_v58 = vmul.f32 %v14636_v16, %v14628_v39 }
 0xff9   : > { %6285 = vperm.xlu0 %13766, %v4885_v4   ;;  %v11858_v6 = vpop.f32.mrb[32].mxu1  ;;  %v6376_v4 = vld [vmem:[%s13883_s19] sm:$0xff] }
 0xffa   : > { %13012 = vmatpush3.bf16.msra.mxu0 %v14205_v24  ;;  %v5352_v36 = vpop.f32.mrb[33].mxu1 }
 0xffb   : > { %11859 = vmatprep.subr.msk.mxu0 %vm1084_vm1, %v13781_v37 }
 0xffd   : > { %11850 = vmatmul.mubr.msk.f32.vlgmr.msra.gmra.mrb[50].mxu0 %vm1524_vm3, %v14536_v11  ;;  %v10371_v11 = vld [vmem:[%s13883_s19 + $0x58] sm:$0xff] }
 0xffe   : > { %11860 = vmatpush3.msk.msra.mxu0 %vm1084_vm1, %v13781_v37  ;;  %11861 = vmatprep.mubr.msk.f32.mxu0 %vm1011_vm2, %v5352_v36  ;;  %v14672_v52 = vpack.c.bf16 %v10371_v11, %v10370_v41  ;;  %v6169_v11 = vmul.f32 %v14639_v17, %v14641_v34 }
 0xfff   : > { %13054 = vmatprep.subr.bf16.mxu0 %v13053_v7 }
0x1001   : > { %11862 = vmatmul.mubr.msk.f32.vlgmr.msra.gmra.mrb[20].mxu0 %vm1011_vm2, %v11858_v6  ;;  %v6377_v6 = vld [vmem:[%s13883_s19 + $0x8] sm:$0xff] }
0x1002   : > { %13056 = vmatpush3.bf16.msra.mxu0 %v13053_v7  ;;  %11913 = vmatprep.mubr.msk.f32.mxu0 %vm1273_vm0, %v14521_v5  ;;  %v14714_v43 = vpack.c.bf16 %v6377_v6, %v6376_v4 }
0x1003   : > { %11916 = vmatprep.subr.msk.mxu0 %vm1084_vm1, %v13781_v37 }
0x1005   : > { %11914 = vmatmul.mubr.msk.f32.vlgmr.msra.gmra.mrb[52].mxu0 %vm1273_vm0, %v14548_v46 }
0x1006   : > { %11917 = vmatpush3.msk.msra.mxu0 %vm1084_vm1, %v13781_v37  ;;  %v6115_v37 = vadd.f32 %v6113_v61, %v6096_v59 }
0x1008   : > { %v6135_v7 = vadd.f32 %v6133_v1, %v6115_v37 }
0x10d0   : > { %v11851_v8 = vpop.f32.mrb[50].mxu0 }
0x10d1   : > { %v5285_v19 = vadd.f32 %v11851_v8, %v14221_v10  ;;  %v5275_v20 = vpop.f32.mrb[51].mxu0  ;;  %v6378_v8 = vld [vmem:[%s13883_s19 + $0x10] sm:$0xff] }
0x10d2   : > { %v5284_v22 = vadd.f32 %v14221_v10, %v5275_v20 }
0x10d3   : > { %6312 = vperm.xlu1 %13765, %v5285_v19   ;;  %v6379_v19 = vld [vmem:[%s13883_s19 + $0x18] sm:$0xff] }
0x10d4   : > { %v11863_v23 = vpop.f32.mrb[20].mxu0  ;;  %6307 = vperm.xlu0 %13766, %v5284_v22   ;;  %v14723_v22 = vpack.c.bf16 %v6379_v19, %v6378_v8 }
0x10d5   : > { %v14603_v27 = vadd.f32 %v13784_v26, %v11863_v23  ;;  %v5433_v9 = vpop.f32.mrb[21].mxu0  ;;  %v6143_v23 = vadd.f32 %v14669_v51, %v6135_v7 }
0x10d6   : > { %v5444_v28 = vadd.f32 %v13784_v26, %v5433_v9  ;;  %v14728_v9 = vpop.permute.xlu0 %6175 }
0x10d7   : > { %v6183_v25 = vmul.f32 %v14649_v45, %v14728_v9 }
0x10d8   : > { %v13017_v29 = vpack.c.bf16 %v14603_v27, %v5444_v28  ;;  %v11915_v30 = vpop.f32.mrb[52].mxu0 }
0x10d9   : > { %v5751_v14 = vpop.f32.mrb[53].mxu0 }
0x10da   : > { %13018 = vmatprep.subr.bf16.mxu1 %v13017_v29  ;;  %11918 = vmatprep.mubr.msk.f32.mxu0 %vm1011_vm2, %v5751_v14 }
0x10db   : > { %13020 = vmatpush3.bf16.msra.mxu1 %v13017_v29  ;;  %11919 = vmatmul.mubr.msk.f32.vlgmr.msra.gmra.mrb[22].mxu0 %vm1011_vm2, %v11915_v30  ;;  %v6382_v29 = vld [vmem:[%s13883_s19 + $0x30] sm:$0xff]  ;;  %v6383_v30 = vld [vmem:[%s13883_s19 + $0x38] sm:$0xff] }
0x10dc   : > { %13022 = vmatprep.subr.bf16.mxu1 %v14159_v54  ;;  %11925 = vmatprep.mubr.msk.f32.mxu0 %vm1273_vm0, %v14521_v5  ;;  %v6163_v5 = vadd.f32 %v6161_v47, %v6149_v50 }
0x10de   : > { %11869 = vmatmul.mubr.msk.f32.vlgmr.msra.gmra.mrb[34].mxu1 %vm1273_vm0, %v14548_v46 }
0x10df   : > { %13024 = vmatpush3.bf16.msra.mxu1 %v14159_v54 }
0x10e0   : > { %13026 = vmatprep.subr.bf16.mxu1 %v14164_v57 }
0x10e3   : > { %13028 = vmatpush3.bf16.msra.mxu1 %v14164_v57 }
0x10e4   : > { %13030 = vmatprep.subr.bf16.mxu1 %v14172_v60 }
0x10e7   : > { %13032 = vmatpush3.bf16.msra.mxu1 %v14172_v60 }
0x10e8   : > { %13034 = vmatprep.subr.bf16.mxu1 %v14178_v63 }
0x10eb   : > { %13036 = vmatpush3.bf16.msra.mxu1 %v14178_v63 }
0x10ec   : > { %13038 = vmatprep.subr.bf16.mxu1 %v14185_v2 }
0x11ae   : > { %v11920_v10 = vpop.f32.mrb[22].mxu0 }
0x11af   : > { %v14621_v15 = vadd.f32 %v13784_v26, %v11920_v10  ;;  %v5832_v31 = vpop.f32.mrb[23].mxu0  ;;  %v14740_v10 = vpop.permute.xlu0 %6197 }
0x11b0   : > { %v14623_v33 = vadd.f32 %v13784_v26, %v5832_v31  ;;  %v6380_v26 = vld [vmem:[%s13883_s19 + $0x20] sm:$0xff]  ;;  %v6191_v31 = vmul.f32 %v14639_v17, %v14728_v9 }
0x11b1   : > { %v11870_v12 = vpop.f32.mrb[34].mxu1 }
0x11b2   : > { %v13057_v13 = vpack.c.bf16 %v14621_v15, %v14623_v33  ;;  %v5512_v38 = vpop.f32.mrb[35].mxu1 }
0x11b3   : > { %11887 = vmatprep.mubr.msk.f32.mxu1 %vm1524_vm3, %v5512_v38  ;;  %v6205_v38 = vmul.f32 %v14649_v45, %v14740_v10 }
0x11b4   : > { %11888 = vmatmul.mubr.msk.f32.vlgmr.msra.gmra.mrb[36].mxu1 %vm1524_vm3, %v11870_v12  ;;  %13058 = vmatprep.subr.bf16.mxu0 %v13057_v13  ;;  %v14748_v12 = vpack.c.bf16 %v6383_v30, %v6382_v29 }
0x11b5   : > { %13040 = vmatpush3.bf16.msra.mxu1 %v14185_v2  ;;  %11906 = vmatprep.mubr.msk.f32.mxu1 %vm1524_vm3, %v5444_v28 }
0x11b6   : > { %13060 = vmatpush3.bf16.msra.mxu0 %v13057_v13  ;;  %13042 = vmatprep.subr.bf16.mxu1 %v14190_v18  ;;  %v6189_v13 = vmul.f32 %v14636_v16, %v14641_v34 }
0x11b7   : > { %13062 = vmatprep.subr.bf16.mxu0 %v14159_v54 }
0x11b8   : > { %v6193_v3 = vadd.f32 %v6191_v31, %v6189_v13  ;;  %v6211_v13 = vmul.f32 %v14636_v16, %v14728_v9 }
0x11b9   : > { %13044 = vmatpush3.bf16.msra.mxu1 %v14190_v18  ;;  %11926 = vmatmul.mubr.msk.f32.vlgmr.msra.gmra.mrb[54].mxu0 %vm1273_vm0, %v14548_v46 }
0x11ba   : > { %13046 = vmatprep.subr.bf16.mxu1 %v14199_v21  ;;  %13064 = vmatpush3.bf16.msra.mxu0 %v14159_v54  ;;  %v6105_v54 = vpop.permute.xlu1 %6104  ;;  %v6207_v48 = vadd.f32 %v6205_v38, %v6193_v3 }
0x11bb   : > { %13066 = vmatprep.subr.bf16.mxu0 %v14164_v57  ;;  %v6146_v62 = vmul.f32 %v14636_v16, %v6105_v54  ;;  %v6114_v14 = vmul.f32 %v14639_v17, %v6105_v54 }
0x11bc   : > { %v14762_v54 = vadd.f32 %v14669_v51, %v6207_v48 }
0x11bd   : > { %13048 = vmatpush3.bf16.msra.mxu1 %v14199_v21  ;;  %v6116_v44 = vadd.f32 %v6114_v14, %v6096_v59  ;;  %v6171_v59 = vadd.f32 %v6169_v11, %v6167_v58  ;;  %v6213_v14 = vmul.f32 %v14639_v17, %v14740_v10 }
0x11be   : > { %13050 = vmatprep.subr.bf16.mxu1 %v14205_v24  ;;  %13068 = vmatpush3.bf16.msra.mxu0 %v14164_v57  ;;  %v14675_v53 = vpop.permute.xlu1 %6124  ;;  %v14678_v57 = vadd.f32 %v14669_v51, %v6163_v5 }
0x11bf   : > { %13070 = vmatprep.subr.bf16.mxu0 %v14172_v60  ;;  %v6148_v35 = vmul.f32 %v14639_v17, %v14675_v53  ;;  %v6134_v32 = vmul.f32 %v14649_v45, %v14675_v53  ;;  %v6185_v61 = vadd.f32 %v6183_v25, %v6171_v59  ;;  %v6215_v3 = vadd.f32 %v6213_v14, %v6211_v13 }
0x11c1   : > { %13052 = vmatpush3.bf16.msra.mxu1 %v14205_v24  ;;  %v6150_v36 = vadd.f32 %v6148_v35, %v6146_v62  ;;  %v6136_v47 = vadd.f32 %v6134_v32, %v6116_v44  ;;  %v14793_v39 = vadd.f32 %v14669_v51, %v6185_v61 }
0x11c2   : > { %13094 = vmatprep.subr.bf16.mxu1 %v14661_v40  ;;  %13072 = vmatpush3.bf16.msra.mxu0 %v14172_v60  ;;  %v14689_v60 = vpack.c.bf16 %v10373_v56, %v10372_v55  ;;  %v14692_v46 = vpop.permute.xlu1 %6158 }
0x11c3   : > { %13074 = vmatprep.subr.bf16.mxu0 %v14178_v63  ;;  %v6144_v49 = vadd.f32 %v14669_v51, %v6136_v47  ;;  %v6190_v55 = vmul.f32 %v14636_v16, %v14692_v46  ;;  %v6170_v1 = vmul.f32 %v14639_v17, %v14692_v46 }
0x11c4   : > { %11907 = vmatmul.mubr.msk.f32.vlgmr.msra.gmra.mrb[36].mxu1 %vm1524_vm3, %v14603_v27  ;;  %v6381_v27 = vld [vmem:[%s13883_s19 + $0x28] sm:$0xff] }
0x11c5   : > { %13096 = vmatpush3.bf16.msra.mxu1 %v14661_v40  ;;  %11982 = vmatprep.mubr.msk.f32.mxu1 %vm1524_vm3, %v14678_v57  ;;  %v14735_v28 = vpack.c.bf16 %v6381_v27, %v6380_v26 }
0x11c6   : > { %13098 = vmatprep.subr.bf16.mxu1 %v14672_v52  ;;  %13076 = vmatpush3.bf16.msra.mxu0 %v14178_v63  ;;  %v6162_v63 = vmul.f32 %v14649_v45, %v14692_v46  ;;  %v14759_v50 = vpop.permute.xlu1 %6180 }
0x11c7   : > { %13078 = vmatprep.subr.bf16.mxu0 %v14185_v2  ;;  %v6192_v41 = vmul.f32 %v14639_v17, %v14759_v50  ;;  %v6184_v37 = vmul.f32 %v14649_v45, %v14759_v50 }
0x11c8   : > { %v6164_v42 = vadd.f32 %v6162_v63, %v6150_v36  ;;  %v14795_v63 = vpop.permute.xlu0 %6219  ;;  %v6168_v36 = vmul.f32 %v14636_v16, %v14675_v53 }
0x11c9   : > { %13100 = vmatpush3.bf16.msra.mxu1 %v14672_v52  ;;  %v6194_v35 = vadd.f32 %v6192_v41, %v6190_v55  ;;  %v6235_v6 = vmul.f32 %v14639_v17, %v14795_v63  ;;  %v6227_v38 = vmul.f32 %v14649_v45, %v14795_v63 }
0x11ca   : > { %13102 = vmatprep.subr.bf16.mxu1 %v14689_v60  ;;  %v14720_v20 = vadd.f32 %v14669_v51, %v6164_v42  ;;  %v14769_v5 = vpop.permute.xlu1 %6202  ;;  %v6233_v42 = vmul.f32 %v14636_v16, %v14740_v10  ;;  %v6172_v7 = vadd.f32 %v6170_v1, %v6168_v36 }
0x11cb   : > { %v6206_v56 = vmul.f32 %v14649_v45, %v14769_v5  ;;  %v6234_v31 = vmul.f32 %v14636_v16, %v14769_v5  ;;  %v6229_v47 = vadd.f32 %v6227_v38, %v6215_v3  ;;  %v6214_v41 = vmul.f32 %v14639_v17, %v14769_v5 }
0x11cc   : > { %v14805_v4 = vpop.permute.xlu0 %6241  ;;  %v6237_v8 = vadd.f32 %v6235_v6, %v6233_v42  ;;  %v6186_v19 = vadd.f32 %v6184_v37, %v6172_v7 }
0x11cd   : > { %13104 = vmatpush3.bf16.msra.mxu1 %v14689_v60  ;;  %v6208_v34 = vadd.f32 %v6206_v56, %v6194_v35  ;;  %v6249_v46 = vmul.f32 %v14649_v45, %v14805_v4  ;;  %v14861_v9 = vadd.f32 %v14669_v51, %v6229_v47  ;;  %v6212_v56 = vmul.f32 %v14636_v16, %v14759_v50 }
0x11ce   : > { %13106 = vmatprep.subr.bf16.mxu1 %v14706_v0  ;;  %v14823_v53 = vadd.f32 %v14669_v51, %v6186_v19  ;;  %v14826_v26 = vpop.permute.xlu1 %6224  ;;  %v6277_v25 = vmul.f32 %v14636_v16, %v14805_v4  ;;  %v6257_v42 = vmul.f32 %v14639_v17, %v14805_v4 }
0x11cf   : > { %v14789_v62 = vadd.f32 %v14669_v51, %v6208_v34  ;;  %v6236_v30 = vmul.f32 %v14639_v17, %v14826_v26  ;;  %v6228_v58 = vmul.f32 %v14649_v45, %v14826_v26  ;;  %v6216_v35 = vadd.f32 %v6214_v41, %v6212_v56  ;;  %v14970_v41 = vld [vmem:[#allocation3] ss:$0 sm:$0xff] }
0x11d0   : > { %v6256_v13 = vmul.f32 %v14636_v16, %v14826_v26 }
0x11d1   : > { %13108 = vmatpush3.bf16.msra.mxu1 %v14706_v0  ;;  %v6238_v44 = vadd.f32 %v6236_v30, %v6234_v31  ;;  %v6230_v34 = vadd.f32 %v6228_v58, %v6216_v35 }
0x11d2   : > { %13110 = vmatprep.subr.bf16.mxu1 %v14714_v43  ;;  %v14837_v29 = vpop.permute.xlu1 %6246 }
0x11d3   : > { %v6250_v32 = vmul.f32 %v14649_v45, %v14837_v29  ;;  %v14891_v50 = vadd.f32 %v14669_v51, %v6230_v34 }
0x11d4   : > { %11983 = vmatmul.mubr.msk.f32.vlgmr.msra.gmra.mrb[38].mxu1 %vm1524_vm3, %v14720_v20 }
0x11d5   : > { %13112 = vmatpush3.bf16.msra.mxu1 %v14714_v43  ;;  %12001 = vmatprep.mubr.msk.f32.mxu1 %vm1524_vm3, %v6143_v23  ;;  %v6251_v23 = vadd.f32 %v6249_v46, %v6237_v8  ;;  %v6252_v10 = vadd.f32 %v6250_v32, %v6238_v44  ;;  %v6278_v46 = vmul.f32 %v14636_v16, %v14837_v29 }
0x11d6   : > { %13114 = vmatprep.subr.bf16.mxu1 %v14723_v22  ;;  %v14894_v1 = vpop.permute.xlu1 %6268  ;;  %v6255_v8 = vmul.f32 %v14636_v16, %v14795_v63  ;;  %v6258_v32 = vmul.f32 %v14639_v17, %v14837_v29 }
0x11d7   : > { %v14829_v27 = vadd.f32 %v14669_v51, %v6251_v23  ;;  %v14857_v48 = vadd.f32 %v14669_v51, %v6252_v10  ;;  %v6280_v37 = vmul.f32 %v14639_v17, %v14894_v1  ;;  %v6272_v38 = vmul.f32 %v14649_v45, %v14894_v1 }
0x11d8   : > { %v6259_v30 = vadd.f32 %v6257_v42, %v6255_v8  ;;  %v6260_v44 = vadd.f32 %v6258_v32, %v6256_v13 }
0x11d9   : > { %13116 = vmatpush3.bf16.msra.mxu1 %v14723_v22  ;;  %v6282_v23 = vadd.f32 %v6280_v37, %v6278_v46 }
0x11da   : > { %13118 = vmatprep.subr.bf16.mxu1 %v14735_v28  ;;  %v14905_v36 = vpop.permute.xlu1 %6290  ;;  %v6274_v3 = vadd.f32 %v6272_v38, %v6260_v44 }
0x11db   : > { %v6294_v7 = vmul.f32 %v14649_v45, %v14905_v36 }
0x11dc   : > { %v14949_v29 = vadd.f32 %v14669_v51, %v6274_v3 }
0x11dd   : > { %13120 = vmatpush3.bf16.msra.mxu1 %v14735_v28  ;;  %v6296_v4 = vadd.f32 %v6294_v7, %v6282_v23 }
0x11de   : > { %13122 = vmatprep.subr.bf16.mxu1 %v14748_v12 }
0x11df   : > { %v14925_v31 = vadd.f32 %v14669_v51, %v6296_v4 }
0x11e1   : > { %13124 = vmatpush3.bf16.msra.mxu1 %v14748_v12 }
0x11e2   : > { %13158 = vmatprep.subr.bf16.mxu1 %v14661_v40 }
0x11e4   : > { %12002 = vmatmul.mubr.msk.f32.vlgmr.msra.gmra.mrb[38].mxu1 %vm1524_vm3, %v6144_v49  ;;  %v14863_v49 = vpop.permute.xlu0 %6263 }
0x11e5   : > { %13160 = vmatpush3.bf16.msra.mxu1 %v14661_v40  ;;  %12058 = vmatprep.mubr.msk.f32.mxu1 %vm1524_vm3, %v14762_v54  ;;  %v6279_v55 = vmul.f32 %v14639_v17, %v14863_v49  ;;  %v6271_v19 = vmul.f32 %v14649_v45, %v14863_v49 }
0x11e6   : > { %13162 = vmatprep.subr.bf16.mxu1 %v14672_v52 }
0x11e7   : > { %v6281_v59 = vadd.f32 %v6279_v55, %v6277_v25  ;;  %v6273_v14 = vadd.f32 %v6271_v19, %v6259_v30  ;;  %v6300_v25 = vmul.f32 %v14636_v16, %v14894_v1  ;;  %v6322_v1 = vmul.f32 %v14636_v16, %v14905_v36 }
0x11e8   : > { %v14873_v11 = vpop.permute.xlu0 %6285 }
0x11e9   : > { %13164 = vmatpush3.bf16.msra.mxu1 %v14672_v52  ;;  %v6293_v5 = vmul.f32 %v14649_v45, %v14873_v11  ;;  %v14929_v63 = vadd.f32 %v14669_v51, %v6273_v14  ;;  %v6321_v37 = vmul.f32 %v14636_v16, %v14873_v11 }
0x11ea   : > { %13166 = vmatprep.subr.bf16.mxu1 %v14689_v60 }
0x11eb   : > { %v6295_v61 = vadd.f32 %v6293_v5, %v6281_v59 }
0x11ed   : > { %13168 = vmatpush3.bf16.msra.mxu1 %v14689_v60  ;;  %v14897_v6 = vadd.f32 %v14669_v51, %v6295_v61 }
0x11ee   : > { %13170 = vmatprep.subr.bf16.mxu1 %v14706_v0 }
0x11f1   : > { %13172 = vmatpush3.bf16.msra.mxu1 %v14706_v0 }
0x11f2   : > { %13174 = vmatprep.subr.bf16.mxu1 %v14714_v43 }
0x11f4   : > { %12059 = vmatmul.mubr.msk.f32.vlgmr.msra.gmra.mrb[40].mxu1 %vm1524_vm3, %v14789_v62 }
0x11f5   : > { %13176 = vmatpush3.bf16.msra.mxu1 %v14714_v43  ;;  %12077 = vmatprep.mubr.msk.f32.mxu1 %vm1524_vm3, %v14793_v39 }
0x11f6   : > { %13178 = vmatprep.subr.bf16.mxu1 %v14723_v22 }
0x11f9   : > { %13180 = vmatpush3.bf16.msra.mxu1 %v14723_v22 }
0x11fa   : > { %13182 = vmatprep.subr.bf16.mxu1 %v14735_v28 }
0x11fd   : > { %13184 = vmatpush3.bf16.msra.mxu1 %v14735_v28 }
0x11fe   : > { %13186 = vmatprep.subr.bf16.mxu1 %v14748_v12 }
0x1201   : > { %13188 = vmatpush3.bf16.msra.mxu1 %v14748_v12 }
0x1202   : > { %13222 = vmatprep.subr.bf16.mxu1 %v14661_v40 }
0x1204   : > { %12078 = vmatmul.mubr.msk.f32.vlgmr.msra.gmra.mrb[40].mxu1 %vm1524_vm3, %v14823_v53 }
0x1205   : > { %13224 = vmatpush3.bf16.msra.mxu1 %v14661_v40  ;;  %12134 = vmatprep.mubr.msk.f32.mxu1 %vm1524_vm3, %v14829_v27 }
0x1206   : > { %13226 = vmatprep.subr.bf16.mxu1 %v14672_v52 }
0x1209   : > { %13228 = vmatpush3.bf16.msra.mxu1 %v14672_v52 }
0x120a   : > { %13230 = vmatprep.subr.bf16.mxu1 %v14689_v60 }
0x120d   : > { %13232 = vmatpush3.bf16.msra.mxu1 %v14689_v60 }
0x120e   : > { %13234 = vmatprep.subr.bf16.mxu1 %v14706_v0 }
0x1211   : > { %13236 = vmatpush3.bf16.msra.mxu1 %v14706_v0 }
0x1212   : > { %13238 = vmatprep.subr.bf16.mxu1 %v14714_v43 }
0x1214   : > { %12135 = vmatmul.mubr.msk.f32.vlgmr.msra.gmra.mrb[42].mxu1 %vm1524_vm3, %v14857_v48 }
0x1215   : > { %13240 = vmatpush3.bf16.msra.mxu1 %v14714_v43  ;;  %12153 = vmatprep.mubr.msk.f32.mxu1 %vm1524_vm3, %v14861_v9 }
0x1216   : > { %13242 = vmatprep.subr.bf16.mxu1 %v14723_v22 }
0x1219   : > { %13244 = vmatpush3.bf16.msra.mxu1 %v14723_v22 }
0x121a   : > { %13246 = vmatprep.subr.bf16.mxu1 %v14735_v28 }
0x121d   : > { %13248 = vmatpush3.bf16.msra.mxu1 %v14735_v28 }
0x121e   : > { %13250 = vmatprep.subr.bf16.mxu1 %v14748_v12 }
0x1221   : > { %13252 = vmatpush3.bf16.msra.mxu1 %v14748_v12 }
0x1222   : > { %13286 = vmatprep.subr.bf16.mxu1 %v14661_v40 }
0x1224   : > { %12154 = vmatmul.mubr.msk.f32.vlgmr.msra.gmra.mrb[42].mxu1 %vm1524_vm3, %v14891_v50 }
0x1225   : > { %13288 = vmatpush3.bf16.msra.mxu1 %v14661_v40  ;;  %12210 = vmatprep.mubr.msk.f32.mxu1 %vm1524_vm3, %v14897_v6 }
0x1226   : > { %13290 = vmatprep.subr.bf16.mxu1 %v14672_v52 }
0x1229   : > { %13292 = vmatpush3.bf16.msra.mxu1 %v14672_v52 }
0x122a   : > { %13294 = vmatprep.subr.bf16.mxu1 %v14689_v60 }
0x122d   : > { %13296 = vmatpush3.bf16.msra.mxu1 %v14689_v60 }
0x122e   : > { %13298 = vmatprep.subr.bf16.mxu1 %v14706_v0 }
0x1231   : > { %13300 = vmatpush3.bf16.msra.mxu1 %v14706_v0 }
0x1232   : > { %13302 = vmatprep.subr.bf16.mxu1 %v14714_v43 }
0x1234   : > { %12211 = vmatmul.mubr.msk.f32.vlgmr.msra.gmra.mrb[44].mxu1 %vm1524_vm3, %v14925_v31 }
0x1235   : > { %13304 = vmatpush3.bf16.msra.mxu1 %v14714_v43  ;;  %12229 = vmatprep.mubr.msk.f32.mxu1 %vm1524_vm3, %v14929_v63 }
0x1236   : > { %13306 = vmatprep.subr.bf16.mxu1 %v14723_v22 }
0x1239   : > { %13308 = vmatpush3.bf16.msra.mxu1 %v14723_v22 }
0x123a   : > { %13310 = vmatprep.subr.bf16.mxu1 %v14735_v28 }
0x123d   : > { %13312 = vmatpush3.bf16.msra.mxu1 %v14735_v28 }
0x123e   : > { %13314 = vmatprep.subr.bf16.mxu1 %v14748_v12 }
0x1241   : > { %13316 = vmatpush3.bf16.msra.mxu1 %v14748_v12 }
0x1242   : > { %13350 = vmatprep.subr.bf16.mxu1 %v14661_v40 }
0x1244   : > { %12230 = vmatmul.mubr.msk.f32.vlgmr.msra.gmra.mrb[44].mxu1 %vm1524_vm3, %v14949_v29 }
0x1245   : > { %13352 = vmatpush3.bf16.msra.mxu1 %v14661_v40 }
0x1246   : > { %13354 = vmatprep.subr.bf16.mxu1 %v14672_v52 }
0x1249   : > { %13356 = vmatpush3.bf16.msra.mxu1 %v14672_v52 }
0x124a   : > { %13358 = vmatprep.subr.bf16.mxu1 %v14689_v60 }
0x124d   : > { %13360 = vmatpush3.bf16.msra.mxu1 %v14689_v60 }
0x124e   : > { %13362 = vmatprep.subr.bf16.mxu1 %v14706_v0 }
0x1251   : > { %13364 = vmatpush3.bf16.msra.mxu1 %v14706_v0 }
0x1252   : > { %13366 = vmatprep.subr.bf16.mxu1 %v14714_v43 }
0x128c   : > { %v11927_v26 = vpop.f32.mrb[54].mxu0 }
0x128d   : > { %v5911_v10 = vpop.f32.mrb[55].mxu0 }
0x128e   : > { %11944 = vmatprep.mubr.msk.f32.mxu0 %vm1524_vm3, %v5911_v10 }
0x128f   : > { %11945 = vmatmul.mubr.msk.f32.vlgmr.msra.gmra.mrb[56].mxu0 %vm1524_vm3, %v11927_v26 }
0x1290   : > { %13080 = vmatpush3.bf16.msra.mxu0 %v14185_v2  ;;  %11963 = vmatprep.mubr.msk.f32.mxu0 %vm1524_vm3, %v14623_v33  ;;  %v6301_v33 = vmul.f32 %v14639_v17, %v14873_v11 }
0x1291   : > { %13082 = vmatprep.subr.bf16.mxu0 %v14190_v18 }
0x1294   : > { %13084 = vmatpush3.bf16.msra.mxu0 %v14190_v18 }
0x1295   : > { %13086 = vmatprep.subr.bf16.mxu0 %v14199_v21 }
0x1297   : > { %v11908_v47 = vpop.f32.mrb[36].mxu1 }
0x1298   : > { %v5684_v55 = vadd.f32 %v14970_v41, %v11908_v47  ;;  %13088 = vmatpush3.bf16.msra.mxu0 %v14199_v21  ;;  %v5674_v56 = vpop.f32.mrb[37].mxu1 }
0x1299   : > { %v5683_v58 = vadd.f32 %v14970_v41, %v5674_v56  ;;  %13090 = vmatprep.subr.bf16.mxu0 %v14205_v24 }
0x129a   : > { %6334 = vperm.xlu1 %13765, %v5684_v55  }
0x129b   : > { %6329 = vperm.xlu0 %13766, %v5683_v58  }
0x129c   : > { %13092 = vmatpush3.bf16.msra.mxu0 %v14205_v24 }
0x129d   : > { %13126 = vmatprep.subr.bf16.mxu0 %v14661_v40 }
0x129f   : > { %11964 = vmatmul.mubr.msk.f32.vlgmr.msra.gmra.mrb[56].mxu0 %vm1524_vm3, %v14621_v15  ;;  %v15052_v15 = vpop.permute.xlu0 %6307 }
0x12a0   : > { %13128 = vmatpush3.bf16.msra.mxu0 %v14661_v40  ;;  %12020 = vmatprep.mubr.msk.f32.mxu0 %vm1524_vm3, %v14793_v39  ;;  %v6323_v61 = vmul.f32 %v14639_v17, %v15052_v15  ;;  %v6343_v47 = vmul.f32 %v14636_v16, %v15052_v15 }
0x12a1   : > { %13130 = vmatprep.subr.bf16.mxu0 %v14672_v52 }
0x12a2   : > { %v6325_v19 = vadd.f32 %v6323_v61, %v6321_v37 }
0x12a4   : > { %13132 = vmatpush3.bf16.msra.mxu0 %v14672_v52 }
0x12a5   : > { %13134 = vmatprep.subr.bf16.mxu0 %v14689_v60 }
0x12a8   : > { %13136 = vmatpush3.bf16.msra.mxu0 %v14689_v60 }
0x12a9   : > { %13138 = vmatprep.subr.bf16.mxu0 %v14706_v0 }
0x12ac   : > { %13140 = vmatpush3.bf16.msra.mxu0 %v14706_v0 }
0x12ad   : > { %13142 = vmatprep.subr.bf16.mxu0 %v14714_v43 }
0x12af   : > { %12021 = vmatmul.mubr.msk.f32.vlgmr.msra.gmra.mrb[58].mxu0 %vm1524_vm3, %v14823_v53 }
0x12b0   : > { %13144 = vmatpush3.bf16.msra.mxu0 %v14714_v43  ;;  %12039 = vmatprep.mubr.msk.f32.mxu0 %vm1524_vm3, %v14678_v57  ;;  %v6299_v57 = vmul.f32 %v14636_v16, %v14863_v49  ;;  %v6302_v49 = vmul.f32 %v14639_v17, %v14905_v36 }
0x12b1   : > { %13146 = vmatprep.subr.bf16.mxu0 %v14723_v22 }
0x12b4   : > { %13148 = vmatpush3.bf16.msra.mxu0 %v14723_v22 }
0x12b5   : > { %13150 = vmatprep.subr.bf16.mxu0 %v14735_v28 }
0x12b7   : > { %v14998_v2 = vpop.f32.mrb[38].mxu1 }
0x12b8   : > { %13152 = vmatpush3.bf16.msra.mxu0 %v14735_v28  ;;  %v15001_v18 = vpop.f32.mrb[39].mxu1 }
0x12b9   : > { %13154 = vmatprep.subr.bf16.mxu0 %v14748_v12 }
0x12bc   : > { %13156 = vmatpush3.bf16.msra.mxu0 %v14748_v12 }
0x12bd   : > { %13190 = vmatprep.subr.bf16.mxu0 %v14661_v40 }
0x12bf   : > { %12040 = vmatmul.mubr.msk.f32.vlgmr.msra.gmra.mrb[58].mxu0 %vm1524_vm3, %v14720_v20  ;;  %v6315_v20 = vmul.f32 %v14649_v45, %v15052_v15 }
0x12c0   : > { %13192 = vmatpush3.bf16.msra.mxu0 %v14661_v40  ;;  %12096 = vmatprep.mubr.msk.f32.mxu0 %vm1524_vm3, %v14861_v9  ;;  %v15076_v9 = vpop.permute.xlu1 %6312 }
0x12c1   : > { %13194 = vmatprep.subr.bf16.mxu0 %v14672_v52  ;;  %v6316_v5 = vmul.f32 %v14649_v45, %v15076_v9  ;;  %v6324_v34 = vmul.f32 %v14639_v17, %v15076_v9  ;;  %v6344_v26 = vmul.f32 %v14636_v16, %v15076_v9 }
0x12c3   : > { %v6326_v46 = vadd.f32 %v6324_v34, %v6322_v1 }
0x12c4   : > { %13196 = vmatpush3.bf16.msra.mxu0 %v14672_v52 }
0x12c5   : > { %13198 = vmatprep.subr.bf16.mxu0 %v14689_v60 }
0x12c8   : > { %13200 = vmatpush3.bf16.msra.mxu0 %v14689_v60 }
0x12c9   : > { %13202 = vmatprep.subr.bf16.mxu0 %v14706_v0 }
0x12cc   : > { %13204 = vmatpush3.bf16.msra.mxu0 %v14706_v0 }
0x12cd   : > { %13206 = vmatprep.subr.bf16.mxu0 %v14714_v43 }
0x12cf   : > { %12097 = vmatmul.mubr.msk.f32.vlgmr.msra.gmra.mrb[60].mxu0 %vm1524_vm3, %v14891_v50 }
0x12d0   : > { %13208 = vmatpush3.bf16.msra.mxu0 %v14714_v43  ;;  %12115 = vmatprep.mubr.msk.f32.mxu0 %vm1524_vm3, %v14762_v54 }
0x12d1   : > { %13210 = vmatprep.subr.bf16.mxu0 %v14723_v22 }
0x12d4   : > { %13212 = vmatpush3.bf16.msra.mxu0 %v14723_v22 }
0x12d5   : > { %13214 = vmatprep.subr.bf16.mxu0 %v14735_v28 }
0x12d7   : > { %v15026_v21 = vpop.f32.mrb[40].mxu1 }
0x12d8   : > { %13216 = vmatpush3.bf16.msra.mxu0 %v14735_v28  ;;  %v15029_v24 = vpop.f32.mrb[41].mxu1 }
0x12d9   : > { %13218 = vmatprep.subr.bf16.mxu0 %v14748_v12 }
0x12dc   : > { %13220 = vmatpush3.bf16.msra.mxu0 %v14748_v12 }
0x12dd   : > { %13254 = vmatprep.subr.bf16.mxu0 %v14661_v40 }
0x12df   : > { %12116 = vmatmul.mubr.msk.f32.vlgmr.msra.gmra.mrb[60].mxu0 %vm1524_vm3, %v14789_v62  ;;  %v6303_v62 = vadd.f32 %v6301_v33, %v6299_v57 }
0x12e0   : > { %13256 = vmatpush3.bf16.msra.mxu0 %v14661_v40  ;;  %12172 = vmatprep.mubr.msk.f32.mxu0 %vm1524_vm3, %v14929_v63 }
0x12e1   : > { %13258 = vmatprep.subr.bf16.mxu0 %v14672_v52  ;;  %v6317_v53 = vadd.f32 %v6315_v20, %v6303_v62 }
0x12e4   : > { %13260 = vmatpush3.bf16.msra.mxu0 %v14672_v52 }
0x12e5   : > { %13262 = vmatprep.subr.bf16.mxu0 %v14689_v60 }
0x12e8   : > { %13264 = vmatpush3.bf16.msra.mxu0 %v14689_v60 }
0x12e9   : > { %13266 = vmatprep.subr.bf16.mxu0 %v14706_v0 }
0x12ec   : > { %13268 = vmatpush3.bf16.msra.mxu0 %v14706_v0 }
0x12ed   : > { %13270 = vmatprep.subr.bf16.mxu0 %v14714_v43 }
0x12ef   : > { %12173 = vmatmul.mubr.msk.f32.vlgmr.msra.gmra.mrb[62].mxu0 %vm1524_vm3, %v14949_v29 }
0x12f0   : > { %13272 = vmatpush3.bf16.msra.mxu0 %v14714_v43  ;;  %12191 = vmatprep.mubr.msk.f32.mxu0 %vm1524_vm3, %v14829_v27  ;;  %v6319_v27 = vadd.f32 %v14669_v51, %v6317_v53  ;;  %v6371_v53 = vmul.f32 0.0, %v14649_v45 }
0x12f1   : > { %13274 = vmatprep.subr.bf16.mxu0 %v14723_v22 }
0x12f4   : > { %13276 = vmatpush3.bf16.msra.mxu0 %v14723_v22 }
0x12f5   : > { %13278 = vmatprep.subr.bf16.mxu0 %v14735_v28 }
0x12f7   : > { %v15062_v54 = vpop.f32.mrb[42].mxu1 }
0x12f8   : > { %13280 = vmatpush3.bf16.msra.mxu0 %v14735_v28  ;;  %v15065_v39 = vpop.f32.mrb[43].mxu1 }
0x12f9   : > { %13282 = vmatprep.subr.bf16.mxu0 %v14748_v12 }
0x12fc   : > { %13284 = vmatpush3.bf16.msra.mxu0 %v14748_v12 }
0x12fd   : > { %13318 = vmatprep.subr.bf16.mxu0 %v14661_v40 }
0x12ff   : > { %12192 = vmatmul.mubr.msk.f32.vlgmr.msra.gmra.mrb[62].mxu0 %vm1524_vm3, %v14857_v48  ;;  %v6304_v48 = vadd.f32 %v6302_v49, %v6300_v25 }
0x1300   : > { %13320 = vmatpush3.bf16.msra.mxu0 %v14661_v40  ;;  %12248 = vmatprep.mubr.msk.f32.mxu0 %vm1524_vm3, %v6319_v27 }
0x1301   : > { %13322 = vmatprep.subr.bf16.mxu0 %v14672_v52  ;;  %v6318_v35 = vadd.f32 %v6316_v5, %v6304_v48 }
0x1303   : > { %v6320_v59 = vadd.f32 %v14669_v51, %v6318_v35 }
0x1304   : > { %13324 = vmatpush3.bf16.msra.mxu0 %v14672_v52 }
0x1305   : > { %13326 = vmatprep.subr.bf16.mxu0 %v14689_v60 }
0x1308   : > { %13328 = vmatpush3.bf16.msra.mxu0 %v14689_v60 }
0x1309   : > { %13330 = vmatprep.subr.bf16.mxu0 %v14706_v0 }
0x130c   : > { %13332 = vmatpush3.bf16.msra.mxu0 %v14706_v0 }
0x130d   : > { %13334 = vmatprep.subr.bf16.mxu0 %v14714_v43 }
0x130f   : > { %12249 = vmatmul.mubr.msk.f32.vlgmr.msra.gmra.mrb[64].mxu0 %vm1524_vm3, %v6320_v59 }
0x1310   : > { %13336 = vmatpush3.bf16.msra.mxu0 %v14714_v43  ;;  %12267 = vmatprep.mubr.msk.f32.mxu0 %vm1524_vm3, %v14897_v6 }
0x1311   : > { %13338 = vmatprep.subr.bf16.mxu0 %v14723_v22 }
0x1314   : > { %13340 = vmatpush3.bf16.msra.mxu0 %v14723_v22 }
0x1315   : > { %13342 = vmatprep.subr.bf16.mxu0 %v14735_v28 }
0x1317   : > { %v15102_v50 = vpop.f32.mrb[44].mxu1 }
0x1318   : > { %13344 = vmatpush3.bf16.msra.mxu0 %v14735_v28  ;;  %v15107_v6 = vpop.f32.mrb[45].mxu1 }
0x1319   : > { %v6335_v42 = vpop.permute.xlu1 %6334  ;;  %13346 = vmatprep.subr.bf16.mxu0 %v14748_v12 }
0x131a   : > { %v6338_v7 = vmul.f32 %v14649_v45, %v6335_v42  ;;  %v6330_v8 = vpop.permute.xlu0 %6329  ;;  %v6346_v44 = vmul.f32 %v14639_v17, %v6335_v42 }
0x131b   : > { %v6337_v23 = vmul.f32 %v14649_v45, %v6330_v8  ;;  %v6345_v3 = vmul.f32 %v14639_v17, %v6330_v8  ;;  %v6365_v58 = vmul.f32 %v14636_v16, %v6330_v8 }
0x131c   : > { %v6340_v30 = vadd.f32 %v6338_v7, %v6326_v46  ;;  %13348 = vmatpush3.bf16.msra.mxu0 %v14748_v12  ;;  %v6348_v56 = vadd.f32 %v6346_v44, %v6344_v26  ;;  %v15222_v46 = vld [vmem:[%s13888_s23] ss:$0 sm:$0xff]  ;;  %v10450_v26 = vld [vmem:[%s13893_s28 + $0x68] sm:$0x7] }
0x131d   : > { %v6339_v36 = vadd.f32 %v6337_v23, %v6325_v19  ;;  %13382 = vmatprep.subr.bf16.mxu0 %v14661_v40  ;;  %v6347_v62 = vadd.f32 %v6345_v3, %v6343_v47  ;;  %v10429_v19 = vld [vmem:[%s13893_s28 + $0x20] sm:$0xff]  ;;  %v10430_v23 = vld [vmem:[%s13893_s28 + $0x28] sm:$0x7] }
0x131e   : > { %v15122_v4 = vadd.f32 %v14669_v51, %v6340_v30  ;;  %v13457_v30 = vpack.c.bf16 %v10430_v23, %v10429_v19  ;;  %v10449_v3 = vld [vmem:[%s13893_s28 + $0x60] sm:$0xff]  ;;  %v9136_v19 = vld [vmem:[%s13903_s11 + $0x38] sm:$0xff] }
0x131f   : > { %12268 = vmatmul.mubr.msk.f32.vlgmr.msra.gmra.mrb[64].mxu0 %vm1524_vm3, %v14925_v31  ;;  %v15119_v11 = vadd.f32 %v14669_v51, %v6339_v36  ;;  %v6562_v36 = vadd.f32 %v15222_v46, %v15001_v18  ;;  %v13481_v47 = vpack.c.bf16 %v10450_v26, %v10449_v3  ;;  %v15360_v23 = vld [vmem:[#allocation2] ss:$0 sm:$0xff] }
0x1320   : > { %13384 = vmatpush3.bf16.msra.mxu0 %v14661_v40  ;;  %v10474_v3 = vld [vmem:[%s15516_s27] ss:$0 sm:$0xff] }
0x1321   : > { %12286 = vmatprep.mubr.msk.f32.mxu1 %vm1524_vm3, %v15119_v11  ;;  %13386 = vmatprep.subr.bf16.mxu0 %v14672_v52 }
0x1322   : > { %12287 = vmatmul.mubr.msk.f32.vlgmr.msra.gmra.mrb[46].mxu1 %vm1524_vm3, %v15122_v4 }
0x1323   : > { %13368 = vmatpush3.bf16.msra.mxu1 %v14714_v43  ;;  %12305 = vmatprep.mubr.msk.f32.mxu1 %vm1524_vm3, %v6319_v27 }
0x1324   : > { %13370 = vmatprep.subr.bf16.mxu1 %v14723_v22  ;;  %13388 = vmatpush3.bf16.msra.mxu0 %v14672_v52 }
0x1325   : > { %13390 = vmatprep.subr.bf16.mxu0 %v14689_v60 }
0x1327   : > { %13372 = vmatpush3.bf16.msra.mxu1 %v14723_v22 }
0x1328   : > { %13374 = vmatprep.subr.bf16.mxu1 %v14735_v28  ;;  %13392 = vmatpush3.bf16.msra.mxu0 %v14689_v60 }
0x1329   : > { %13394 = vmatprep.subr.bf16.mxu0 %v14706_v0 }
0x132b   : > { %13376 = vmatpush3.bf16.msra.mxu1 %v14735_v28 }
0x132c   : > { %13378 = vmatprep.subr.bf16.mxu1 %v14748_v12  ;;  %13396 = vmatpush3.bf16.msra.mxu0 %v14706_v0 }
0x132d   : > { %13398 = vmatprep.subr.bf16.mxu0 %v14714_v43 }
0x132f   : > { %13380 = vmatpush3.bf16.msra.mxu1 %v14748_v12 }
0x1330   : > { %13414 = vmatprep.subr.bf16.mxu1 %v14661_v40 }
0x1332   : > { %12306 = vmatmul.mubr.msk.f32.vlgmr.msra.gmra.mrb[46].mxu1 %vm1524_vm3, %v6320_v59 }
0x1333   : > { %13416 = vmatpush3.bf16.msra.mxu1 %v14661_v40 }
0x1334   : > { %13418 = vmatprep.subr.bf16.mxu1 %v14672_v52 }
0x1337   : > { %13420 = vmatpush3.bf16.msra.mxu1 %v14672_v52 }
0x1338   : > { %13422 = vmatprep.subr.bf16.mxu1 %v14689_v60 }
0x133b   : > { %13424 = vmatpush3.bf16.msra.mxu1 %v14689_v60 }
0x133c   : > { %13426 = vmatprep.subr.bf16.mxu1 %v14706_v0 }
0x133f   : > { %13428 = vmatpush3.bf16.msra.mxu1 %v14706_v0 }
0x1340   : > { %13430 = vmatprep.subr.bf16.mxu1 %v14714_v43 }
0x1372   : > { %v11965_v14 = vpop.f32.mrb[56].mxu0 }
0x1373   : > { %v6083_v31 = vadd.f32 %v14970_v41, %v11965_v14  ;;  %v6073_v63 = vpop.f32.mrb[57].mxu0  ;;  %v6878_v14 = vadd.f32 %v15222_v46, %v15029_v24 }
0x1374   : > { %v6082_v40 = vadd.f32 %v14970_v41, %v6073_v63  ;;  %v6366_v41 = vmul.f32 %v14636_v16, %v6335_v42  ;;  %v8145_v42 = vld [vmem:[%s13893_s28 + $0x8] sm:$0x7] }
0x1375   : > { %6356 = vperm.xlu1 %13765, %v6083_v31   ;;  %v10439_v31 = vld [vmem:[%s13893_s28 + $0x40] sm:$0xff]  ;;  %v10440_v63 = vld [vmem:[%s13893_s28 + $0x48] sm:$0x7] }
0x1376   : > { %6351 = vperm.xlu0 %13766, %v6082_v40   ;;  %v13469_v40 = vpack.c.bf16 %v10440_v63, %v10439_v31  ;;  %v9228_v31 = vld [vmem:[%s13908_s18 + $0x10] sm:$0xff]  ;;  %v9229_v63 = vld [vmem:[%s13908_s18 + $0x18] sm:$0xff] }
0x1392   : > { %v15156_v32 = vpop.f32.mrb[58].mxu0 }
0x1393   : > { %v15158_v52 = vpop.f32.mrb[59].mxu0 }
0x1394   : > { %v6720_v8 = vadd.f32 %v15222_v46, %v15158_v52  ;;  %v10445_v52 = vld [vmem:[%s13893_s28 + $0x58] sm:$0x7] }
0x13b2   : > { %v15160_v13 = vpop.f32.mrb[60].mxu0 }
0x13b3   : > { %v15162_v60 = vpop.f32.mrb[61].mxu0 }
0x13b4   : > { %v7036_v24 = vadd.f32 %v15222_v46, %v15162_v60  ;;  %v7194_v60 = vadd.f32 %v15222_v46, %v15065_v39 }
0x13d2   : > { %v15164_v38 = vpop.f32.mrb[62].mxu0 }
0x13d3   : > { %v15166_v0 = vpop.f32.mrb[63].mxu0 }
0x13d4   : > { %v7352_v39 = vadd.f32 %v15222_v46, %v15166_v0  ;;  %v7510_v0 = vadd.f32 %v15222_v46, %v15107_v6  ;;  %v10464_v6 = vld [vmem:[%s13893_s28 + $0x90] sm:$0xff] }
0x13f2   : > { %v15170_v29 = vpop.f32.mrb[64].mxu0 }
0x13f3   : > { %v15174_v10 = vpop.f32.mrb[65].mxu0 }
0x13f4   : > { %v6357_v55 = vpop.permute.xlu1 %6356 }
0x13f5   : > { %v6360_v33 = vmul.f32 %v14649_v45, %v6357_v55  ;;  %v6368_v57 = vmul.f32 %v14639_v17, %v6357_v55  ;;  %v6352_v20 = vpop.permute.xlu0 %6351  ;;  %v10455_v55 = vld [vmem:[%s13893_s28 + $0x78] sm:$0x7] }
0x13f6   : > { %v6359_v27 = vmul.f32 %v14649_v45, %v6352_v20  ;;  %v6367_v9 = vmul.f32 %v14639_v17, %v6352_v20  ;;  %v10421_v45 = vld [vmem:[%s13893_s28 + $0x10] sm:$0xff]  ;;  %v7668_v20 = vadd.f32 %v15222_v46, %v15174_v10 }
0x13f7   : > { %v6362_v49 = vadd.f32 %v6360_v33, %v6348_v56  ;;  %v6370_v15 = vadd.f32 %v6368_v57, %v6366_v41  ;;  %v10454_v41 = vld [vmem:[%s13893_s28 + $0x70] sm:$0xff]  ;;  %v10460_v33 = vld [vmem:[%s13893_s28 + $0x88] sm:$0x7] }
0x13f8   : > { %v6361_v25 = vadd.f32 %v6359_v27, %v6347_v62  ;;  %v6369_v5 = vadd.f32 %v6367_v9, %v6365_v58  ;;  %v13487_v56 = vpack.c.bf16 %v10455_v55, %v10454_v41  ;;  %v10459_v58 = vld [vmem:[%s13893_s28 + $0x80] sm:$0xff]  ;;  %v10465_v62 = vld [vmem:[%s13893_s28 + $0x98] sm:$0x7]  ;;  %v10470_v9 = vld [vmem:[%s13893_s28 + $0xa8] sm:$0x7] }
0x13f9   : > { %v6373_v48 = vadd.f32 %v6371_v53, %v6370_v15  ;;  %v6364_v59 = vadd.f32 %v14669_v51, %v6362_v49  ;;  %v13493_v57 = vpack.c.bf16 %v10460_v33, %v10459_v58  ;;  %v13499_v10 = vpack.c.bf16 %v10465_v62, %v10464_v6  ;;  %v10469_v27 = vld [vmem:[%s13893_s28 + $0xa0] sm:$0xff]  ;;  %v9232_v55 = vld [vmem:[%s13908_s18 + $0x30] sm:$0xff] }
0x13fa   : > { %v6363_v35 = vadd.f32 %v14669_v51, %v6361_v25  ;;  %v6372_v16 = vadd.f32 %v6371_v53, %v6369_v5  ;;  %v13505_v49 = vpack.c.bf16 %v10470_v9, %v10469_v27  ;;  %v9129_v15 = vld [vmem:[%s13903_s11] sm:$0xff]  ;;  %v9130_v25 = vld [vmem:[%s13903_s11 + $0x8] sm:$0xff]  ;;  %v9131_v5 = vld [vmem:[%s13903_s11 + $0x10] sm:$0xff] }
0x13fb   : > { %v6375_v17 = vadd.f32 %v14669_v51, %v6373_v48  ;;  %v13511_v48 = vpack.c.bf16 %v9130_v25, %v9129_v15  ;;  %v9270_v62 = vld [vmem:[%s15515_s26 + $0x30] sm:$0xff] }
0x13fc   : > { %12324 = vmatprep.mubr.msk.f32.mxu0 %vm1524_vm3, %v6363_v35  ;;  %v6374_v34 = vadd.f32 %v14669_v51, %v6372_v16  ;;  %v10422_v51 = vld [vmem:[%s13893_s28 + $0x18] sm:$0x7] }
0x13fd   : > { %12325 = vmatmul.mubr.msk.f32.vlgmr.msra.gmra.mrb[66].mxu0 %vm1524_vm3, %v6364_v59  ;;  %v13445_v1 = vpack.c.bf16 %v10422_v51, %v10421_v45 }
0x13fe   : > { %13400 = vmatpush3.bf16.msra.mxu0 %v14714_v43  ;;  %12343 = vmatprep.mubr.msk.f32.mxu0 %vm1524_vm3, %v15119_v11  ;;  %v10435_v11 = vld [vmem:[%s13893_s28 + $0x38] sm:$0x7] }
0x13ff   : > { %12362 = vmatprep.mubr.msk.f32.mxu1 %vm1524_vm3, %v6374_v34  ;;  %13402 = vmatprep.subr.bf16.mxu0 %v14723_v22  ;;  %v9134_v34 = vld [vmem:[%s13903_s11 + $0x28] sm:$0xff] }
0x1400   : > { %12363 = vmatmul.mubr.msk.f32.vlgmr.msra.gmra.mrb[48].mxu1 %vm1524_vm3, %v6375_v17 }
0x1401   : > { %13432 = vmatpush3.bf16.msra.mxu1 %v14714_v43  ;;  %12381 = vmatprep.mubr.msk.f32.mxu1 %vm1524_vm3, %v6363_v35  ;;  %v9132_v35 = vld [vmem:[%s13903_s11 + $0x18] sm:$0xff] }
0x1402   : > { %13404 = vmatpush3.bf16.msra.mxu0 %v14723_v22  ;;  %13434 = vmatprep.subr.bf16.mxu1 %v14723_v22  ;;  %v13515_v16 = vpack.c.bf16 %v9132_v35, %v9131_v5  ;;  %v9236_v5 = vld [vmem:[%s13908_s18 + $0x50] sm:$0xff]  ;;  %v9272_v35 = vld [vmem:[%s15515_s26 + $0x40] sm:$0xff] }
0x1403   : > { %13406 = vmatprep.subr.bf16.mxu0 %v14735_v28 }
0x1405   : > { %13436 = vmatpush3.bf16.msra.mxu1 %v14723_v22  ;;  %v15205_v61 = vpop.f32.mrb[46].mxu1  ;;  %v8144_v22 = vld [vmem:[%s13893_s28] sm:$0xff] }
0x1406   : > { %13408 = vmatpush3.bf16.msra.mxu0 %v14735_v28  ;;  %v15208_v43 = vpop.f32.mrb[47].mxu1  ;;  %13438 = vmatprep.subr.bf16.mxu1 %v14735_v28  ;;  %v13451_v7 = vpack.c.bf16 %v8145_v42, %v8144_v22 }
0x1407   : > { %13410 = vmatprep.subr.bf16.mxu0 %v14748_v12  ;;  %v7826_v53 = vadd.f32 %v15222_v46, %v15208_v43 }
0x1409   : > { %13440 = vmatpush3.bf16.msra.mxu1 %v14735_v28  ;;  %v6721_v28 = vadd.f32 %v15156_v32, %v15222_v46  ;;  %v10444_v32 = vld [vmem:[%s13893_s28 + $0x50] sm:$0xff] }
0x140a   : > { %13412 = vmatpush3.bf16.msra.mxu0 %v14748_v12  ;;  %13442 = vmatprep.subr.bf16.mxu1 %v14748_v12  ;;  %v13475_v44 = vpack.c.bf16 %v10445_v52, %v10444_v32  ;;  %v9231_v32 = vld [vmem:[%s13908_s18 + $0x28] sm:$0xff]  ;;  %v9266_v52 = vld [vmem:[%s15515_s26 + $0x10] sm:$0xff] }
0x140b   : > { %13447 = vmatprep.subr.msk.bf16.mxu0 %vm15212_vm6, %v13445_v1 }
0x140d   : > { %13444 = vmatpush3.bf16.msra.mxu1 %v14748_v12  ;;  %12344 = vmatmul.mubr.msk.f32.vlgmr.msra.gmra.mrb[66].mxu0 %vm1524_vm3, %v15122_v4  ;;  %v10434_v12 = vld [vmem:[%s13893_s28 + $0x30] sm:$0xff]  ;;  %v6563_v4 = vadd.f32 %v14998_v2, %v15222_v46  ;;  %v6879_v2 = vadd.f32 %v15026_v21, %v15222_v46  ;;  %v7037_v21 = vadd.f32 %v15160_v13, %v15222_v46 }
0x140e   : > { %13450 = vmatpush3.bf16.msk.msra.mxu0 %vm15212_vm6, %v13445_v1  ;;  %12388 = vmatprep.mubr.msk.f32.mxu0 %vm8149_vm7, %v6720_v8  ;;  %v13463_v18 = vpack.c.bf16 %v10435_v11, %v10434_v12  ;;  %v7195_v13 = vadd.f32 %v15062_v54, %v15222_v46  ;;  %v7353_v54 = vadd.f32 %v15164_v38, %v15222_v46  ;;  %v9135_v8 = vld [vmem:[%s13903_s11 + $0x30] sm:$0xff]  ;;  %v9265_v11 = vld [vmem:[%s15515_s26 + $0x8] sm:$0xff] }
0x140f   : > { %13453 = vmatprep.subr.msk.bf16.mxu0 %vm15212_vm6, %v13451_v7  ;;  %v7511_v38 = vadd.f32 %v15102_v50, %v15222_v46  ;;  %v7669_v50 = vadd.f32 %v15170_v29, %v15222_v46  ;;  %v7827_v29 = vadd.f32 %v15205_v61, %v15222_v46  ;;  %13512 = vmatprep.subr.bf16.mxu1 %v13511_v48 }
0x1410   : > { %12382 = vmatmul.mubr.msk.f32.vlgmr.msra.gmra.mrb[48].mxu1 %vm1524_vm3, %v6364_v59  ;;  %v9133_v59 = vld [vmem:[%s13903_s11 + $0x20] sm:$0xff] }
0x1411   : > { %12389 = vmatmul.mubr.msk.f32.vlgmr.msra.gmra.mrb[68].mxu0 %vm8149_vm7, %v6721_v28  ;;  %13514 = vmatpush3.bf16.msra.mxu1 %v13511_v48  ;;  %v13519_v17 = vpack.c.bf16 %v9134_v34, %v9133_v59  ;;  %v13523_v28 = vpack.c.bf16 %v9136_v19, %v9135_v8  ;;  %v9237_v48 = vld [vmem:[%s13908_s18 + $0x58] sm:$0xff]  ;;  %v9258_v59 = vmul.f32 %v15360_v23, %v9236_v5 }
0x1412   : > { %12395 = vmatprep.mubr.msk.f32.mxu0 %vm8149_vm7, %v6562_v36  ;;  %13456 = vmatpush3.bf16.msk.msra.mxu0 %vm15212_vm6, %v13451_v7  ;;  %v9227_v36 = vld [vmem:[%s13908_s18 + $0x8] sm:$0xff]  ;;  %v9259_v34 = vmul.f32 %v15360_v23, %v9237_v48 }
0x1413   : > { %13459 = vmatprep.subr.msk.bf16.mxu0 %vm15212_vm6, %v13457_v30  ;;  %13516 = vmatprep.subr.bf16.mxu1 %v13515_v16  ;;  %v9249_v12 = vmul.f32 %v15360_v23, %v9227_v36  ;;  %v9277_v36 = vld [vmem:[%s15515_s26 + $0x68] sm:$0xff] }
0x1415   : > { %13518 = vmatpush3.bf16.msra.mxu1 %v13515_v16  ;;  %v9273_v16 = vld [vmem:[%s15515_s26 + $0x48] sm:$0xff] }
0x1416   : > { %13520 = vmatprep.subr.bf16.mxu1 %v13519_v17 }
0x1419   : > { %12396 = vmatmul.mubr.msk.f32.vlgmr.msra.gmra.mrb[68].mxu0 %vm8149_vm7, %v6563_v4  ;;  %13522 = vmatpush3.bf16.msra.mxu1 %v13519_v17 }
0x141a   : > { %12402 = vmatprep.mubr.msk.f32.mxu0 %vm8149_vm7, %v6878_v14  ;;  %13462 = vmatpush3.bf16.msk.msra.mxu0 %vm15212_vm6, %v13457_v30  ;;  %v9226_v30 = vld [vmem:[%s13908_s18] sm:$0xff] }
0x141b   : > { %13465 = vmatprep.subr.msk.bf16.mxu0 %vm15212_vm6, %v13463_v18  ;;  %v9248_v37 = vmul.f32 %v15360_v23, %v9226_v30  ;;  %13524 = vmatprep.subr.bf16.mxu1 %v13523_v28  ;;  %v9276_v30 = vld [vmem:[%s15515_s26 + $0x60] sm:$0xff] }
0x141d   : > { %13526 = vmatpush3.bf16.msra.mxu1 %v13523_v28 }
0x1421   : > { %12403 = vmatmul.mubr.msk.f32.vlgmr.msra.gmra.mrb[68].mxu0 %vm8149_vm7, %v6879_v2  ;;  %v9250_v2 = vmul.f32 %v15360_v23, %v9228_v31  ;;  %v9278_v31 = vld [vmem:[%s15515_s26 + $0x70] sm:$0xff] }
0x1422   : > { %12409 = vmatprep.mubr.msk.f32.mxu0 %vm8149_vm7, %v7036_v24  ;;  %13468 = vmatpush3.bf16.msk.msra.mxu0 %vm15212_vm6, %v13463_v18  ;;  %v9281_v18 = vadd.f32 %v9265_v11, %v9249_v12  ;;  %v9230_v24 = vld [vmem:[%s13908_s18 + $0x20] sm:$0xff]  ;;  %v9241_v12 = vld [vmem:[%s13908_s18 + $0x78] sm:$0xff] }
0x1423   : > { %13471 = vmatprep.subr.msk.bf16.mxu0 %vm15212_vm6, %v13469_v40  ;;  %v9282_v26 = vadd.f32 %v9266_v52, %v9250_v2  ;;  %v9297_v52 = vld [vmem:[%s15517_s30 + $0x8] sm:$0xff] }
0x1429   : > { %12410 = vmatmul.mubr.msk.f32.vlgmr.msra.gmra.mrb[68].mxu0 %vm8149_vm7, %v7037_v21  ;;  %v9267_v21 = vld [vmem:[%s15515_s26 + $0x18] sm:$0xff] }
0x142a   : > { %12416 = vmatprep.mubr.msk.f32.mxu0 %vm8149_vm7, %v7194_v60  ;;  %13474 = vmatpush3.bf16.msk.msra.mxu0 %vm15212_vm6, %v13469_v40  ;;  %v9251_v40 = vmul.f32 %v15360_v23, %v9229_v63  ;;  %v9253_v60 = vmul.f32 %v15360_v23, %v9231_v32  ;;  %v9279_v63 = vld [vmem:[%s15515_s26 + $0x78] sm:$0xff] }
0x142b   : > { %13477 = vmatprep.subr.msk.bf16.mxu0 %vm15212_vm6, %v13475_v44 }
0x1431   : > { %12417 = vmatmul.mubr.msk.f32.vlgmr.msra.gmra.mrb[68].mxu0 %vm8149_vm7, %v7195_v13  ;;  %v9283_v13 = vadd.f32 %v9267_v21, %v9251_v40  ;;  %v9299_v21 = vld [vmem:[%s15518_s2 + $0x8] sm:$0xff] }
0x1432   : > { %12423 = vmatprep.mubr.msk.f32.mxu0 %vm8149_vm7, %v7352_v39  ;;  %13480 = vmatpush3.bf16.msk.msra.mxu0 %vm15212_vm6, %v13475_v44  ;;  %v9252_v44 = vmul.f32 %v15360_v23, %v9230_v24  ;;  %v9269_v39 = vld [vmem:[%s15515_s26 + $0x28] sm:$0xff] }
0x1433   : > { %13483 = vmatprep.subr.msk.bf16.mxu0 %vm15212_vm6, %v13481_v47  ;;  %v9285_v33 = vadd.f32 %v9269_v39, %v9253_v60 }
0x1439   : > { %12424 = vmatmul.mubr.msk.f32.vlgmr.msra.gmra.mrb[68].mxu0 %vm8149_vm7, %v7353_v54  ;;  %v9233_v54 = vld [vmem:[%s13908_s18 + $0x38] sm:$0xff] }
0x143a   : > { %12430 = vmatprep.mubr.msk.f32.mxu0 %vm8149_vm7, %v7510_v0  ;;  %13486 = vmatpush3.bf16.msk.msra.mxu0 %vm15212_vm6, %v13481_v47  ;;  %v9268_v47 = vld [vmem:[%s15515_s26 + $0x20] sm:$0xff]  ;;  %v9255_v6 = vmul.f32 %v15360_v23, %v9233_v54 }
0x143b   : > { %13489 = vmatprep.subr.msk.bf16.mxu0 %vm15212_vm6, %v13487_v56  ;;  %v9284_v58 = vadd.f32 %v9268_v47, %v9252_v44  ;;  %v9520_v54 = vld [vmem:[%s15520_s7] sm:$0xff] }
0x143d   : > { %v13535_v27 = vpack.c.bf16 %v9285_v33, %v9284_v58 }
0x1441   : > { %12431 = vmatmul.mubr.msk.f32.vlgmr.msra.gmra.mrb[68].mxu0 %vm8149_vm7, %v7511_v38 }
0x1442   : > { %12437 = vmatprep.mubr.msk.f32.mxu0 %vm8149_vm7, %v7668_v20  ;;  %13492 = vmatpush3.bf16.msk.msra.mxu0 %vm15212_vm6, %v13487_v56  ;;  %v9254_v20 = vmul.f32 %v15360_v23, %v9232_v55  ;;  %v9419_v55 = vld [vmem:[%s15519_s6] sm:$0xff] }
0x1443   : > { %13495 = vmatprep.subr.msk.bf16.mxu0 %vm15212_vm6, %v13493_v57 }
0x1444   : > { %v9286_v9 = vadd.f32 %v9270_v62, %v9254_v20 }
0x1449   : > { %12438 = vmatmul.mubr.msk.f32.vlgmr.msra.gmra.mrb[68].mxu0 %vm8149_vm7, %v7669_v50  ;;  %v9296_v50 = vld [vmem:[%s15517_s30] sm:$0xff] }
0x144a   : > { %12444 = vmatprep.mubr.msk.f32.mxu0 %vm8149_vm7, %v7826_v53  ;;  %13498 = vmatpush3.bf16.msk.msra.mxu0 %vm15212_vm6, %v13493_v57  ;;  %v13531_v57 = vpack.c.bf16 %v9283_v13, %v9282_v26  ;;  %v9234_v53 = vld [vmem:[%s13908_s18 + $0x40] sm:$0xff] }
0x144b   : > { %13501 = vmatprep.subr.msk.bf16.mxu0 %vm15212_vm6, %v13499_v10  ;;  %v9256_v15 = vmul.f32 %v15360_v23, %v9234_v53  ;;  %v9298_v13 = vld [vmem:[%s15518_s2] sm:$0xff] }
0x1451   : > { %12445 = vmatmul.mubr.msk.f32.vlgmr.msra.gmra.mrb[68].mxu0 %vm8149_vm7, %v7827_v29  ;;  %v9235_v29 = vld [vmem:[%s13908_s18 + $0x48] sm:$0xff] }
0x1452   : > { %13504 = vmatpush3.bf16.msk.msra.mxu0 %vm15212_vm6, %v13499_v10  ;;  %v9271_v10 = vld [vmem:[%s15515_s26 + $0x38] sm:$0xff]  ;;  %v9257_v25 = vmul.f32 %v15360_v23, %v9235_v29 }
0x1453   : > { %13507 = vmatprep.subr.msk.bf16.mxu0 %vm15212_vm6, %v13505_v49 }
0x14e0   : > { %v12345_v45 = vpop.f32.mrb[66].mxu0 }
0x14e1   : > { %v7975_v51 = vpop.f32.mrb[67].mxu0  ;;  %v7985_v43 = vadd.f32 %v12345_v45, %v15222_v46  ;;  %v9288_v45 = vadd.f32 %v9272_v35, %v9256_v15  ;;  %v9625_v15 = vld [vmem:[%s15523_s16] sm:$0xff] }
0x14e2   : > { %v7984_v61 = vadd.f32 %v15222_v46, %v7975_v51  ;;  %v9289_v51 = vadd.f32 %v9273_v16, %v9257_v25  ;;  %v9626_v25 = vld [vmem:[%s15523_s16 + $0x8] sm:$0xff] }
0x14e3   : > { %v12383_v1 = vpop.f32.mrb[48].mxu1 }
0x14e4   : > { %v8133_v22 = vpop.f32.mrb[49].mxu1  ;;  %12451 = vmatprep.mubr.msk.f32.mxu0 %vm8149_vm7, %v7984_v61  ;;  %v8143_v7 = vadd.f32 %v12383_v1, %v15222_v46  ;;  %v9274_v61 = vld [vmem:[%s15515_s26 + $0x50] sm:$0xff]  ;;  %v9238_v1 = vld [vmem:[%s13908_s18 + $0x60] sm:$0xff]  ;;  %v13543_v8 = vpack.c.bf16 %v9289_v51, %v9288_v45  ;;  %v9628_v51 = vld [vmem:[%s15523_s16 + $0x18] sm:$0xff] }
0x14e5   : > { %v8142_v42 = vadd.f32 %v15222_v46, %v8133_v22  ;;  %12452 = vmatmul.mubr.msk.f32.vlgmr.msra.gmra.mrb[68].mxu0 %vm8149_vm7, %v7985_v43  ;;  %v9264_v46 = vld [vmem:[%s15515_s26] sm:$0xff]  ;;  %v9275_v43 = vld [vmem:[%s15515_s26 + $0x58] sm:$0xff]  ;;  %v9239_v22 = vld [vmem:[%s13908_s18 + $0x68] sm:$0xff]  ;;  %v9260_v19 = vmul.f32 %v15360_v23, %v9238_v1 }
0x14e6   : > { %13510 = vmatpush3.bf16.msk.msra.mxu0 %vm15212_vm6, %v13505_v49  ;;  %v9280_v4 = vadd.f32 %v9264_v46, %v9248_v37  ;;  %v9287_v49 = vadd.f32 %v9271_v10, %v9255_v6  ;;  %v9261_v28 = vmul.f32 %v15360_v23, %v9239_v22  ;;  %v9240_v37 = vld [vmem:[%s13908_s18 + $0x70] sm:$0xff]  ;;  %v9403_v6 = vld [vmem:[%s15522_s12] sm:$0x3] }
0x14e7   : > { %12458 = vmatprep.mubr.msk.f32.mxu0 %vm8149_vm7, %v8142_v42  ;;  %v9290_v42 = vadd.f32 %v9274_v61, %v9258_v59  ;;  %v9292_v11 = vadd.f32 %v9276_v30, %v9260_v19  ;;  %v9627_v45 = vld [vmem:[%s15523_s16 + $0x10] sm:$0xff]  ;;  %v9420_v61 = vld [vmem:[%s15519_s6 + $0x8] sm:$0xff]  ;;  %v9422_v19 = vld [vmem:[%s15519_s6 + $0x18] sm:$0xff] }
0x14e8   : > { %v13527_v14 = vpack.c.bf16 %v9281_v18, %v9280_v4  ;;  %v13539_v17 = vpack.c.bf16 %v9287_v49, %v9286_v9  ;;  %v9293_v4 = vadd.f32 %v9277_v36, %v9261_v28  ;;  %v9262_v18 = vmul.f32 %v15360_v23, %v9240_v37  ;;  %v9421_v1 = vld [vmem:[%s15519_s6 + $0x10] sm:$0xff]  ;;  %v9523_v28 = vld [vmem:[%s15520_s7 + $0x18] sm:$0xff] }
0x14e9   : > { %v9522_v22 = vld [vmem:[%s15520_s7 + $0x10] sm:$0xff]  ;;  %v9632_v37 = vld [vmem:[%s15523_s16 + $0x38] sm:$0xff] }
0x14ea   : > { %13528 = vmatprep.subr.bf16.mxu1 %v13527_v14  ;;  %v13551_v2 = vpack.c.bf16 %v9293_v4, %v9292_v11  ;;  %v9294_v40 = vadd.f32 %v9278_v31, %v9262_v18  ;;  %v9631_v36 = vld [vmem:[%s15523_s16 + $0x30] sm:$0xff]  ;;  %v9634_v11 = vld [vmem:[%s15523_s16 + $0x48] sm:$0xff] }
0x14eb   : > { %v9635_v18 = vld [vmem:[%s15523_s16 + $0x50] sm:$0xff] }
0x14ed   : > { %12459 = vmatmul.mubr.msk.f32.vlgmr.msra.gmra.mrb[68].mxu0 %vm8149_vm7, %v8143_v7  ;;  %v9291_v7 = vadd.f32 %v9275_v43, %v9259_v34  ;;  %v9521_v43 = vld [vmem:[%s15520_s7 + $0x8] sm:$0xff] }
0x14ee   : > { %12519 = vmatprep.mubr.msk.f32.mxu0 %vm1273_vm0, %v9419_v55 }
0x14ef   : > { %v13547_v46 = vpack.c.bf16 %v9291_v7, %v9290_v42  ;;  %v13571_v42 = vpack.c.bf16 %v9628_v51, %v9627_v45  ;;  %v9629_v7 = vld [vmem:[%s15523_s16 + $0x20] sm:$0xff] }
0x15c0   : > { %v12460_v41 = vpop.f32.mrb[68].mxu0 }
0x15c1   : > { %v9109_v56 = vpop.f32.mrb[69].mxu0  ;;  %v9128_v38 = vadd.f32 %v12460_v41, %v10474_v3 }
0x15c2   : > { %v9127_v0 = vadd.f32 %v10474_v3, %v9109_v56  ;;  %v9389_v56 = vlaneseq }
0x15c4   : > { %12477 = vmatprep.mubr.msk.f32.mxu1 %vm1524_vm3, %v9127_v0  ;;  %v9390_v0 = vshrl.u32 %v9389_v56, 7 }
0x15c5   : > { %12478 = vmatmul.mubr.msk.f32.vlgmr.msra.gmra.mrb[50].mxu1 %vm1524_vm3, %v9128_v38  ;;  %v9377_v38 = vld [vmem:[%s15521_s15] sm:$0x3] }
0x15c6   : > { %13530 = vmatpush3.bf16.msra.mxu1 %v13527_v14  ;;  %12512 = vmatprep.mubr.f32.mxu1 %v9296_v50  ;;  %v9263_v14 = vmul.f32 %v15360_v23, %v9241_v12  ;;  %v10475_v23 = vld [vmem:[#allocation4] ss:$0 sm:$0xff]  ;;  %v9391_v58 = vsub.s32 0, %v9390_v0  ;;  %v9395_v33 = vsub.s32 1, %v9390_v0  ;;  %v13579_v12 = vpack.c.bf16 %v9632_v37, %v9631_v36 }
0x15c7   : > { %13532 = vmatprep.subr.bf16.mxu1 %v13531_v57  ;;  %v13627_v44 = vadd.f32 %v10475_v23, %v9299_v21 }
0x15c8   : > { %v9295_v24 = vadd.f32 %v9279_v63, %v9263_v14  ;;  %v9396_v20 = vrot.slane %v9377_v38, %v9395_v33  ;;  %v9408_v50 = vrot.slane %v9403_v6, %v9391_v58  ;;  %v9412_v10 = vrot.slane %v9403_v6, %v9395_v33  ;;  %v9636_v14 = vld [vmem:[%s15523_s16 + $0x58] sm:$0xff]  ;;  %v9637_v63 = vld [vmem:[%s15523_s16 + $0x60] sm:$0xff] }
0x15c9   : > { %v13587_v31 = vpack.c.bf16 %v9636_v14, %v9635_v18 }
0x15ca   : > { %13534 = vmatpush3.bf16.msra.mxu1 %v13531_v57  ;;  %v13555_v32 = vpack.c.bf16 %v9295_v24, %v9294_v40  ;;  %v9392_v57 = vrot.slane %v9377_v38, %v9391_v58  ;;  %v9639_v24 = vld [vmem:[%s15523_s16 + $0x70] sm:$0xff] }
0x15cb   : > { %13536 = vmatprep.subr.bf16.mxu1 %v13535_v27 }
0x15ce   : > { %13538 = vmatpush3.bf16.msra.mxu1 %v13535_v27 }
0x15cf   : > { %13540 = vmatprep.subr.bf16.mxu1 %v13539_v17 }
0x15d2   : > { %13542 = vmatpush3.bf16.msra.mxu1 %v13539_v17  ;;  %v13567_v17 = vpack.c.bf16 %v9626_v25, %v9625_v15 }
0x15d3   : > { %13544 = vmatprep.subr.bf16.mxu1 %v13543_v8 }
0x15d6   : > { %13546 = vmatpush3.bf16.msra.mxu1 %v13543_v8  ;;  %v9630_v8 = vld [vmem:[%s15523_s16 + $0x28] sm:$0xff] }
0x15d7   : > { %13548 = vmatprep.subr.bf16.mxu1 %v13547_v46  ;;  %v13575_v30 = vpack.c.bf16 %v9630_v8, %v9629_v7 }
0x15da   : > { %13550 = vmatpush3.bf16.msra.mxu1 %v13547_v46  ;;  %v9633_v46 = vld [vmem:[%s15523_s16 + $0x40] sm:$0xff] }
0x15db   : > { %13552 = vmatprep.subr.bf16.mxu1 %v13551_v2  ;;  %v13583_v4 = vpack.c.bf16 %v9634_v11, %v9633_v46 }
0x15de   : > { %13554 = vmatpush3.bf16.msra.mxu1 %v13551_v2  ;;  %v9638_v2 = vld [vmem:[%s15523_s16 + $0x68] sm:$0xff] }
0x15df   : > { %13556 = vmatprep.subr.bf16.mxu1 %v13555_v32  ;;  %v13591_v40 = vpack.c.bf16 %v9638_v2, %v9637_v63 }
0x15e2   : > { %13558 = vmatpush3.bf16.msra.mxu1 %v13555_v32  ;;  %v9640_v32 = vld [vmem:[%s15523_s16 + $0x78] sm:$0xff] }
0x15e5   : > { %12513 = vmatmul.mubr.f32.vlgmr.msra.gmra.mrb[50].mxu1 %v9297_v52  ;;  %v13595_v52 = vpack.c.bf16 %v9640_v32, %v9639_v24 }
0x15e6   : > { %12529 = vmatprep.mubr.msk.f32.mxu1 %vm1273_vm0, %v9520_v54 }
0x16b8   : > { %v12514_v60 = vpop.f32.mrb[50].mxu1 }
0x16b9   : > { %v13628_v3 = vadd.f32 %v13627_v44, %v12514_v60  ;;  %v9366_v26 = vpop.f32.mrb[51].mxu1 }
0x16ba   : > { %v13629_v47 = vadd.f32 %v10475_v23, %v9366_v26 }
0x16bb   : > { %9385 = vperm.xlu1 %13765, %v13628_v3  }
0x16bc   : > { %v13630_v39 = vadd.f32 %v13629_v47, %v9298_v13 }
0x16be   : > { %9380 = vperm.xlu0 %13766, %v13630_v39   ;;  %v13599_v41 = vpack.c.bf16 %v13628_v3, %v13630_v39 }
0x173a   : > { %v9386_v62 = vpop.permute.xlu1 %9385 }
0x173b   : > { %v9401_v53 = vmul.f32 %v9392_v57, %v9386_v62  ;;  %v9402_v29 = vmul.f32 %v9396_v20, %v9386_v62 }
0x173d   : > { %v9381_v27 = vpop.permute.xlu0 %9380  ;;  %v9417_v5 = vadd.f32 %v9408_v50, %v9401_v53  ;;  %v9418_v48 = vadd.f32 %v9412_v10, %v9402_v29 }
0x173e   : > { %v9399_v9 = vmul.f32 %v9392_v57, %v9381_v27  ;;  %v9400_v49 = vmul.f32 %v9396_v20, %v9381_v27 }
0x1740   : > { %v9415_v35 = vadd.f32 %v9408_v50, %v9399_v9  ;;  %v9416_v16 = vadd.f32 %v9412_v10, %v9400_v49 }
0x1742   : > { %v13559_v59 = vpack.c.bf16 %v9417_v5, %v9415_v35  ;;  %v13563_v34 = vpack.c.bf16 %v9418_v48, %v9416_v16 }
0x1744   : > { %13560 = vmatprep.subr.bf16.mxu0 %v13559_v59  ;;  %13564 = vmatprep.subr.bf16.mxu1 %v13563_v34 }
0x1745   : > { %13562 = vmatpush3.bf16.msra.mxu0 %v13559_v59  ;;  %13566 = vmatpush3.bf16.msra.mxu1 %v13563_v34 }
0x1746   : > { %13600 = vmatprep.subr.bf16.mxu1 %v13599_v41  ;;  %13568 = vmatprep.subr.bf16.mxu0 %v13567_v17 }
0x1748   : > { %12520 = vmatmul.mubr.msk.f32.vlgmr.msra.gmra.mrb[70].mxu0 %vm1273_vm0, %v9420_v61  ;;  %12530 = vmatmul.mubr.msk.f32.vlgmr.msra.gmra.mrb[52].mxu1 %vm1273_vm0, %v9521_v43 }
0x1749   : > { %13602 = vmatpush3.bf16.msra.mxu1 %v13599_v41  ;;  %12522 = vmatprep.mubr.msk.f32.mxu0 %vm1273_vm0, %v9421_v1 }
0x174a   : > { %12532 = vmatprep.mubr.msk.f32.mxu1 %vm1273_vm0, %v9522_v22  ;;  %13570 = vmatpush3.bf16.msra.mxu0 %v13567_v17 }
0x174b   : > { %13572 = vmatprep.subr.bf16.mxu0 %v13571_v42 }
0x174c   : > { %12523 = vmatmul.mubr.msk.f32.gmra.mrb[72].mxu0 %vm1273_vm0, %v9422_v19  ;;  %12533 = vmatmul.mubr.msk.f32.gmra.mrb[54].mxu1 %vm1273_vm0, %v9523_v28 }
0x174d   : > { %12577 = vmatprep.mubr.msk.f32.mxu1 %vm1273_vm0, %v9419_v55 }
0x174e   : > { %13574 = vmatpush3.bf16.msra.mxu0 %v13571_v42 }
0x174f   : > { %13576 = vmatprep.subr.bf16.mxu0 %v13575_v30 }
0x1750   : > { %12578 = vmatmul.mubr.msk.f32.vlgmr.msra.gmra.mrb[56].mxu1 %vm1273_vm0, %v9420_v61 }
0x1751   : > { %12580 = vmatprep.mubr.msk.f32.mxu1 %vm1273_vm0, %v9421_v1 }
0x1752   : > { %13578 = vmatpush3.bf16.msra.mxu0 %v13575_v30 }
0x1753   : > { %13580 = vmatprep.subr.bf16.mxu0 %v13579_v12 }
0x1754   : > { %12581 = vmatmul.mubr.msk.f32.gmra.mrb[58].mxu1 %vm1273_vm0, %v9422_v19 }
0x1756   : > { %13582 = vmatpush3.bf16.msra.mxu0 %v13579_v12 }
0x1757   : > { %13584 = vmatprep.subr.bf16.mxu0 %v13583_v4 }
0x175a   : > { %13586 = vmatpush3.bf16.msra.mxu0 %v13583_v4 }
0x175b   : > { %13588 = vmatprep.subr.bf16.mxu0 %v13587_v31 }
0x175e   : > { %13590 = vmatpush3.bf16.msra.mxu0 %v13587_v31 }
0x175f   : > { %13592 = vmatprep.subr.bf16.mxu0 %v13591_v40 }
0x1762   : > { %13594 = vmatpush3.bf16.msra.mxu0 %v13591_v40 }
0x1763   : > { %13596 = vmatprep.subr.bf16.mxu0 %v13595_v52 }
0x1766   : > { %13598 = vmatpush3.bf16.msra.mxu0 %v13595_v52 }
0x181b   : > { %v12521_v23 = vpop.f32.mrb[70].mxu0  ;;  %v12531_v21 = vpop.f32.mrb[52].mxu1 }
0x181c   : > { %v9622_v44 = vmul.f32 %v12531_v21, %v12521_v23  ;;  %v9501_v60 = vpop.f32.mrb[71].mxu0  ;;  %v9602_v3 = vpop.f32.mrb[53].mxu1 }
0x181d   : > { %v9621_v26 = vmul.f32 %v9602_v3, %v9501_v60 }
0x181f   : > { %v12524_v13 = vpop.f32.mrb[72].mxu0  ;;  %v12534_v47 = vpop.f32.mrb[54].mxu1  ;;  %12567 = vmatprep.mubr.f32.mxu0 %v9621_v26 }
0x1820   : > { %v9624_v39 = vmul.f32 %v12534_v47, %v12524_v13  ;;  %v9511_v41 = vpop.f32.mrb[73].mxu0  ;;  %v9612_v55 = vpop.f32.mrb[55].mxu1  ;;  %12568 = vmatmul.mubr.f32.vlgmr.msra.gmra.mrb[74].mxu0 %v9622_v44  ;;  %v9876_v47 = vld [vmem:[%s15524_s20] sm:$0xff] }
0x1821   : > { %v9623_v54 = vmul.f32 %v9612_v55, %v9511_v41  ;;  %12591 = vmatprep.mubr.msk.f32.mxu1 %vm9882_vm9, %v9876_v47 }
0x1823   : > { %12570 = vmatprep.mubr.f32.mxu0 %v9623_v54  ;;  %v12579_v60 = vpop.f32.mrb[56].mxu1 }
0x1824   : > { %12571 = vmatmul.mubr.f32.gmra.mrb[76].mxu0 %v9624_v39  ;;  %v9857_v3 = vpop.f32.mrb[57].mxu1 }
0x1827   : > { %v12582_v26 = vpop.f32.mrb[58].mxu1 }
0x1828   : > { %v9867_v13 = vpop.f32.mrb[59].mxu1 }
0x18f3   : > { %v12569_v56 = vpop.f32.mrb[74].mxu0 }
0x18f4   : > { %v9727_v0 = vmul.f32 0.25, %v12569_v56  ;;  %v9707_v58 = vpop.f32.mrb[75].mxu0 }
0x18f5   : > { %v9726_v33 = vmul.f32 0.25, %v9707_v58 }
0x18f6   : > { %v9732_v38 = vsel %vm9730_vm8, %v9727_v0, -inf }
0x18f7   : > { %v9731_v57 = vsel %vm9730_vm8, %v9726_v33, -inf  ;;  %v12572_v20 = vpop.f32.mrb[76].mxu0 }
0x18f8   : > { %v9735_v6 = vmax.f32 %v9731_v57, %v9732_v38  ;;  %v9729_v62 = vmul.f32 0.25, %v12572_v20  ;;  %v9717_v50 = vpop.f32.mrb[77].mxu0 }
0x18f9   : > { %v9728_v10 = vmul.f32 0.25, %v9717_v50 }
0x18fa   : > { %v9734_v53 = vsel %vm9730_vm8, %v9729_v62, -inf }
0x18fb   : > { %v9733_v29 = vsel %vm9730_vm8, %v9728_v10, -inf }
0x18fc   : > { %v9736_v27 = vmax.f32 %v9733_v29, %v9734_v53  ;;  %v9992_v53 = vld [vmem:[%s15525_s0] sm:$0xff]  ;;  %v9993_v29 = vld [vmem:[%s15525_s0 + $0x8] sm:$0xff] }
0x18fe   : > { %v9737_v9 = vmax.f32 %v9735_v6, %v9736_v27  ;;  %v9994_v27 = vld [vmem:[%s15525_s0 + $0x10] sm:$0xff] }
0x1900   : > { %v9738_v49 = vrot.slane %v9737_v9, 4 }
0x1902   : > { %v9739_v15 = vmax.f32 %v9737_v9, %v9738_v49  ;;  %v13611_v9 = vpack.c.bf16 %v9993_v29, %v9992_v53  ;;  %v9995_v49 = vld [vmem:[%s15525_s0 + $0x18] sm:$0xff] }
0x1904   : > { %v9740_v25 = vrot.slane %v9739_v15, 2 }
0x1906   : > { %v9741_v5 = vmax.f32 %v9739_v15, %v9740_v25  ;;  %v13615_v15 = vpack.c.bf16 %v9995_v49, %v9994_v27  ;;  %v9996_v25 = vld [vmem:[%s15525_s0 + $0x20] sm:$0xff] }
0x1908   : > { %v9742_v48 = vrot.slane %v9741_v5, 1 }
0x190a   : > { %v9743_v35 = vmax.f32 %v9741_v5, %v9742_v48  ;;  %v9997_v5 = vld [vmem:[%s15525_s0 + $0x28] sm:$0xff] }
0x190b   : > { %v13619_v48 = vpack.c.bf16 %v9997_v5, %v9996_v25 }
0x190c   : > { %v9744_v16 = vsub.f32 %v9726_v33, %v9743_v35  ;;  %v9746_v59 = vsub.f32 %v9728_v10, %v9743_v35  ;;  %v9747_v34 = vsub.f32 %v9729_v62, %v9743_v35  ;;  %v9745_v17 = vsub.f32 %v9727_v0, %v9743_v35  ;;  %v9877_v10 = vld [vmem:[%s15524_s20 + $0x8] sm:$0xff] }
0x190e   : > { %v9748_v45 = vmul.f32 1.442695, %v9744_v16  ;;  %v9752_v51 = vmul.f32 1.442695, %v9746_v59  ;;  %v9750_v61 = vmul.f32 1.442695, %v9745_v17 }
0x190f   : > { %v9754_v43 = vmul.f32 1.442695, %v9747_v34  ;;  %v9998_v16 = vld [vmem:[%s15525_s0 + $0x30] sm:$0xff]  ;;  %v9999_v59 = vld [vmem:[%s15525_s0 + $0x38] sm:$0xff] }
0x1910   : > { %13767 = vpow2.f32 %v9748_v45  ;;  %v13623_v17 = vpack.c.bf16 %v9999_v59, %v9998_v16  ;;  %v10493_v45 = vld [vmem:[%s15526_s4] ss:$0 sm:$0xff] }
0x1911   : > { %13769 = vpow2.f32 %v9752_v51 }
0x1912   : > { %13771 = vpow2.f32 %v9750_v61  ;;  %v10494_v61 = vld [vmem:[%s15527_s10] ss:$0 sm:$0xff] }
0x1913   : > { %13773 = vpow2.f32 %v9754_v43 }
0x191a   : > { %v13768_v1 = vpop.eup %13767 }
0x191b   : > { %v13770_v22 = vpop.eup %13769  ;;  %v9756_v42 = vsel %vm9730_vm8, %v13768_v1, 0.0 }
0x191c   : > { %v13772_v7 = vpop.eup %13771  ;;  %v9759_v30 = vsel %vm9730_vm8, %v13770_v22, 0.0 }
0x191d   : > { %v9757_v8 = vsel %vm9730_vm8, %v13772_v7, 0.0  ;;  %v13774_v19 = vpop.eup %13773 }
0x191e   : > { %v9758_v28 = vadd.f32 %v9757_v8, %v9756_v42  ;;  %v9761_v37 = vsel %vm9730_vm8, %v13774_v19, 0.0  ;;  %v10495_v8 = vld [vmem:[%s13973_s24] ss:$0 sm:$0xff] }
0x1920   : > { %v9760_v36 = vadd.f32 %v9759_v30, %v9758_v28 }
0x1922   : > { %v9762_v12 = vadd.f32 %v9761_v37, %v9760_v36 }
0x1924   : > { %v9763_v46 = vrot.slane %v9762_v12, 4 }
0x1926   : > { %v9764_v11 = vadd.f32 %v9763_v46, %v9762_v12 }
0x1928   : > { %v9765_v4 = vrot.slane %v9764_v11, 2 }
0x192a   : > { %v9766_v18 = vadd.f32 %v9765_v4, %v9764_v11 }
0x192c   : > { %v9767_v14 = vrot.slane %v9766_v18, 1 }
0x192e   : > { %v9768_v31 = vadd.f32 %v9767_v14, %v9766_v18 }
0x1930   : > { %13775 = vrcp.f32 %v9768_v31 }
0x193a   : > { %v13776_v63 = vpop.eup %13775 }
0x193b   : > { %v9771_v2 = vmul.f32 %v13776_v63, %v13772_v7  ;;  %v9770_v40 = vmul.f32 %v13776_v63, %v13768_v1  ;;  %v9772_v24 = vmul.f32 %v13776_v63, %v13770_v22  ;;  %v9773_v32 = vmul.f32 %v13776_v63, %v13774_v19 }
0x193d   : > { %v9777_v52 = vsel %vm9730_vm8, %v9771_v2, 0.0  ;;  %v9774_v23 = vsel %vm9730_vm8, %v9770_v40, 0.0  ;;  %v9780_v21 = vsel %vm9730_vm8, %v9772_v24, 0.0  ;;  %v9783_v44 = vsel %vm9730_vm8, %v9773_v32, 0.0 }
0x193e   : > { %9778 = vadd.xlane.f32.xlu1 %v9777_v52  ;;  %9775 = vadd.xlane.f32.xlu0 %v9774_v23 }
0x1942   : > { %9781 = vadd.xlane.f32.xlu0 %v9780_v21 }
0x1946   : > { %9784 = vadd.xlane.f32.xlu0 %v9783_v44 }
0x19cb   : > { %v9779_v39 = vpop.xlane.xlu1 %9778  ;;  %v9776_v41 = vpop.xlane.xlu0 %9775 }
0x19cc   : > { %v9788_v55 = vmul.f32 0.125, %v9779_v39  ;;  %v9787_v54 = vmul.f32 0.125, %v9776_v41 }
0x19ce   : > { %v9879_v56 = vmul.f32 %v12579_v60, %v9788_v55  ;;  %v9878_v0 = vmul.f32 %v9857_v3, %v9787_v54 }
0x19cf   : > { %v9782_v58 = vpop.xlane.xlu0 %9781 }
0x19d0   : > { %v13603_v33 = vpack.c.bf16 %v9879_v56, %v9878_v0  ;;  %v9789_v38 = vmul.f32 0.125, %v9782_v58 }
0x19d2   : > { %13604 = vmatprep.subr.bf16.mxu1 %v13603_v33  ;;  %v9880_v6 = vmul.f32 %v9867_v13, %v9789_v38 }
0x19d3   : > { %v9785_v57 = vpop.xlane.xlu0 %9784  ;;  %13606 = vmatpush3.bf16.msra.mxu1 %v13603_v33 }
0x19d4   : > { %v9790_v20 = vmul.f32 0.125, %v9785_v57 }
0x19d6   : > { %v9881_v62 = vmul.f32 %v12582_v26, %v9790_v20 }
0x19d8   : > { %v13607_v50 = vpack.c.bf16 %v9881_v62, %v9880_v6 }
0x19da   : > { %13608 = vmatprep.subr.bf16.mxu1 %v13607_v50 }
0x19db   : > { %13610 = vmatpush3.bf16.msra.mxu1 %v13607_v50 }
0x19dc   : > { %13612 = vmatprep.subr.bf16.mxu1 %v13611_v9 }
0x19de   : > { %12592 = vmatmul.mubr.msk.f32.vlgmr.msra.gmra.mrb[60].mxu1 %vm9882_vm9, %v9877_v10 }
0x19df   : > { %13614 = vmatpush3.bf16.msra.mxu1 %v13611_v9 }
0x19e0   : > { %13616 = vmatprep.subr.bf16.mxu1 %v13615_v15 }
0x19e3   : > { %13618 = vmatpush3.bf16.msra.mxu1 %v13615_v15 }
0x19e4   : > { %13620 = vmatprep.subr.bf16.mxu1 %v13619_v48 }
0x19e7   : > { %13622 = vmatpush3.bf16.msra.mxu1 %v13619_v48 }
0x19e8   : > { %13624 = vmatprep.subr.bf16.mxu1 %v13623_v17 }
0x19eb   : > { %13626 = vmatpush3.bf16.msra.mxu1 %v13623_v17 }
0x1ab1   : > { %v12593_v35 = vpop.f32.mrb[60].mxu1 }
0x1ab2   : > { %9972 = vperm.xlu0 %13766, %v12593_v35   ;;  %v9955_v34 = vpop.f32.mrb[61].mxu1 }
0x1ab3   : > { %9967 = vperm.xlu1 %13765, %v9955_v34  }
0x1b31   : > { %v9973_v51 = vpop.permute.xlu0 %9972 }
0x1b32   : > { %v9982_v43 = vmul.f32 %v10493_v45, %v9973_v51  ;;  %v9968_v1 = vpop.permute.xlu1 %9967 }
0x1b33   : > { %v9981_v22 = vmul.f32 %v10493_v45, %v9968_v1 }
0x1b34   : > { %v9991_v7 = vadd.f32 %v10494_v61, %v9982_v43 }
0x1b35   : > { %v9990_v42 = vadd.f32 %v10494_v61, %v9981_v22 }
0x1b37   : > { %12610 = vmatprep.mubr.msk.f32.mxu1 %vm1524_vm3, %v9990_v42 }
0x1b38   : > { %12611 = vmatmul.mubr.msk.f32.vlgmr.msra.gmra.mrb[62].mxu1 %vm1524_vm3, %v9991_v7 }
0x1c0b   : > { %v12612_v19 = vpop.f32.mrb[62].mxu1 }
0x1c0c   : > { %v10085_v28 = vadd.f32 %v12612_v19, %v10495_v8  ;;  %v10079_v30 = vpop.f32.mrb[63].mxu1 }
0x1c0d   : > { %v10080_v36 = vadd.f32 %v10495_v8, %v10079_v30 }
0x1c0e   : > { %10108 = vst.msk [vmem:[%s14070_s22 + $0x38] sm:$0xff] %vm1011_vm2, %v10085_v28 }
0x1c0f   : > { %10107 = vst.msk [vmem:[%s14070_s22 + $0x30] sm:$0xff] %vm1011_vm2, %v10080_v36 }
0x1c10 PF: > { %s79_s9 = sadd.s32 1, %s13792_s9  }
0x1c11   : > { %p76_p4 = scmp.ge.s32.totalorder %s79_s9, 4  }
0x1c13   :  { %78 = sbr.rel (!%p76_p4) target bundleno = 56 (0x38), region = 218 }

</bundles_post_ra>
